<compile_context>
chip_gen: v7x
topology: tpu7x:2x2x1
jax: 0.10.0
libtpu: 0.0.40
codegen_flags: <defaults>
</compile_context>

<pallas_src>
import functools
import math

import jax
import jax.numpy as jnp
from jax.experimental import pallas as pl
from jax.experimental.pallas import tpu as pltpu

_LOG2 = math.log(2.0)
_OUT_PAD = 128        # lane-dense padded output width (true n_output sliced outside)
_EDGE_TILE_MAX = 512  # edge tile cap: bounds per-tile VMEM to O(edge_tile * F)


# ----------------------------------------------------------------------------
# In-kernel helpers
# ----------------------------------------------------------------------------
def _ssp(x):
    # shifted softplus: softplus(x) - log(2), numerically stable (f32 path).
    # TODO(synk): on v6e/v7x a bf16 EUP path (exp/log1p in bf16) ~halves the
    # transcendental cost; kept f32 for cross-generation correctness.
    return jnp.maximum(x, 0.0) + jnp.log1p(jnp.exp(-jnp.abs(x))) - _LOG2


def _mm(a, b):
    # bf16 MXU inputs, f32 accumulation (bf16-native MXU on v5e/v6e/v7x).
    return jnp.dot(a.astype(jnp.bfloat16), b.astype(jnp.bfloat16),
                   preferred_element_type=jnp.float32)


def _res_chain(x, w1_ref, b1_ref, w2_ref, b2_ref):
    # pre-activation residual blocks: x + W2 @ ssp(W1 @ ssp(x) + b1) + b2
    # fori_loop(unroll=True): LLO visibility + bounded live ranges for big stacks.
    def body(r, xc):
        h = _mm(_ssp(xc), w1_ref[r]) + b1_ref[r]
        h = _mm(_ssp(h), w2_ref[r]) + b2_ref[r]
        return xc + h
    return jax.lax.fori_loop(0, w1_ref.shape[0], body, x, unroll=True)


# ----------------------------------------------------------------------------
# Fused forward kernel (grid axis = PhysModule index)
# ----------------------------------------------------------------------------
def _sphysnet_kernel(
    edge_tile,
    # resident const inputs (VMEM)
    d_ref, src_ref, dst_ref, centers_ref, widths_ref, cutoff_ref,
    # per-module inputs (streamed / double-buffered over the module grid axis)
    Gw_ref, Wij_ref, bij_ref,
    ri_w1_ref, ri_b1_ref, ri_w2_ref, ri_b2_ref,
    Wm_ref, bm_ref, u_ref,
    ra_w1_ref, ra_b1_ref, ra_w2_ref, ra_b2_ref,
    # HBM-resident (pl.ANY) inputs, DMA'd manually exactly when needed
    x0_hbm, ro_w1_hbm, ro_b1_hbm, ro_w2_hbm, ro_b2_hbm,
    wout_hbm, bout_hbm, scale_hbm, shift_hbm,
    # output
    out_ref,
    # VMEM scratch (persists across grid iterations)
    x_scr, rbf_scr,
):
    mod = pl.program_id(0)
    n_atoms, F = x_scr.shape
    e_pad = rbf_scr.shape[0]
    n_tiles = e_pad // edge_tile

    # ---- one-time setup (module 0): x0 HBM->VMEM, RBF expansion -----------
    @pl.when(mod == 0)
    def _init():
        pltpu.sync_copy(x0_hbm, x_scr)                   # embedding[Z] -> resident x
        d = d_ref[...]                                   # (E_pad, 1)
        cut = cutoff_ref[0, 0]
        u = d / cut
        u3 = u * u * u
        u4 = u3 * u
        u5 = u4 * u
        fc = jnp.where(d < cut, 1.0 - 6.0 * u5 + 15.0 * u4 - 10.0 * u3, 0.0)
        # padded edges have d >= cutoff -> fc == 0 -> rbf == 0 -> no message
        rbf_scr[...] = fc * jnp.exp(
            -widths_ref[...] * (jnp.exp(-d) - centers_ref[...]) ** 2)  # (E_pad, K)

    # ---- PhysModule: interaction + gated update + atomic residuals --------
    x = x_scr[...]                                       # (N, F) f32, resident
    a = _ssp(x)                                          # shared by Wi and Wj
    hij = _ssp(_mm(a, Wij_ref[...]) + bij_ref[...])      # (N, 2F), fused Wi|Wj
    xi = hij[:, :F]
    xj = hij[:, F:].astype(jnp.bfloat16)                 # cast once for the gather GEMM
    gw = Gw_ref[...]                                     # (K, F) bf16, hoisted

    # Edge-tiled interaction: build one-hot sub-blocks on the fly (bf16),
    # gather / scatter-add on the MXU, accumulate into an (N, F) value.
    # TODO(synk): for very large E switch this static loop to lax.fori_loop
    # (rolled) and on v7x shard tiles across the two TensorCores.
    m = xi
    for t in range(n_tiles):
        e0 = t * edge_tile
        src_t = src_ref[pl.ds(e0, edge_tile), :]         # (ET, 1) int32
        dst_t = dst_ref[:, pl.ds(e0, edge_tile)]         # (1, ET) int32
        cols = jax.lax.broadcasted_iota(jnp.int32, (edge_tile, n_atoms), 1)
        ohs = (cols == src_t).astype(jnp.bfloat16)       # (ET, N) gather one-hot
        rows = jax.lax.broadcasted_iota(jnp.int32, (n_atoms, edge_tile), 0)
        ohd = (rows == dst_t).astype(jnp.bfloat16)       # (N, ET) scatter one-hot
        g = _mm(rbf_scr[pl.ds(e0, edge_tile), :], gw)    # (ET, F) RBF gate
        xj_src = _mm(ohs, xj)                            # gather xj[src] on MXU
        msg = g * xj_src                                 # (ET, F)
        m = m + _mm(ohd, msg)                            # scatter-add over this tile

    m = _res_chain(m, ri_w1_ref, ri_b1_ref, ri_w2_ref, ri_b2_ref)
    m_lin = _mm(_ssp(m), Wm_ref[...]) + bm_ref[...]      # Wm @ ssp(m) + bm
    x = u_ref[...] * x + m_lin                           # gated update u*x + m
    x = _res_chain(x, ra_w1_ref, ra_b1_ref, ra_w2_ref, ra_b2_ref)
    x_scr[...] = x

    # ---- output layer + per-atom normalize (only on the final module) -----
    # The output-layer constants live in HBM and are copied into scoped VMEM
    # buffers only on the last module, so they never sit in pipelined input
    # VMEM during the earlier modules.  out_ref has a constant index_map, so
    # writing it only on the last grid step is the single final writeback.
    def _finalize(ro_w1, ro_b1, ro_w2, ro_b2, wout, bout, sc, sh):
        @pl.when(mod == pl.num_programs(0) - 1)
        def _():
            # TODO(synk): overlap these copies with the previous module's
            # interaction compute (issue at mod == last-1, wait here).
            pltpu.sync_copy(ro_w1_hbm, ro_w1)
            pltpu.sync_copy(ro_b1_hbm, ro_b1)
            pltpu.sync_copy(ro_w2_hbm, ro_w2)
            pltpu.sync_copy(ro_b2_hbm, ro_b2)
            pltpu.sync_copy(wout_hbm, wout)
            pltpu.sync_copy(bout_hbm, bout)
            pltpu.sync_copy(scale_hbm, sc)
            pltpu.sync_copy(shift_hbm, sh)
            y = _res_chain(x, ro_w1, ro_b1, ro_w2, ro_b2)
            out = _mm(_ssp(y), wout[...]) + bout[...]    # (N, OUT_PAD), lane-dense
            out_ref[...] = sc[...] * out + sh[...]

    pl.run_scoped(
        _finalize,
        pltpu.VMEM(ro_w1_hbm.shape, ro_w1_hbm.dtype),
        pltpu.VMEM(ro_b1_hbm.shape, ro_b1_hbm.dtype),
        pltpu.VMEM(ro_w2_hbm.shape, ro_w2_hbm.dtype),
        pltpu.VMEM(ro_b2_hbm.shape, ro_b2_hbm.dtype),
        pltpu.VMEM(wout_hbm.shape, wout_hbm.dtype),
        pltpu.VMEM(bout_hbm.shape, bout_hbm.dtype),
        pltpu.VMEM(scale_hbm.shape, scale_hbm.dtype),
        pltpu.VMEM(shift_hbm.shape, shift_hbm.dtype),
    )


# ----------------------------------------------------------------------------
# Forward wrapper
# ----------------------------------------------------------------------------
def sphysnet_forward(params, R, Z, edge_index, n_output=1):
    """R: (N,3) f32, Z: (N,) i32, edge_index: (2,E) i32 -> {'atom_prop': (N, n_output)}."""
    src = edge_index[0].astype(jnp.int32)
    dst = edge_index[1].astype(jnp.int32)
    # torch.nn.PairwiseDistance convention: eps added to the difference, keepdim
    diff = R[src] - R[dst] + 1e-6
    d = jnp.sqrt(jnp.sum(diff * diff, axis=-1, keepdims=True)).astype(jnp.float32)

    # tiny one-time index gathers left to XLA (exact f32, outside the hot loop)
    x0 = params['embedding'][Z]                          # (N, F)
    scale_z = params['scale'][Z]                         # (N, OUT_PAD)
    shift_z = params['shift'][Z]                         # (N, OUT_PAD)

    n_atoms, F = x0.shape
    n_edges = d.shape[0]
    n_mod = params['Gw'].shape[0]
    K = params['centers'].shape[0]
    out_pad = params['W_out'].shape[1]

    # --- pad the edge dimension to a multiple of the edge tile -------------
    # (padded edges have d = 2*cutoff -> cosine cutoff fc = 0 -> zero message)
    e_ceil = ((n_edges + 127) // 128) * 128
    edge_tile = min(_EDGE_TILE_MAX, e_ceil)
    e_pad = ((n_edges + edge_tile - 1) // edge_tile) * edge_tile
    pad_e = e_pad - n_edges
    if pad_e:
        d = jnp.concatenate(
            [d, jnp.zeros((pad_e, 1), jnp.float32) + 2.0 * params['cutoff'][0, 0]],
            axis=0)
        src = jnp.concatenate([src, jnp.zeros((pad_e,), jnp.int32)])
        dst = jnp.concatenate([dst, jnp.zeros((pad_e,), jnp.int32)])

    # src kept (E,1) (sublane) so the (ET,N) gather one-hot needs no transposed
    # matmul; dst kept (1,E) lane-dense for the (N,ET) scatter one-hot.
    src2 = src.reshape(e_pad, 1)
    dst2 = dst.reshape(1, e_pad)
    centers = params['centers'].reshape(1, K)
    widths = params['widths'].reshape(1, K)

    def const_spec(shape):
        shape = tuple(int(s) for s in shape)
        nd = len(shape)
        return pl.BlockSpec(shape, lambda m: (0,) * nd)

    def mod_spec(tail):
        tail = tuple(int(s) for s in tail)
        nd = len(tail)
        # TODO(synk): on v5e, if the per-module weight stream is DMA-exposed,
        # raise pipelining depth here via pipeline_mode=pl.Buffered(3).
        return pl.BlockSpec((None,) + tail, lambda m: (m,) + (0,) * nd)

    in_specs = [
        const_spec((e_pad, 1)),                    # d
        const_spec((e_pad, 1)),                    # src
        const_spec((1, e_pad)),                    # dst
        const_spec((1, K)),                        # centers
        const_spec((1, K)),                        # widths
        const_spec((1, 1)),                        # cutoff
        mod_spec((K, F)),                          # Gw
        mod_spec((F, 2 * F)),                      # Wij (Wi|Wj fused)
        mod_spec((1, 2 * F)),                      # bij
        mod_spec(params['ri_w1'].shape[1:]),       # res_interaction stack
        mod_spec(params['ri_b1'].shape[1:]),
        mod_spec(params['ri_w2'].shape[1:]),
        mod_spec(params['ri_b2'].shape[1:]),
        mod_spec((F, F)),                          # Wm
        mod_spec((1, F)),                          # bm
        mod_spec((1, F)),                          # u (gate)
        mod_spec(params['ra_w1'].shape[1:]),       # res_atomic stack
        mod_spec(params['ra_b1'].shape[1:]),
        mod_spec(params['ra_w2'].shape[1:]),
        mod_spec(params['ra_b2'].shape[1:]),
    ] + [pl.BlockSpec(memory_space=pl.ANY) for _ in range(9)]  # x0, ro_*, W_out, b_out, scale, shift

    # VMEM budget per generation (v7x has half the VMEM of v5e/v6e)
    try:
        vmem_cap = pltpu.get_tpu_info().vmem_capacity_bytes
        vmem_limit = int(min(vmem_cap * 3 // 4, 100 * 1024 * 1024))
    except Exception:
        vmem_limit = 32 * 1024 * 1024

    kernel = functools.partial(_sphysnet_kernel, edge_tile)

    out = pl.pallas_call(
        kernel,
        out_shape=jax.ShapeDtypeStruct((n_atoms, out_pad), jnp.float32),
        grid_spec=pltpu.PrefetchScalarGridSpec(
            num_scalar_prefetch=0,
            grid=(n_mod,),
            in_specs=in_specs,
            out_specs=const_spec((n_atoms, out_pad)),
            scratch_shapes=[
                pltpu.VMEM((n_atoms, F), jnp.float32),   # resident atom features
                pltpu.VMEM((e_pad, K), jnp.float32),     # RBF expansion
            ]),
        compiler_params=pltpu.CompilerParams(
            # module axis is a sequential carry over x -> "arbitrary".
            dimension_semantics=("arbitrary",),
            vmem_limit_bytes=vmem_limit,
        ),
    )(
        d, src2, dst2, centers, widths, params['cutoff'],
        params['Gw'], params['Wij'], params['bij'],
        params['ri_w1'], params['ri_b1'], params['ri_w2'], params['ri_b2'],
        params['Wm'], params['bm'], params['u'],
        params['ra_w1'], params['ra_b1'], params['ra_w2'], params['ra_b2'],
        x0, params['ro_w1'], params['ro_b1'], params['ro_w2'], params['ro_b2'],
        params['W_out'], params['b_out'], scale_z, shift_z,
    )
    return {'atom_prop': out[:, :n_output]}


# ----------------------------------------------------------------------------
# Parameter construction (deterministic, synthetic)
# ----------------------------------------------------------------------------
class _KeyGen:
    def __init__(self, key):
        self._key = key

    def __call__(self):
        self._key, sub = jax.random.split(self._key)
        return sub


def init_params(key, *, n_module, n_atom_embedding, n_feature, n_output,
                n_res_atomic, n_res_interaction, n_res_output,
                expansion_n, expansion_dist, last_lin_bias=False,
                out_pad=_OUT_PAD):
    kg = _KeyGen(key)
    F, K, M = n_feature, expansion_n, n_module

    # softplus(softplus_inverse(x)) == x, so registered RBF params reduce to:
    centers = jnp.linspace(1.0, math.exp(-expansion_dist), K).astype(jnp.float32)
    width_val = (0.5 / ((1.0 - math.exp(-expansion_dist)) / K)) ** 2
    widths = jnp.full((K,), width_val, jnp.float32)
    cutoff = jnp.full((1, 1), expansion_dist, jnp.float32)

    embedding = jax.random.uniform(
        kg(), (n_atom_embedding, F), jnp.float32,
        minval=-math.sqrt(3.0), maxval=math.sqrt(3.0))

    def lin_w(fan_in, fan_out):
        return (jax.random.normal(kg(), (fan_in, fan_out), jnp.float32)
                / math.sqrt(fan_in))

    def res_stack(n_res):
        w1 = jnp.stack([lin_w(F, F) for _ in range(n_res)]).astype(jnp.bfloat16)
        b1 = jnp.zeros((n_res, 1, F), jnp.float32)
        w2 = jnp.stack([lin_w(F, F) for _ in range(n_res)]).astype(jnp.bfloat16)
        b2 = jnp.zeros((n_res, 1, F), jnp.float32)
        return w1, b1, w2, b2

    Gw, Wij, bij = [], [], []
    Wm, bm, u = [], [], []
    ri = [[], [], [], []]
    ra = [[], [], [], []]
    for _ in range(M):
        Gw.append(lin_w(K, F).astype(jnp.bfloat16))
        wi, wj = lin_w(F, F), lin_w(F, F)
        Wij.append(jnp.concatenate([wi, wj], axis=1).astype(jnp.bfloat16))
        bij.append(jnp.zeros((1, 2 * F), jnp.float32))
        for lst, arr in zip(ri, res_stack(n_res_interaction)):
            lst.append(arr)
        Wm.append(lin_w(F, F).astype(jnp.bfloat16))
        bm.append(jnp.zeros((1, F), jnp.float32))
        u.append(jnp.ones((1, F), jnp.float32))
        for lst, arr in zip(ra, res_stack(n_res_atomic)):
            lst.append(arr)

    ro_w1, ro_b1, ro_w2, ro_b2 = res_stack(n_res_output)

    w_out = jnp.zeros((F, out_pad), jnp.float32).at[:, :n_output].set(
        lin_w(F, n_output))
    b_out = jnp.zeros((1, out_pad), jnp.float32)
    if last_lin_bias:
        b_out = b_out.at[:, :n_output].set(
            jax.random.normal(kg(), (1, n_output), jnp.float32))

    scale = jnp.ones((n_atom_embedding, out_pad), jnp.float32)   # std_atom default
    shift = jnp.zeros((n_atom_embedding, out_pad), jnp.float32)  # mean_atom default

    return dict(
        cutoff=cutoff, centers=centers, widths=widths, embedding=embedding,
        Gw=jnp.stack(Gw), Wij=jnp.stack(Wij), bij=jnp.stack(bij),
        ri_w1=jnp.stack(ri[0]), ri_b1=jnp.stack(ri[1]),
        ri_w2=jnp.stack(ri[2]), ri_b2=jnp.stack(ri[3]),
        Wm=jnp.stack(Wm), bm=jnp.stack(bm), u=jnp.stack(u),
        ra_w1=jnp.stack(ra[0]), ra_b1=jnp.stack(ra[1]),
        ra_w2=jnp.stack(ra[2]), ra_b2=jnp.stack(ra[3]),
        ro_w1=ro_w1, ro_b1=ro_b1, ro_w2=ro_w2, ro_b2=ro_b2,
        W_out=w_out.astype(jnp.bfloat16), b_out=b_out,
        scale=scale, shift=shift)


# ----------------------------------------------------------------------------
# Demo
# ----------------------------------------------------------------------------
if __name__ == "__main__":
    key = jax.random.PRNGKey(0)
    kp, kR, kZ, ke = jax.random.split(key, 4)

    # small shapes consistent with the module (production: F=512, K=64)
    n_atoms, n_edges = 16, 64
    n_feature, expansion_n, n_output, n_module = 128, 64, 1, 2

    params = init_params(
        kp, n_module=n_module, n_atom_embedding=95, n_feature=n_feature,
        n_output=n_output, n_res_atomic=1, n_res_interaction=1, n_res_output=1,
        expansion_n=expansion_n, expansion_dist=10.0, last_lin_bias=False)

    R = jax.random.normal(kR, (n_atoms, 3), jnp.float32) * 2.0
    Z = jax.random.randint(kZ, (n_atoms,), 1, 95, dtype=jnp.int32)
    edge_index = jax.random.randint(ke, (2, n_edges), 0, n_atoms, dtype=jnp.int32)

    fwd = jax.jit(sphysnet_forward)
    out = fwd(params, R, Z, edge_index)
    jax.block_until_ready(out)

    assert out['atom_prop'].shape == (n_atoms, n_output)
    assert bool(jnp.all(jnp.isfinite(out['atom_prop'])))
    print("KERNEL_OK")
</pallas_src>

<mosaic_0001>
module attributes {stable_mosaic.version = 11 : i64} {
  func.func @_sphysnet_kernel(%arg0: i32, %arg1: memref<128x1xf32, #tpu.memory_space<vmem>>, %arg2: memref<128x1xi32, #tpu.memory_space<vmem>>, %arg3: memref<1x128xi32, #tpu.memory_space<vmem>>, %arg4: memref<1x64xf32, #tpu.memory_space<vmem>>, %arg5: memref<1x64xf32, #tpu.memory_space<vmem>>, %arg6: memref<1x1xf32, #tpu.memory_space<vmem>>, %arg7: memref<1x64x128xbf16, #tpu.memory_space<vmem>>, %arg8: memref<1x128x256xbf16, #tpu.memory_space<vmem>>, %arg9: memref<1x1x256xf32, #tpu.memory_space<vmem>>, %arg10: memref<1x1x128x128xbf16, #tpu.memory_space<vmem>>, %arg11: memref<1x1x1x128xf32, #tpu.memory_space<vmem>>, %arg12: memref<1x1x128x128xbf16, #tpu.memory_space<vmem>>, %arg13: memref<1x1x1x128xf32, #tpu.memory_space<vmem>>, %arg14: memref<1x128x128xbf16, #tpu.memory_space<vmem>>, %arg15: memref<1x1x128xf32, #tpu.memory_space<vmem>>, %arg16: memref<1x1x128xf32, #tpu.memory_space<vmem>>, %arg17: memref<1x1x128x128xbf16, #tpu.memory_space<vmem>>, %arg18: memref<1x1x1x128xf32, #tpu.memory_space<vmem>>, %arg19: memref<1x1x128x128xbf16, #tpu.memory_space<vmem>>, %arg20: memref<1x1x1x128xf32, #tpu.memory_space<vmem>>, %arg21: memref<16x128xf32, #tpu.memory_space<any>>, %arg22: memref<1x128x128xbf16, #tpu.memory_space<any>>, %arg23: memref<1x1x128xf32, #tpu.memory_space<any>>, %arg24: memref<1x128x128xbf16, #tpu.memory_space<any>>, %arg25: memref<1x1x128xf32, #tpu.memory_space<any>>, %arg26: memref<128x128xbf16, #tpu.memory_space<any>>, %arg27: memref<1x128xf32, #tpu.memory_space<any>>, %arg28: memref<16x128xf32, #tpu.memory_space<any>>, %arg29: memref<16x128xf32, #tpu.memory_space<any>>, %arg30: memref<16x128xf32, #tpu.memory_space<vmem>>, %arg31: memref<16x128xf32, #tpu.memory_space<vmem>>, %arg32: memref<128x64xf32, #tpu.memory_space<vmem>>) attributes {dimension_semantics = [#tpu.dimension_semantics<arbitrary>], iteration_bounds = array<i64: 2>, scalar_prefetch = 0 : i64, scratch_operands = 2 : i64, tpu.core_type = #tpu.core_type<tc>, window_params = [{pipeline_mode = #tpu.pipeline_mode<synchronous>, transform_indices = @transform_0, window_bounds = array<i64: 128, 1>}, {pipeline_mode = #tpu.pipeline_mode<synchronous>, transform_indices = @transform_1, window_bounds = array<i64: 128, 1>}, {pipeline_mode = #tpu.pipeline_mode<synchronous>, transform_indices = @transform_2, window_bounds = array<i64: 1, 128>}, {pipeline_mode = #tpu.pipeline_mode<synchronous>, transform_indices = @transform_3, window_bounds = array<i64: 1, 64>}, {pipeline_mode = #tpu.pipeline_mode<synchronous>, transform_indices = @transform_4, window_bounds = array<i64: 1, 64>}, {pipeline_mode = #tpu.pipeline_mode<synchronous>, transform_indices = @transform_5, window_bounds = array<i64: 1, 1>}, {transform_indices = @transform_6, window_bounds = array<i64: 1, 64, 128>}, {transform_indices = @transform_7, window_bounds = array<i64: 1, 128, 256>}, {transform_indices = @transform_8, window_bounds = array<i64: 1, 1, 256>}, {transform_indices = @transform_9, window_bounds = array<i64: 1, 1, 128, 128>}, {transform_indices = @transform_10, window_bounds = array<i64: 1, 1, 1, 128>}, {transform_indices = @transform_11, window_bounds = array<i64: 1, 1, 128, 128>}, {transform_indices = @transform_12, window_bounds = array<i64: 1, 1, 1, 128>}, {transform_indices = @transform_13, window_bounds = array<i64: 1, 128, 128>}, {transform_indices = @transform_14, window_bounds = array<i64: 1, 1, 128>}, {transform_indices = @transform_15, window_bounds = array<i64: 1, 1, 128>}, {transform_indices = @transform_16, window_bounds = array<i64: 1, 1, 128, 128>}, {transform_indices = @transform_17, window_bounds = array<i64: 1, 1, 1, 128>}, {transform_indices = @transform_18, window_bounds = array<i64: 1, 1, 128, 128>}, {transform_indices = @transform_19, window_bounds = array<i64: 1, 1, 1, 128>}, {}, {}, {}, {}, {}, {}, {}, {}, {}, {pipeline_mode = #tpu.pipeline_mode<synchronous>, transform_indices = @transform_29, window_bounds = array<i64: 16, 128>}]} {
    %c0_i32 = arith.constant 0 : i32
    %0 = arith.cmpi eq, %arg0, %c0_i32 : i32
    %1 = arith.extui %0 : i1 to i32
    %c0_i32_0 = arith.constant 0 : i32
    %2 = arith.cmpi ne, %1, %c0_i32_0 : i32
    scf.if %2 {
      "tpu.region"() ({
        %205 = tpu.sem_alloc : memref<!tpu.dma_semaphore, #tpu.memory_space<semaphore_mem>>
        tpu.enqueue_dma source(%arg21 : memref<16x128xf32, #tpu.memory_space<any>>) target(%arg31 : memref<16x128xf32, #tpu.memory_space<vmem>>) target_semaphore(%205 : memref<!tpu.dma_semaphore, #tpu.memory_space<semaphore_mem>>)
        tpu.wait_dma2 semaphore(%205 : memref<!tpu.dma_semaphore, #tpu.memory_space<semaphore_mem>>) src(%arg21 : memref<16x128xf32, #tpu.memory_space<any>>) dst(%arg31 : memref<16x128xf32, #tpu.memory_space<vmem>>)
        tpu.yield
      }) : () -> ()
      %c0_84 = arith.constant 0 : index
      %c0_85 = arith.constant 0 : index
      %165 = vector.load %arg1[%c0_84, %c0_85] : memref<128x1xf32, #tpu.memory_space<vmem>>, vector<128x1xf32>
      %c0_86 = arith.constant 0 : index
      %c0_87 = arith.constant 0 : index
      %166 = vector.load %arg6[%c0_86, %c0_87] : memref<1x1xf32, #tpu.memory_space<vmem>>, vector<1x1xf32>
      %167 = vector.extract %166[0, 0] : f32 from vector<1x1xf32>
      %168 = vector.broadcast %167 : f32 to vector<128x1xf32>
      %169 = arith.divf %165, %168 : vector<128x1xf32>
      %170 = arith.mulf %169, %169 : vector<128x1xf32>
      %171 = arith.mulf %170, %169 : vector<128x1xf32>
      %172 = arith.mulf %171, %169 : vector<128x1xf32>
      %173 = arith.mulf %172, %169 : vector<128x1xf32>
      %174 = vector.broadcast %167 : f32 to vector<128x1xf32>
      %175 = arith.cmpf olt, %165, %174 : vector<128x1xf32>
      %cst_88 = arith.constant 6.000000e+00 : f32
      %176 = vector.broadcast %cst_88 : f32 to vector<128x1xf32>
      %177 = arith.mulf %176, %173 : vector<128x1xf32>
      %cst_89 = arith.constant 1.000000e+00 : f32
      %178 = vector.broadcast %cst_89 : f32 to vector<128x1xf32>
      %179 = arith.subf %178, %177 : vector<128x1xf32>
      %cst_90 = arith.constant 1.500000e+01 : f32
      %180 = vector.broadcast %cst_90 : f32 to vector<128x1xf32>
      %181 = arith.mulf %180, %172 : vector<128x1xf32>
      %182 = arith.addf %179, %181 : vector<128x1xf32>
      %cst_91 = arith.constant 1.000000e+01 : f32
      %183 = vector.broadcast %cst_91 : f32 to vector<128x1xf32>
      %184 = arith.mulf %183, %171 : vector<128x1xf32>
      %185 = arith.subf %182, %184 : vector<128x1xf32>
      %cst_92 = arith.constant 0.000000e+00 : f32
      %186 = vector.broadcast %cst_92 : f32 to vector<128x1xf32>
      %187 = arith.select %175, %185, %186 : vector<128x1xi1>, vector<128x1xf32>
      %c0_93 = arith.constant 0 : index
      %c0_94 = arith.constant 0 : index
      %188 = vector.load %arg5[%c0_93, %c0_94] : memref<1x64xf32, #tpu.memory_space<vmem>>, vector<1x64xf32>
      %cst_95 = arith.constant 0.000000e+00 : f32
      %189 = vector.broadcast %cst_95 : f32 to vector<1x64xf32>
      %190 = arith.subf %189, %188 : vector<1x64xf32>
      %cst_96 = arith.constant 0.000000e+00 : f32
      %191 = vector.broadcast %cst_96 : f32 to vector<128x1xf32>
      %192 = arith.subf %191, %165 : vector<128x1xf32>
      %193 = math.exp %192 : vector<128x1xf32>
      %c0_97 = arith.constant 0 : index
      %c0_98 = arith.constant 0 : index
      %194 = vector.load %arg4[%c0_97, %c0_98] : memref<1x64xf32, #tpu.memory_space<vmem>>, vector<1x64xf32>
      %195 = vector.broadcast %193 : vector<128x1xf32> to vector<128x64xf32>
      %196 = vector.broadcast %194 : vector<1x64xf32> to vector<128x64xf32>
      %197 = arith.subf %195, %196 : vector<128x64xf32>
      %198 = arith.mulf %197, %197 : vector<128x64xf32>
      %199 = vector.broadcast %190 : vector<1x64xf32> to vector<128x64xf32>
      %200 = arith.mulf %199, %198 : vector<128x64xf32>
      %201 = math.exp %200 : vector<128x64xf32>
      %202 = vector.broadcast %187 : vector<128x1xf32> to vector<128x64xf32>
      %203 = arith.mulf %202, %201 : vector<128x64xf32>
      %c0_99 = arith.constant 0 : index
      %c0_100 = arith.constant 0 : index
      %204 = vector.load %arg32[%c0_99, %c0_100] : memref<128x64xf32, #tpu.memory_space<vmem>>, vector<128x64xf32>
      tpu.vector_store %arg32[%c0_99, %c0_100], %203 {strides = array<i32>} : memref<128x64xf32, #tpu.memory_space<vmem>>, vector<128x64xf32>,
    } else {
    }
    %c0 = arith.constant 0 : index
    %c0_1 = arith.constant 0 : index
    %3 = vector.load %arg31[%c0, %c0_1] : memref<16x128xf32, #tpu.memory_space<vmem>>, vector<16x128xf32>
    %cst = arith.constant 0.000000e+00 : f32
    %4 = vector.broadcast %cst : f32 to vector<16x128xf32>
    %5 = arith.maximumf %3, %4 : vector<16x128xf32>
    %6 = math.absf %3 : vector<16x128xf32>
    %cst_2 = arith.constant 0.000000e+00 : f32
    %7 = vector.broadcast %cst_2 : f32 to vector<16x128xf32>
    %8 = arith.subf %7, %6 : vector<16x128xf32>
    %9 = math.exp %8 : vector<16x128xf32>
    %10 = math.log1p %9 : vector<16x128xf32>
    %11 = arith.addf %5, %10 : vector<16x128xf32>
    %cst_3 = arith.constant 0.693147182 : f32
    %12 = vector.broadcast %cst_3 : f32 to vector<16x128xf32>
    %13 = arith.subf %11, %12 : vector<16x128xf32>
    %c0_4 = arith.constant 0 : index
    %c0_5 = arith.constant 0 : index
    %c0_6 = arith.constant 0 : index
    %14 = vector.load %arg8[%c0_4, %c0_5, %c0_6] : memref<1x128x256xbf16, #tpu.memory_space<vmem>>, vector<1x128x256xbf16>
    %15 = vector.shape_cast %14 : vector<1x128x256xbf16> to vector<128x256xbf16>
    %16 = arith.truncf %13 : vector<16x128xf32> to vector<16x128xbf16>
    %cst_7 = arith.constant dense<0.000000e+00> : vector<16x256xf32>
    %17 = tpu.matmul %16, %15, %cst_7 {dimension_numbers = #tpu.dot_dimension_numbers<[1], [0], [0], [1], [0, 0, 1, 1], [], []>} : vector<16x128xbf16>, vector<128x256xbf16>, vector<16x256xf32> -> vector<16x256xf32>
    %c0_8 = arith.constant 0 : index
    %c0_9 = arith.constant 0 : index
    %c0_10 = arith.constant 0 : index
    %18 = vector.load %arg9[%c0_8, %c0_9, %c0_10] : memref<1x1x256xf32, #tpu.memory_space<vmem>>, vector<1x1x256xf32>
    %19 = vector.shape_cast %18 : vector<1x1x256xf32> to vector<1x256xf32>
    %20 = vector.broadcast %19 : vector<1x256xf32> to vector<16x256xf32>
    %21 = arith.addf %17, %20 : vector<16x256xf32>
    %cst_11 = arith.constant 0.000000e+00 : f32
    %22 = vector.broadcast %cst_11 : f32 to vector<16x256xf32>
    %23 = arith.maximumf %21, %22 : vector<16x256xf32>
    %24 = math.absf %21 : vector<16x256xf32>
    %cst_12 = arith.constant 0.000000e+00 : f32
    %25 = vector.broadcast %cst_12 : f32 to vector<16x256xf32>
    %26 = arith.subf %25, %24 : vector<16x256xf32>
    %27 = math.exp %26 : vector<16x256xf32>
    %28 = math.log1p %27 : vector<16x256xf32>
    %29 = arith.addf %23, %28 : vector<16x256xf32>
    %cst_13 = arith.constant 0.693147182 : f32
    %30 = vector.broadcast %cst_13 : f32 to vector<16x256xf32>
    %31 = arith.subf %29, %30 : vector<16x256xf32>
    %32 = vector.extract_strided_slice %31 {offsets = [0, 0], sizes = [16, 128], strides = [1, 1]} : vector<16x256xf32> to vector<16x128xf32>
    %33 = vector.extract_strided_slice %31 {offsets = [0, 128], sizes = [16, 128], strides = [1, 1]} : vector<16x256xf32> to vector<16x128xf32>
    %34 = arith.truncf %33 : vector<16x128xf32> to vector<16x128xbf16>
    %c0_14 = arith.constant 0 : index
    %c0_15 = arith.constant 0 : index
    %c0_16 = arith.constant 0 : index
    %35 = vector.load %arg7[%c0_14, %c0_15, %c0_16] : memref<1x64x128xbf16, #tpu.memory_space<vmem>>, vector<1x64x128xbf16>
    %36 = vector.shape_cast %35 : vector<1x64x128xbf16> to vector<64x128xbf16>
    %c0_17 = arith.constant 0 : index
    %c0_18 = arith.constant 0 : index
    %37 = vector.load %arg2[%c0_17, %c0_18] : memref<128x1xi32, #tpu.memory_space<vmem>>, vector<128x1xi32>
    %c0_19 = arith.constant 0 : index
    %c0_20 = arith.constant 0 : index
    %38 = vector.load %arg3[%c0_19, %c0_20] : memref<1x128xi32, #tpu.memory_space<vmem>>, vector<1x128xi32>
    %39 = tpu.iota {dimensions = array<i32: 1>} : vector<128x16xi32>
    %40 = vector.broadcast %37 : vector<128x1xi32> to vector<128x16xi32>
    %41 = arith.cmpi eq, %39, %40 : vector<128x16xi32>
    %42 = arith.extui %41 : vector<128x16xi1> to vector<128x16xi32>
    %43 = arith.sitofp %42 : vector<128x16xi32> to vector<128x16xf32>
    %44 = arith.truncf %43 : vector<128x16xf32> to vector<128x16xbf16>
    %45 = tpu.iota {dimensions = array<i32: 0>} : vector<16x128xi32>
    %46 = vector.broadcast %38 : vector<1x128xi32> to vector<16x128xi32>
    %47 = arith.cmpi eq, %45, %46 : vector<16x128xi32>
    %48 = arith.extui %47 : vector<16x128xi1> to vector<16x128xi32>
    %49 = arith.sitofp %48 : vector<16x128xi32> to vector<16x128xf32>
    %50 = arith.truncf %49 : vector<16x128xf32> to vector<16x128xbf16>
    %c0_21 = arith.constant 0 : index
    %c0_22 = arith.constant 0 : index
    %51 = vector.load %arg32[%c0_21, %c0_22] : memref<128x64xf32, #tpu.memory_space<vmem>>, vector<128x64xf32>
    %52 = arith.truncf %51 : vector<128x64xf32> to vector<128x64xbf16>
    %cst_23 = arith.constant dense<0.000000e+00> : vector<128x128xf32>
    %53 = tpu.matmul %52, %36, %cst_23 {dimension_numbers = #tpu.dot_dimension_numbers<[1], [0], [0], [1], [0, 0, 1, 1], [], []>} : vector<128x64xbf16>, vector<64x128xbf16>, vector<128x128xf32> -> vector<128x128xf32>
    %cst_24 = arith.constant dense<0.000000e+00> : vector<128x128xf32>
    %54 = tpu.matmul %44, %34, %cst_24 {dimension_numbers = #tpu.dot_dimension_numbers<[1], [0], [0], [1], [0, 0, 1, 1], [], []>} : vector<128x16xbf16>, vector<16x128xbf16>, vector<128x128xf32> -> vector<128x128xf32>
    %55 = arith.mulf %53, %54 : vector<128x128xf32>
    %56 = arith.truncf %55 : vector<128x128xf32> to vector<128x128xbf16>
    %cst_25 = arith.constant dense<0.000000e+00> : vector<16x128xf32>
    %57 = tpu.matmul %50, %56, %cst_25 {dimension_numbers = #tpu.dot_dimension_numbers<[1], [0], [0], [1], [0, 0, 1, 1], [], []>} : vector<16x128xbf16>, vector<128x128xbf16>, vector<16x128xf32> -> vector<16x128xf32>
    %58 = arith.addf %32, %57 : vector<16x128xf32>
    %c0_i32_26 = arith.constant 0 : i32
    %cst_27 = arith.constant 0.000000e+00 : f32
    %59 = vector.broadcast %cst_27 : f32 to vector<16x128xf32>
    %60 = arith.maximumf %58, %59 : vector<16x128xf32>
    %61 = math.absf %58 : vector<16x128xf32>
    %cst_28 = arith.constant 0.000000e+00 : f32
    %62 = vector.broadcast %cst_28 : f32 to vector<16x128xf32>
    %63 = arith.subf %62, %61 : vector<16x128xf32>
    %64 = math.exp %63 : vector<16x128xf32>
    %65 = math.log1p %64 : vector<16x128xf32>
    %66 = arith.addf %60, %65 : vector<16x128xf32>
    %cst_29 = arith.constant 0.693147182 : f32
    %67 = vector.broadcast %cst_29 : f32 to vector<16x128xf32>
    %68 = arith.subf %66, %67 : vector<16x128xf32>
    %c0_30 = arith.constant 0 : index
    %69 = arith.index_cast %c0_i32_26 : i32 to index
    %c0_31 = arith.constant 0 : index
    %c0_32 = arith.constant 0 : index
    %70 = vector.load %arg10[%c0_30, %69, %c0_31, %c0_32] : memref<1x1x128x128xbf16, #tpu.memory_space<vmem>>, vector<1x1x128x128xbf16>
    %71 = vector.shape_cast %70 : vector<1x1x128x128xbf16> to vector<128x128xbf16>
    %72 = arith.truncf %68 : vector<16x128xf32> to vector<16x128xbf16>
    %cst_33 = arith.constant dense<0.000000e+00> : vector<16x128xf32>
    %73 = tpu.matmul %72, %71, %cst_33 {dimension_numbers = #tpu.dot_dimension_numbers<[1], [0], [0], [1], [0, 0, 1, 1], [], []>} : vector<16x128xbf16>, vector<128x128xbf16>, vector<16x128xf32> -> vector<16x128xf32>
    %c0_34 = arith.constant 0 : index
    %74 = arith.index_cast %c0_i32_26 : i32 to index
    %c0_35 = arith.constant 0 : index
    %c0_36 = arith.constant 0 : index
    %75 = vector.load %arg11[%c0_34, %74, %c0_35, %c0_36] : memref<1x1x1x128xf32, #tpu.memory_space<vmem>>, vector<1x1x1x128xf32>
    %76 = vector.shape_cast %75 : vector<1x1x1x128xf32> to vector<1x128xf32>
    %77 = vector.broadcast %76 : vector<1x128xf32> to vector<16x128xf32>
    %78 = arith.addf %73, %77 : vector<16x128xf32>
    %cst_37 = arith.constant 0.000000e+00 : f32
    %79 = vector.broadcast %cst_37 : f32 to vector<16x128xf32>
    %80 = arith.maximumf %78, %79 : vector<16x128xf32>
    %81 = math.absf %78 : vector<16x128xf32>
    %cst_38 = arith.constant 0.000000e+00 : f32
    %82 = vector.broadcast %cst_38 : f32 to vector<16x128xf32>
    %83 = arith.subf %82, %81 : vector<16x128xf32>
    %84 = math.exp %83 : vector<16x128xf32>
    %85 = math.log1p %84 : vector<16x128xf32>
    %86 = arith.addf %80, %85 : vector<16x128xf32>
    %cst_39 = arith.constant 0.693147182 : f32
    %87 = vector.broadcast %cst_39 : f32 to vector<16x128xf32>
    %88 = arith.subf %86, %87 : vector<16x128xf32>
    %c0_40 = arith.constant 0 : index
    %89 = arith.index_cast %c0_i32_26 : i32 to index
    %c0_41 = arith.constant 0 : index
    %c0_42 = arith.constant 0 : index
    %90 = vector.load %arg12[%c0_40, %89, %c0_41, %c0_42] : memref<1x1x128x128xbf16, #tpu.memory_space<vmem>>, vector<1x1x128x128xbf16>
    %91 = vector.shape_cast %90 : vector<1x1x128x128xbf16> to vector<128x128xbf16>
    %92 = arith.truncf %88 : vector<16x128xf32> to vector<16x128xbf16>
    %cst_43 = arith.constant dense<0.000000e+00> : vector<16x128xf32>
    %93 = tpu.matmul %92, %91, %cst_43 {dimension_numbers = #tpu.dot_dimension_numbers<[1], [0], [0], [1], [0, 0, 1, 1], [], []>} : vector<16x128xbf16>, vector<128x128xbf16>, vector<16x128xf32> -> vector<16x128xf32>
    %c0_44 = arith.constant 0 : index
    %94 = arith.index_cast %c0_i32_26 : i32 to index
    %c0_45 = arith.constant 0 : index
    %c0_46 = arith.constant 0 : index
    %95 = vector.load %arg13[%c0_44, %94, %c0_45, %c0_46] : memref<1x1x1x128xf32, #tpu.memory_space<vmem>>, vector<1x1x1x128xf32>
    %96 = vector.shape_cast %95 : vector<1x1x1x128xf32> to vector<1x128xf32>
    %97 = vector.broadcast %96 : vector<1x128xf32> to vector<16x128xf32>
    %98 = arith.addf %93, %97 : vector<16x128xf32>
    %99 = arith.addf %58, %98 : vector<16x128xf32>
    %c1_i32 = arith.constant 1 : i32
    %cst_47 = arith.constant 0.000000e+00 : f32
    %100 = vector.broadcast %cst_47 : f32 to vector<16x128xf32>
    %101 = arith.maximumf %99, %100 : vector<16x128xf32>
    %102 = math.absf %99 : vector<16x128xf32>
    %cst_48 = arith.constant 0.000000e+00 : f32
    %103 = vector.broadcast %cst_48 : f32 to vector<16x128xf32>
    %104 = arith.subf %103, %102 : vector<16x128xf32>
    %105 = math.exp %104 : vector<16x128xf32>
    %106 = math.log1p %105 : vector<16x128xf32>
    %107 = arith.addf %101, %106 : vector<16x128xf32>
    %cst_49 = arith.constant 0.693147182 : f32
    %108 = vector.broadcast %cst_49 : f32 to vector<16x128xf32>
    %109 = arith.subf %107, %108 : vector<16x128xf32>
    %c0_50 = arith.constant 0 : index
    %c0_51 = arith.constant 0 : index
    %c0_52 = arith.constant 0 : index
    %110 = vector.load %arg14[%c0_50, %c0_51, %c0_52] : memref<1x128x128xbf16, #tpu.memory_space<vmem>>, vector<1x128x128xbf16>
    %111 = vector.shape_cast %110 : vector<1x128x128xbf16> to vector<128x128xbf16>
    %112 = arith.truncf %109 : vector<16x128xf32> to vector<16x128xbf16>
    %cst_53 = arith.constant dense<0.000000e+00> : vector<16x128xf32>
    %113 = tpu.matmul %112, %111, %cst_53 {dimension_numbers = #tpu.dot_dimension_numbers<[1], [0], [0], [1], [0, 0, 1, 1], [], []>} : vector<16x128xbf16>, vector<128x128xbf16>, vector<16x128xf32> -> vector<16x128xf32>
    %c0_54 = arith.constant 0 : index
    %c0_55 = arith.constant 0 : index
    %c0_56 = arith.constant 0 : index
    %114 = vector.load %arg15[%c0_54, %c0_55, %c0_56] : memref<1x1x128xf32, #tpu.memory_space<vmem>>, vector<1x1x128xf32>
    %115 = vector.shape_cast %114 : vector<1x1x128xf32> to vector<1x128xf32>
    %116 = vector.broadcast %115 : vector<1x128xf32> to vector<16x128xf32>
    %117 = arith.addf %113, %116 : vector<16x128xf32>
    %c0_57 = arith.constant 0 : index
    %c0_58 = arith.constant 0 : index
    %c0_59 = arith.constant 0 : index
    %118 = vector.load %arg16[%c0_57, %c0_58, %c0_59] : memref<1x1x128xf32, #tpu.memory_space<vmem>>, vector<1x1x128xf32>
    %119 = vector.shape_cast %118 : vector<1x1x128xf32> to vector<1x128xf32>
    %120 = vector.broadcast %119 : vector<1x128xf32> to vector<16x128xf32>
    %121 = arith.mulf %120, %3 : vector<16x128xf32>
    %122 = arith.addf %121, %117 : vector<16x128xf32>
    %c0_i32_60 = arith.constant 0 : i32
    %cst_61 = arith.constant 0.000000e+00 : f32
    %123 = vector.broadcast %cst_61 : f32 to vector<16x128xf32>
    %124 = arith.maximumf %122, %123 : vector<16x128xf32>
    %125 = math.absf %122 : vector<16x128xf32>
    %cst_62 = arith.constant 0.000000e+00 : f32
    %126 = vector.broadcast %cst_62 : f32 to vector<16x128xf32>
    %127 = arith.subf %126, %125 : vector<16x128xf32>
    %128 = math.exp %127 : vector<16x128xf32>
    %129 = math.log1p %128 : vector<16x128xf32>
    %130 = arith.addf %124, %129 : vector<16x128xf32>
    %cst_63 = arith.constant 0.693147182 : f32
    %131 = vector.broadcast %cst_63 : f32 to vector<16x128xf32>
    %132 = arith.subf %130, %131 : vector<16x128xf32>
    %c0_64 = arith.constant 0 : index
    %133 = arith.index_cast %c0_i32_60 : i32 to index
    %c0_65 = arith.constant 0 : index
    %c0_66 = arith.constant 0 : index
    %134 = vector.load %arg17[%c0_64, %133, %c0_65, %c0_66] : memref<1x1x128x128xbf16, #tpu.memory_space<vmem>>, vector<1x1x128x128xbf16>
    %135 = vector.shape_cast %134 : vector<1x1x128x128xbf16> to vector<128x128xbf16>
    %136 = arith.truncf %132 : vector<16x128xf32> to vector<16x128xbf16>
    %cst_67 = arith.constant dense<0.000000e+00> : vector<16x128xf32>
    %137 = tpu.matmul %136, %135, %cst_67 {dimension_numbers = #tpu.dot_dimension_numbers<[1], [0], [0], [1], [0, 0, 1, 1], [], []>} : vector<16x128xbf16>, vector<128x128xbf16>, vector<16x128xf32> -> vector<16x128xf32>
    %c0_68 = arith.constant 0 : index
    %138 = arith.index_cast %c0_i32_60 : i32 to index
    %c0_69 = arith.constant 0 : index
    %c0_70 = arith.constant 0 : index
    %139 = vector.load %arg18[%c0_68, %138, %c0_69, %c0_70] : memref<1x1x1x128xf32, #tpu.memory_space<vmem>>, vector<1x1x1x128xf32>
    %140 = vector.shape_cast %139 : vector<1x1x1x128xf32> to vector<1x128xf32>
    %141 = vector.broadcast %140 : vector<1x128xf32> to vector<16x128xf32>
    %142 = arith.addf %137, %141 : vector<16x128xf32>
    %cst_71 = arith.constant 0.000000e+00 : f32
    %143 = vector.broadcast %cst_71 : f32 to vector<16x128xf32>
    %144 = arith.maximumf %142, %143 : vector<16x128xf32>
    %145 = math.absf %142 : vector<16x128xf32>
    %cst_72 = arith.constant 0.000000e+00 : f32
    %146 = vector.broadcast %cst_72 : f32 to vector<16x128xf32>
    %147 = arith.subf %146, %145 : vector<16x128xf32>
    %148 = math.exp %147 : vector<16x128xf32>
    %149 = math.log1p %148 : vector<16x128xf32>
    %150 = arith.addf %144, %149 : vector<16x128xf32>
    %cst_73 = arith.constant 0.693147182 : f32
    %151 = vector.broadcast %cst_73 : f32 to vector<16x128xf32>
    %152 = arith.subf %150, %151 : vector<16x128xf32>
    %c0_74 = arith.constant 0 : index
    %153 = arith.index_cast %c0_i32_60 : i32 to index
    %c0_75 = arith.constant 0 : index
    %c0_76 = arith.constant 0 : index
    %154 = vector.load %arg19[%c0_74, %153, %c0_75, %c0_76] : memref<1x1x128x128xbf16, #tpu.memory_space<vmem>>, vector<1x1x128x128xbf16>
    %155 = vector.shape_cast %154 : vector<1x1x128x128xbf16> to vector<128x128xbf16>
    %156 = arith.truncf %152 : vector<16x128xf32> to vector<16x128xbf16>
    %cst_77 = arith.constant dense<0.000000e+00> : vector<16x128xf32>
    %157 = tpu.matmul %156, %155, %cst_77 {dimension_numbers = #tpu.dot_dimension_numbers<[1], [0], [0], [1], [0, 0, 1, 1], [], []>} : vector<16x128xbf16>, vector<128x128xbf16>, vector<16x128xf32> -> vector<16x128xf32>
    %c0_78 = arith.constant 0 : index
    %158 = arith.index_cast %c0_i32_60 : i32 to index
    %c0_79 = arith.constant 0 : index
    %c0_80 = arith.constant 0 : index
    %159 = vector.load %arg20[%c0_78, %158, %c0_79, %c0_80] : memref<1x1x1x128xf32, #tpu.memory_space<vmem>>, vector<1x1x1x128xf32>
    %160 = vector.shape_cast %159 : vector<1x1x1x128xf32> to vector<1x128xf32>
    %161 = vector.broadcast %160 : vector<1x128xf32> to vector<16x128xf32>
    %162 = arith.addf %157, %161 : vector<16x128xf32>
    %163 = arith.addf %122, %162 : vector<16x128xf32>
    %c1_i32_81 = arith.constant 1 : i32
    %c0_82 = arith.constant 0 : index
    %c0_83 = arith.constant 0 : index
    %164 = vector.load %arg31[%c0_82, %c0_83] : memref<16x128xf32, #tpu.memory_space<vmem>>, vector<16x128xf32>
    tpu.vector_store %arg31[%c0_82, %c0_83], %163 {strides = array<i32>} : memref<16x128xf32, #tpu.memory_space<vmem>>, vector<16x128xf32>,
    "tpu.region"() ({
      %alloca = memref.alloca() : memref<1x128x128xbf16, #tpu.memory_space<vmem>>
      %alloca_84 = memref.alloca() : memref<1x1x128xf32, #tpu.memory_space<vmem>>
      %alloca_85 = memref.alloca() : memref<1x128x128xbf16, #tpu.memory_space<vmem>>
      %alloca_86 = memref.alloca() : memref<1x1x128xf32, #tpu.memory_space<vmem>>
      %alloca_87 = memref.alloca() : memref<128x128xbf16, #tpu.memory_space<vmem>>
      %alloca_88 = memref.alloca() : memref<1x128xf32, #tpu.memory_space<vmem>>
      %alloca_89 = memref.alloca() : memref<16x128xf32, #tpu.memory_space<vmem>>
      %alloca_90 = memref.alloca() : memref<16x128xf32, #tpu.memory_space<vmem>>
      %c1_i32_91 = arith.constant 1 : i32
      %165 = arith.cmpi eq, %arg0, %c1_i32_91 : i32
      %166 = arith.extui %165 : i1 to i32
      %c0_i32_92 = arith.constant 0 : i32
      %167 = arith.cmpi ne, %166, %c0_i32_92 : i32
      scf.if %167 {
        "tpu.region"() ({
          %230 = tpu.sem_alloc : memref<!tpu.dma_semaphore, #tpu.memory_space<semaphore_mem>>
          tpu.enqueue_dma source(%arg22 : memref<1x128x128xbf16, #tpu.memory_space<any>>) target(%alloca : memref<1x128x128xbf16, #tpu.memory_space<vmem>>) target_semaphore(%230 : memref<!tpu.dma_semaphore, #tpu.memory_space<semaphore_mem>>)
          tpu.wait_dma2 semaphore(%230 : memref<!tpu.dma_semaphore, #tpu.memory_space<semaphore_mem>>) src(%arg22 : memref<1x128x128xbf16, #tpu.memory_space<any>>) dst(%alloca : memref<1x128x128xbf16, #tpu.memory_space<vmem>>)
          tpu.yield
        }) : () -> ()
        "tpu.region"() ({
          %230 = tpu.sem_alloc : memref<!tpu.dma_semaphore, #tpu.memory_space<semaphore_mem>>
          tpu.enqueue_dma source(%arg23 : memref<1x1x128xf32, #tpu.memory_space<any>>) target(%alloca_84 : memref<1x1x128xf32, #tpu.memory_space<vmem>>) target_semaphore(%230 : memref<!tpu.dma_semaphore, #tpu.memory_space<semaphore_mem>>)
          tpu.wait_dma2 semaphore(%230 : memref<!tpu.dma_semaphore, #tpu.memory_space<semaphore_mem>>) src(%arg23 : memref<1x1x128xf32, #tpu.memory_space<any>>) dst(%alloca_84 : memref<1x1x128xf32, #tpu.memory_space<vmem>>)
          tpu.yield
        }) : () -> ()
        "tpu.region"() ({
          %230 = tpu.sem_alloc : memref<!tpu.dma_semaphore, #tpu.memory_space<semaphore_mem>>
          tpu.enqueue_dma source(%arg24 : memref<1x128x128xbf16, #tpu.memory_space<any>>) target(%alloca_85 : memref<1x128x128xbf16, #tpu.memory_space<vmem>>) target_semaphore(%230 : memref<!tpu.dma_semaphore, #tpu.memory_space<semaphore_mem>>)
          tpu.wait_dma2 semaphore(%230 : memref<!tpu.dma_semaphore, #tpu.memory_space<semaphore_mem>>) src(%arg24 : memref<1x128x128xbf16, #tpu.memory_space<any>>) dst(%alloca_85 : memref<1x128x128xbf16, #tpu.memory_space<vmem>>)
          tpu.yield
        }) : () -> ()
        "tpu.region"() ({
          %230 = tpu.sem_alloc : memref<!tpu.dma_semaphore, #tpu.memory_space<semaphore_mem>>
          tpu.enqueue_dma source(%arg25 : memref<1x1x128xf32, #tpu.memory_space<any>>) target(%alloca_86 : memref<1x1x128xf32, #tpu.memory_space<vmem>>) target_semaphore(%230 : memref<!tpu.dma_semaphore, #tpu.memory_space<semaphore_mem>>)
          tpu.wait_dma2 semaphore(%230 : memref<!tpu.dma_semaphore, #tpu.memory_space<semaphore_mem>>) src(%arg25 : memref<1x1x128xf32, #tpu.memory_space<any>>) dst(%alloca_86 : memref<1x1x128xf32, #tpu.memory_space<vmem>>)
          tpu.yield
        }) : () -> ()
        "tpu.region"() ({
          %230 = tpu.sem_alloc : memref<!tpu.dma_semaphore, #tpu.memory_space<semaphore_mem>>
          tpu.enqueue_dma source(%arg26 : memref<128x128xbf16, #tpu.memory_space<any>>) target(%alloca_87 : memref<128x128xbf16, #tpu.memory_space<vmem>>) target_semaphore(%230 : memref<!tpu.dma_semaphore, #tpu.memory_space<semaphore_mem>>)
          tpu.wait_dma2 semaphore(%230 : memref<!tpu.dma_semaphore, #tpu.memory_space<semaphore_mem>>) src(%arg26 : memref<128x128xbf16, #tpu.memory_space<any>>) dst(%alloca_87 : memref<128x128xbf16, #tpu.memory_space<vmem>>)
          tpu.yield
        }) : () -> ()
        "tpu.region"() ({
          %230 = tpu.sem_alloc : memref<!tpu.dma_semaphore, #tpu.memory_space<semaphore_mem>>
          tpu.enqueue_dma source(%arg27 : memref<1x128xf32, #tpu.memory_space<any>>) target(%alloca_88 : memref<1x128xf32, #tpu.memory_space<vmem>>) target_semaphore(%230 : memref<!tpu.dma_semaphore, #tpu.memory_space<semaphore_mem>>)
          tpu.wait_dma2 semaphore(%230 : memref<!tpu.dma_semaphore, #tpu.memory_space<semaphore_mem>>) src(%arg27 : memref<1x128xf32, #tpu.memory_space<any>>) dst(%alloca_88 : memref<1x128xf32, #tpu.memory_space<vmem>>)
          tpu.yield
        }) : () -> ()
        "tpu.region"() ({
          %230 = tpu.sem_alloc : memref<!tpu.dma_semaphore, #tpu.memory_space<semaphore_mem>>
          tpu.enqueue_dma source(%arg28 : memref<16x128xf32, #tpu.memory_space<any>>) target(%alloca_89 : memref<16x128xf32, #tpu.memory_space<vmem>>) target_semaphore(%230 : memref<!tpu.dma_semaphore, #tpu.memory_space<semaphore_mem>>)
          tpu.wait_dma2 semaphore(%230 : memref<!tpu.dma_semaphore, #tpu.memory_space<semaphore_mem>>) src(%arg28 : memref<16x128xf32, #tpu.memory_space<any>>) dst(%alloca_89 : memref<16x128xf32, #tpu.memory_space<vmem>>)
          tpu.yield
        }) : () -> ()
        "tpu.region"() ({
          %230 = tpu.sem_alloc : memref<!tpu.dma_semaphore, #tpu.memory_space<semaphore_mem>>
          tpu.enqueue_dma source(%arg29 : memref<16x128xf32, #tpu.memory_space<any>>) target(%alloca_90 : memref<16x128xf32, #tpu.memory_space<vmem>>) target_semaphore(%230 : memref<!tpu.dma_semaphore, #tpu.memory_space<semaphore_mem>>)
          tpu.wait_dma2 semaphore(%230 : memref<!tpu.dma_semaphore, #tpu.memory_space<semaphore_mem>>) src(%arg29 : memref<16x128xf32, #tpu.memory_space<any>>) dst(%alloca_90 : memref<16x128xf32, #tpu.memory_space<vmem>>)
          tpu.yield
        }) : () -> ()
        %c0_i32_93 = arith.constant 0 : i32
        %cst_94 = arith.constant 0.000000e+00 : f32
        %168 = vector.broadcast %cst_94 : f32 to vector<16x128xf32>
        %169 = arith.maximumf %163, %168 : vector<16x128xf32>
        %170 = math.absf %163 : vector<16x128xf32>
        %cst_95 = arith.constant 0.000000e+00 : f32
        %171 = vector.broadcast %cst_95 : f32 to vector<16x128xf32>
        %172 = arith.subf %171, %170 : vector<16x128xf32>
        %173 = math.exp %172 : vector<16x128xf32>
        %174 = math.log1p %173 : vector<16x128xf32>
        %175 = arith.addf %169, %174 : vector<16x128xf32>
        %cst_96 = arith.constant 0.693147182 : f32
        %176 = vector.broadcast %cst_96 : f32 to vector<16x128xf32>
        %177 = arith.subf %175, %176 : vector<16x128xf32>
        %178 = arith.index_cast %c0_i32_93 : i32 to index
        %c0_97 = arith.constant 0 : index
        %c0_98 = arith.constant 0 : index
        %179 = vector.load %alloca[%178, %c0_97, %c0_98] : memref<1x128x128xbf16, #tpu.memory_space<vmem>>, vector<1x128x128xbf16>
        %180 = vector.shape_cast %179 : vector<1x128x128xbf16> to vector<128x128xbf16>
        %181 = arith.truncf %177 : vector<16x128xf32> to vector<16x128xbf16>
        %cst_99 = arith.constant dense<0.000000e+00> : vector<16x128xf32>
        %182 = tpu.matmul %181, %180, %cst_99 {dimension_numbers = #tpu.dot_dimension_numbers<[1], [0], [0], [1], [0, 0, 1, 1], [], []>} : vector<16x128xbf16>, vector<128x128xbf16>, vector<16x128xf32> -> vector<16x128xf32>
        %183 = arith.index_cast %c0_i32_93 : i32 to index
        %c0_100 = arith.constant 0 : index
        %c0_101 = arith.constant 0 : index
        %184 = vector.load %alloca_84[%183, %c0_100, %c0_101] : memref<1x1x128xf32, #tpu.memory_space<vmem>>, vector<1x1x128xf32>
        %185 = vector.shape_cast %184 : vector<1x1x128xf32> to vector<1x128xf32>
        %186 = vector.broadcast %185 : vector<1x128xf32> to vector<16x128xf32>
        %187 = arith.addf %182, %186 : vector<16x128xf32>
        %cst_102 = arith.constant 0.000000e+00 : f32
        %188 = vector.broadcast %cst_102 : f32 to vector<16x128xf32>
        %189 = arith.maximumf %187, %188 : vector<16x128xf32>
        %190 = math.absf %187 : vector<16x128xf32>
        %cst_103 = arith.constant 0.000000e+00 : f32
        %191 = vector.broadcast %cst_103 : f32 to vector<16x128xf32>
        %192 = arith.subf %191, %190 : vector<16x128xf32>
        %193 = math.exp %192 : vector<16x128xf32>
        %194 = math.log1p %193 : vector<16x128xf32>
        %195 = arith.addf %189, %194 : vector<16x128xf32>
        %cst_104 = arith.constant 0.693147182 : f32
        %196 = vector.broadcast %cst_104 : f32 to vector<16x128xf32>
        %197 = arith.subf %195, %196 : vector<16x128xf32>
        %198 = arith.index_cast %c0_i32_93 : i32 to index
        %c0_105 = arith.constant 0 : index
        %c0_106 = arith.constant 0 : index
        %199 = vector.load %alloca_85[%198, %c0_105, %c0_106] : memref<1x128x128xbf16, #tpu.memory_space<vmem>>, vector<1x128x128xbf16>
        %200 = vector.shape_cast %199 : vector<1x128x128xbf16> to vector<128x128xbf16>
        %201 = arith.truncf %197 : vector<16x128xf32> to vector<16x128xbf16>
        %cst_107 = arith.constant dense<0.000000e+00> : vector<16x128xf32>
        %202 = tpu.matmul %201, %200, %cst_107 {dimension_numbers = #tpu.dot_dimension_numbers<[1], [0], [0], [1], [0, 0, 1, 1], [], []>} : vector<16x128xbf16>, vector<128x128xbf16>, vector<16x128xf32> -> vector<16x128xf32>
        %203 = arith.index_cast %c0_i32_93 : i32 to index
        %c0_108 = arith.constant 0 : index
        %c0_109 = arith.constant 0 : index
        %204 = vector.load %alloca_86[%203, %c0_108, %c0_109] : memref<1x1x128xf32, #tpu.memory_space<vmem>>, vector<1x1x128xf32>
        %205 = vector.shape_cast %204 : vector<1x1x128xf32> to vector<1x128xf32>
        %206 = vector.broadcast %205 : vector<1x128xf32> to vector<16x128xf32>
        %207 = arith.addf %202, %206 : vector<16x128xf32>
        %208 = arith.addf %163, %207 : vector<16x128xf32>
        %c1_i32_110 = arith.constant 1 : i32
        %cst_111 = arith.constant 0.000000e+00 : f32
        %209 = vector.broadcast %cst_111 : f32 to vector<16x128xf32>
        %210 = arith.maximumf %208, %209 : vector<16x128xf32>
        %211 = math.absf %208 : vector<16x128xf32>
        %cst_112 = arith.constant 0.000000e+00 : f32
        %212 = vector.broadcast %cst_112 : f32 to vector<16x128xf32>
        %213 = arith.subf %212, %211 : vector<16x128xf32>
        %214 = math.exp %213 : vector<16x128xf32>
        %215 = math.log1p %214 : vector<16x128xf32>
        %216 = arith.addf %210, %215 : vector<16x128xf32>
        %cst_113 = arith.constant 0.693147182 : f32
        %217 = vector.broadcast %cst_113 : f32 to vector<16x128xf32>
        %218 = arith.subf %216, %217 : vector<16x128xf32>
        %c0_114 = arith.constant 0 : index
        %c0_115 = arith.constant 0 : index
        %219 = vector.load %alloca_87[%c0_114, %c0_115] : memref<128x128xbf16, #tpu.memory_space<vmem>>, vector<128x128xbf16>
        %220 = arith.truncf %218 : vector<16x128xf32> to vector<16x128xbf16>
        %cst_116 = arith.constant dense<0.000000e+00> : vector<16x128xf32>
        %221 = tpu.matmul %220, %219, %cst_116 {dimension_numbers = #tpu.dot_dimension_numbers<[1], [0], [0], [1], [0, 0, 1, 1], [], []>} : vector<16x128xbf16>, vector<128x128xbf16>, vector<16x128xf32> -> vector<16x128xf32>
        %c0_117 = arith.constant 0 : index
        %c0_118 = arith.constant 0 : index
        %222 = vector.load %alloca_88[%c0_117, %c0_118] : memref<1x128xf32, #tpu.memory_space<vmem>>, vector<1x128xf32>
        %223 = vector.broadcast %222 : vector<1x128xf32> to vector<16x128xf32>
        %224 = arith.addf %221, %223 : vector<16x128xf32>
        %c0_119 = arith.constant 0 : index
        %c0_120 = arith.constant 0 : index
        %225 = vector.load %alloca_89[%c0_119, %c0_120] : memref<16x128xf32, #tpu.memory_space<vmem>>, vector<16x128xf32>
        %226 = arith.mulf %225, %224 : vector<16x128xf32>
        %c0_121 = arith.constant 0 : index
        %c0_122 = arith.constant 0 : index
        %227 = vector.load %alloca_90[%c0_121, %c0_122] : memref<16x128xf32, #tpu.memory_space<vmem>>, vector<16x128xf32>
        %228 = arith.addf %226, %227 : vector<16x128xf32>
        %c0_123 = arith.constant 0 : index
        %c0_124 = arith.constant 0 : index
        %229 = vector.load %arg30[%c0_123, %c0_124] : memref<16x128xf32, #tpu.memory_space<vmem>>, vector<16x128xf32>
        tpu.vector_store %arg30[%c0_123, %c0_124], %228 {strides = array<i32>} : memref<16x128xf32, #tpu.memory_space<vmem>>, vector<16x128xf32>,
      } else {
      }
      tpu.yield
    }) : () -> ()
    return
  }
  func.func @transform_0(%arg0: i32) -> (i32, i32) {
    %c0_i32 = arith.constant 0 : i32
    %c0_i32_0 = arith.constant 0 : i32
    %c0_i32_1 = arith.constant 0 : i32
    return %c0_i32, %c0_i32_0 : i32, i32
  }
  func.func @transform_1(%arg0: i32) -> (i32, i32) {
    %c0_i32 = arith.constant 0 : i32
    %c0_i32_0 = arith.constant 0 : i32
    %c0_i32_1 = arith.constant 0 : i32
    return %c0_i32, %c0_i32_0 : i32, i32
  }
  func.func @transform_2(%arg0: i32) -> (i32, i32) {
    %c0_i32 = arith.constant 0 : i32
    %c0_i32_0 = arith.constant 0 : i32
    %c0_i32_1 = arith.constant 0 : i32
    return %c0_i32, %c0_i32_0 : i32, i32
  }
  func.func @transform_3(%arg0: i32) -> (i32, i32) {
    %c0_i32 = arith.constant 0 : i32
    %c0_i32_0 = arith.constant 0 : i32
    %c0_i32_1 = arith.constant 0 : i32
    return %c0_i32, %c0_i32_0 : i32, i32
  }
  func.func @transform_4(%arg0: i32) -> (i32, i32) {
    %c0_i32 = arith.constant 0 : i32
    %c0_i32_0 = arith.constant 0 : i32
    %c0_i32_1 = arith.constant 0 : i32
    return %c0_i32, %c0_i32_0 : i32, i32
  }
  func.func @transform_5(%arg0: i32) -> (i32, i32) {
    %c0_i32 = arith.constant 0 : i32
    %c0_i32_0 = arith.constant 0 : i32
    %c0_i32_1 = arith.constant 0 : i32
    return %c0_i32, %c0_i32_0 : i32, i32
  }
  func.func @transform_6(%arg0: i32) -> (i32, i32, i32) {
    %c0_i32 = arith.constant 0 : i32
    %c0_i32_0 = arith.constant 0 : i32
    %c0_i32_1 = arith.constant 0 : i32
    return %arg0, %c0_i32, %c0_i32_0 : i32, i32, i32
  }
  func.func @transform_7(%arg0: i32) -> (i32, i32, i32) {
    %c0_i32 = arith.constant 0 : i32
    %c0_i32_0 = arith.constant 0 : i32
    %c0_i32_1 = arith.constant 0 : i32
    return %arg0, %c0_i32, %c0_i32_0 : i32, i32, i32
  }
  func.func @transform_8(%arg0: i32) -> (i32, i32, i32) {
    %c0_i32 = arith.constant 0 : i32
    %c0_i32_0 = arith.constant 0 : i32
    %c0_i32_1 = arith.constant 0 : i32
    return %arg0, %c0_i32, %c0_i32_0 : i32, i32, i32
  }
  func.func @transform_9(%arg0: i32) -> (i32, i32, i32, i32) {
    %c0_i32 = arith.constant 0 : i32
    %c0_i32_0 = arith.constant 0 : i32
    %c0_i32_1 = arith.constant 0 : i32
    %c0_i32_2 = arith.constant 0 : i32
    return %arg0, %c0_i32, %c0_i32_0, %c0_i32_1 : i32, i32, i32, i32
  }
  func.func @transform_10(%arg0: i32) -> (i32, i32, i32, i32) {
    %c0_i32 = arith.constant 0 : i32
    %c0_i32_0 = arith.constant 0 : i32
    %c0_i32_1 = arith.constant 0 : i32
    %c0_i32_2 = arith.constant 0 : i32
    return %arg0, %c0_i32, %c0_i32_0, %c0_i32_1 : i32, i32, i32, i32
  }
  func.func @transform_11(%arg0: i32) -> (i32, i32, i32, i32) {
    %c0_i32 = arith.constant 0 : i32
    %c0_i32_0 = arith.constant 0 : i32
    %c0_i32_1 = arith.constant 0 : i32
    %c0_i32_2 = arith.constant 0 : i32
    return %arg0, %c0_i32, %c0_i32_0, %c0_i32_1 : i32, i32, i32, i32
  }
  func.func @transform_12(%arg0: i32) -> (i32, i32, i32, i32) {
    %c0_i32 = arith.constant 0 : i32
    %c0_i32_0 = arith.constant 0 : i32
    %c0_i32_1 = arith.constant 0 : i32
    %c0_i32_2 = arith.constant 0 : i32
    return %arg0, %c0_i32, %c0_i32_0, %c0_i32_1 : i32, i32, i32, i32
  }
  func.func @transform_13(%arg0: i32) -> (i32, i32, i32) {
    %c0_i32 = arith.constant 0 : i32
    %c0_i32_0 = arith.constant 0 : i32
    %c0_i32_1 = arith.constant 0 : i32
    return %arg0, %c0_i32, %c0_i32_0 : i32, i32, i32
  }
  func.func @transform_14(%arg0: i32) -> (i32, i32, i32) {
    %c0_i32 = arith.constant 0 : i32
    %c0_i32_0 = arith.constant 0 : i32
    %c0_i32_1 = arith.constant 0 : i32
    return %arg0, %c0_i32, %c0_i32_0 : i32, i32, i32
  }
  func.func @transform_15(%arg0: i32) -> (i32, i32, i32) {
    %c0_i32 = arith.constant 0 : i32
    %c0_i32_0 = arith.constant 0 : i32
    %c0_i32_1 = arith.constant 0 : i32
    return %arg0, %c0_i32, %c0_i32_0 : i32, i32, i32
  }
  func.func @transform_16(%arg0: i32) -> (i32, i32, i32, i32) {
    %c0_i32 = arith.constant 0 : i32
    %c0_i32_0 = arith.constant 0 : i32
    %c0_i32_1 = arith.constant 0 : i32
    %c0_i32_2 = arith.constant 0 : i32
    return %arg0, %c0_i32, %c0_i32_0, %c0_i32_1 : i32, i32, i32, i32
  }
  func.func @transform_17(%arg0: i32) -> (i32, i32, i32, i32) {
    %c0_i32 = arith.constant 0 : i32
    %c0_i32_0 = arith.constant 0 : i32
    %c0_i32_1 = arith.constant 0 : i32
    %c0_i32_2 = arith.constant 0 : i32
    return %arg0, %c0_i32, %c0_i32_0, %c0_i32_1 : i32, i32, i32, i32
  }
  func.func @transform_18(%arg0: i32) -> (i32, i32, i32, i32) {
    %c0_i32 = arith.constant 0 : i32
    %c0_i32_0 = arith.constant 0 : i32
    %c0_i32_1 = arith.constant 0 : i32
    %c0_i32_2 = arith.constant 0 : i32
    return %arg0, %c0_i32, %c0_i32_0, %c0_i32_1 : i32, i32, i32, i32
  }
  func.func @transform_19(%arg0: i32) -> (i32, i32, i32, i32) {
    %c0_i32 = arith.constant 0 : i32
    %c0_i32_0 = arith.constant 0 : i32
    %c0_i32_1 = arith.constant 0 : i32
    %c0_i32_2 = arith.constant 0 : i32
    return %arg0, %c0_i32, %c0_i32_0, %c0_i32_1 : i32, i32, i32, i32
  }
  func.func @transform_29(%arg0: i32) -> (i32, i32) {
    %c0_i32 = arith.constant 0 : i32
    %c0_i32_0 = arith.constant 0 : i32
    %c0_i32_1 = arith.constant 0 : i32
    return %c0_i32, %c0_i32_0 : i32, i32
  }
}

</mosaic_0001>

<bundles_post_ra>
// kernel: sphysnet_forward.1
= control target key start
LH: loop header
LB: loop body
LE: loop exit
PB: predicated region body
PF: predicated region fallthrough
CT: control target
= control target key end

     0   :  { %s4748_s6 = smov 1   ;;  %s4749_s10 = smov 2   ;;  %s5645_s0 = inlined_call_operand.smem [shape: u32[30], index: -1, kind: input, shape index: {}] }
   0x1   :  { %s4792_s5 = sld [smem:[%s5645_s0]]   ;;  %s4750_s14 = smov 3  }
   0x2   :  { %s4797_s9 = sld [smem:[%s5645_s0 + %s4748_s6]]   ;;  %s4751_s18 = smov 4  }
   0x3   :  { %s4802_s13 = sld [smem:[%s5645_s0 + %s4749_s10]]   ;;  %s4752_s22 = smov 5  }
   0x4   :  { %s4807_s17 = sld [smem:[%s5645_s0 + %s4750_s14]]   ;;  %s4753_s26 = smov 6  }
   0x5   :  { %s4812_s21 = sld [smem:[%s5645_s0 + %s4751_s18]]   ;;  %s4754_s30 = smov 7  }
   0x6   :  { %s3940_s25 = sld [smem:[%s5645_s0 + %s4752_s22]]   ;;  %s4755_s4 = smov 8  }
   0x7   :  { %5656 = sst [smem:[#allocation40_spill]] %s4792_s5  ;;  %s4756_s10 = smov 9  }
   0x8   :  { %5657 = sst [smem:[#allocation41_spill]] %s4797_s9  ;;  %s4757_s15 = smov 10  }
   0x9   :  { %5658 = sst [smem:[#allocation42_spill]] %s4802_s13  ;;  %s4758_s20 = smov 11  }
   0xa   :  { %5659 = sst [smem:[#allocation43_spill]] %s4807_s17  ;;  %s4760_s1 = smov 13  }
   0xb   :  { %5660 = sst [smem:[#allocation44_spill]] %s4812_s21  ;;  %s4761_s7 = smov 14  }
   0xc   :  { %s4820_s29 = sld [smem:[%s5645_s0 + %s4753_s26]]   ;;  %v64_v0 = vstv %s3940_s25  ;;  %s4759_s26 = smov 12  }
   0xd   :  { %s4825_s3 = sld [smem:[%s5645_s0 + %s4754_s30]]   ;;  %65 = vst [vmem:[#allocation4] sm:$0x1] %v64_v0  ;;  %s4762_s25 = smov 15  }
   0xe   :  { %s4830_s8 = sld [smem:[%s5645_s0 + %s4755_s4]]   ;;  %s4764_s27 = smov 17  }
   0xf   :  { %s4835_s14 = sld [smem:[%s5645_s0 + %s4756_s10]]   ;;  %s4765_s4 = smov 18  }
  0x10   :  { %s4840_s19 = sld [smem:[%s5645_s0 + %s4757_s15]]  }
  0x11   :  { %s4845_s24 = sld [smem:[%s5645_s0 + %s4758_s20]]   ;;  %s4763_s20 = smov 16  }
  0x12   :  { %5661 = sst [smem:[#allocation45_spill]] %s4820_s29 }
  0x13   :  { %s4850_s30 = sld [smem:[%s5645_s0 + %s4759_s26]]  }
  0x14   :  { %s4855_s6 = sld [smem:[%s5645_s0 + %s4760_s1]]  }
  0x15   :  { %s4860_s12 = sld [smem:[%s5645_s0 + %s4761_s7]]  }
  0x16   :  { %s4865_s18 = sld [smem:[%s5645_s0 + %s4762_s25]]   ;;  %s4766_s25 = smov 19  }
  0x17   :  { %s4870_s26 = sld [smem:[%s5645_s0 + %s4763_s20]]   ;;  %s4767_s20 = smov 20  }
  0x18   :  { %s4875_s2 = sld [smem:[%s5645_s0 + %s4764_s27]]   ;;  %s4768_s27 = smov 21  }
  0x19   :  { %s4880_s11 = sld [smem:[%s5645_s0 + %s4765_s4]]   ;;  %s4769_s4 = smov 22  }
  0x1a   :  { %s4885_s13 = sld [smem:[%s5645_s0 + %s4766_s25]]   ;;  %s4770_s25 = smov 23  }
  0x1b   :  { %s4890_s9 = sld [smem:[%s5645_s0 + %s4767_s20]]   ;;  %s4771_s20 = smov 24  }
  0x1c   :  { %s4895_s17 = sld [smem:[%s5645_s0 + %s4768_s27]]   ;;  %s4772_s27 = smov 25  }
  0x1d   :  { %s4900_s21 = sld [smem:[%s5645_s0 + %s4769_s4]]   ;;  %s4773_s4 = smov 26  }
  0x1e   :  { %s4905_s5 = sld [smem:[%s5645_s0 + %s4770_s25]]   ;;  %s4774_s25 = smov 27  }
  0x21   :  { %5662 = sst [smem:[#allocation46_spill]] %s4890_s9 }
  0x22   :  { %5663 = sst [smem:[#allocation47_spill]] %s4895_s17 }
  0x23   :  { %5664 = sst [smem:[#allocation48_spill]] %s4900_s21 }
  0x24   :  { %5665 = sst [smem:[#allocation49_spill]] %s4905_s5 }
  0x25   :  { %s4910_s9 = sld [smem:[%s5645_s0 + %s4771_s20]]   ;;  %s4775_s20 = smov 28  }
  0x26   :  { %s4915_s17 = sld [smem:[%s5645_s0 + %s4772_s27]]   ;;  %s4776_s27 = smov 29  }
  0x27   :  { %s4920_s21 = sld [smem:[%s5645_s0 + %s4773_s4]]   ;;  %s4937_s4 = smov 0  }
  0x28   :  { %s4925_s5 = sld [smem:[%s5645_s0 + %s4774_s25]]  }
  0x2b   :  { %5666 = sst [smem:[#allocation50_spill]] %s4910_s9 }
  0x2c   :  { %5667 = sst [smem:[#allocation51_spill]] %s4915_s17 }
  0x2d   :  { %5668 = sst [smem:[#allocation52_spill]] %s4920_s21 }
  0x2e   :  { %5669 = sst [smem:[#allocation53_spill]] %s4925_s5 }
  0x2f   :  { %s4930_s9 = sld [smem:[%s5645_s0 + %s4775_s20]]  }
  0x30   :  { %s4935_s17 = sld [smem:[%s5645_s0 + %s4776_s27]]  }
  0x35   :  { %5670 = sst [smem:[#allocation54_spill]] %s4930_s9 }
  0x36   :  { %5671 = sst [smem:[#allocation55_spill]] %s4935_s17 }
  0x37 LB: > { %5672 = sst [smem:[#allocation56_spill]] %s4746_s4  ;;  %s4943_s7 = sadd.s32 4294967295, %s4746_s4   ;;  %s4746_s4 = sphi %s4937_s4, %s71_s4  }
  0x38   : > { %p3968_p0 = scmp.ge.s32.totalorder %s4746_s4, 1  ;;  %p715_p1 = scmp.lt.s32.totalorder %s4746_s4, 3 }
  0x3a   : > { %p716_p2 = pnand %p3968_p0, %p715_p1 }
  0x3b   : > { %s5673_s29 = sld [smem:[#allocation45_spill]] (!%p716_p2)  ;;  %p820_p3 = scmp.lt.s32.totalorder (!%p716_p2), %s4943_s7, 1 }
  0x3c   : > { %719 = sbr.rel (%p716_p2) target bundleno = 3265 (0xcc1), region = 100  ;;  %p3984_p4 = scmp.ne.s32.totalorder (!%p716_p2), %s4943_s7, 0 }
  0x43   : > { %s4949_s0 = scalar_select %p820_p3, %s4943_s7, 1 }
  0x45   : > { %s4117_s10 = sshll.u32 %s4949_s0, 5  ;;  %s4118_s25 = sshll.u32 %s4949_s0, 7 }
  0x46   : > { %s4954_s15 = scalar_lea.vmem %s5673_s29, %s4117_s10  ;;  %s4957_s16 = scalar_lea.vmem %s4825_s3, %s4118_s25 }
  0x47   : > { %s3973_s20 = sshll.u32 %s4949_s0, 1  ;;  %s4119_s22 = sshll.u32 %s4949_s0, 6 }
  0x48   : > { %s4962_s23 = scalar_lea.vmem %s4830_s8, %s3973_s20  ;;  %s4965_s27 = scalar_lea.vmem %s4835_s14, %s4119_s22 }
  0x49   : > { %s841_s28 = scalar_lea.vmem %s4840_s19, %s4949_s0  ;;  %s4970_s1 = scalar_lea.vmem %s4845_s24, %s4119_s22 }
  0x4a   : > { %s849_s4 = scalar_lea.vmem %s4850_s30, %s4949_s0  ;;  %s4975_s17 = scalar_lea.vmem %s4855_s6, %s4119_s22 }
  0x4b   : > { %s860_s5 = scalar_lea.vmem %s4865_s18, %s4949_s0  ;;  %s4982_s21 = scalar_lea.vmem %s4870_s26, %s4119_s22 }
  0x4c   : > { %s868_s10 = scalar_lea.vmem %s4875_s2, %s4949_s0  ;;  %s4987_s29 = scalar_lea.vmem %s4880_s11, %s4119_s22 }
  0x4d   : > { %881 = sbr.rel (%p3984_p4) target bundleno = 342 (0x156), region = 104 }
  0x54   : > { %s5674_s20 = sld [smem:[#allocation46_spill]] }
  0x5a   : > { %v914_v1 = vld [vmem:[%s5674_s20] sm:$0xff]  ;;  %v916_v2 = vld [vmem:[%s5674_s20 + $0x8] sm:$0xff] }
  0x5b   : > { %915 = vst [vmem:[#allocation2] sm:$0xff] %v914_v1  ;;  %917 = vst [vmem:[#allocation2 + $0x8] sm:$0xff] %v916_v2 }
  0x5c   : > { %925 = vsyncadd [#allocation5], 256 }
  0x5d   : > { %4726 = dma.done.wait [#allocation5], 256 }
  0x5e   : > { %4727 = vsyncadd [#allocation5], 4294967040  ;;  %v945_v3 = vld [vmem:[#allocation4] sm:$0x1]  ;;  %s5675_s9 = sld [smem:[#allocation40_spill]]  ;;  %v4777_v6 = vmov 0  }
  0x5f   : > { %4448 = vpush %v945_v3  ;;  %4495 = vset.pattern.permute.xlu1 %v4777_v6  ;;  %4494 = vset.pattern.permute.xlu0 %v4777_v6  ;;  %s5677_s25 = sld [smem:[#allocation43_spill]] }
  0x64   : > { %v4995_v4 = vld [vmem:[%s5675_s9 + $0x10] sm:$0xff]  ;;  %v4998_v5 = vld [vmem:[%s5675_s9] sm:$0xff]  ;;  %v5003_v9 = vld [vmem:[%s5675_s9 + $0x18] sm:$0xff] }
  0x65   : > { %v1161_v7 = vsub.f32 0.0, %v4995_v4  ;;  %v1159_v8 = vsub.f32 0.0, %v4998_v5  ;;  %v5006_v10 = vld [vmem:[%s5675_s9 + $0x8] sm:$0xff]  ;;  %v1162_v12 = vsub.f32 0.0, %v5003_v9  ;;  %v5014_v14 = vld [vmem:[%s5675_s9 + $0x20] sm:$0xff]  ;;  %v5019_v21 = vld [vmem:[%s5675_s9 + $0x38] sm:$0xff] }
  0x66   : > { %v5009_v11 = vld [vmem:[%s5675_s9 + $0x28] sm:$0xff]  ;;  %v1160_v13 = vsub.f32 0.0, %v5006_v10  ;;  %v1163_v20 = vsub.f32 0.0, %v5014_v14  ;;  %v5022_v22 = vld [vmem:[%s5675_s9 + $0x30] sm:$0xff]  ;;  %v1166_v24 = vsub.f32 0.0, %v5019_v21  ;;  %v5030_v28 = vld [vmem:[%s5675_s9 + $0x40] sm:$0xff] }
  0x67   : > { %v1179_v15 = vmul.f32 1.442695, %v1161_v7  ;;  %v1175_v16 = vmul.f32 1.442695, %v1159_v8  ;;  %v1164_v17 = vsub.f32 0.0, %v5009_v11  ;;  %v1165_v26 = vsub.f32 0.0, %v5022_v22 }
  0x68   : > { %v1181_v18 = vmul.f32 1.442695, %v1162_v12  ;;  %v1177_v19 = vmul.f32 1.442695, %v1160_v13  ;;  %v1183_v25 = vmul.f32 1.442695, %v1163_v20 }
  0x69   : > { %4496 = vpow2.f32 %v1179_v15  ;;  %v1185_v23 = vmul.f32 1.442695, %v1164_v17  ;;  %v5027_v27 = vld [vmem:[%s5675_s9 + $0x48] sm:$0xff]  ;;  %v1189_v29 = vmul.f32 1.442695, %v1166_v24  ;;  %v1167_v32 = vsub.f32 0.0, %v5030_v28 }
  0x6a   : > { %4498 = vpow2.f32 %v1175_v16  ;;  %v1168_v30 = vsub.f32 0.0, %v5027_v27  ;;  %v1187_v31 = vmul.f32 1.442695, %v1165_v26  ;;  %v5035_v33 = vld [vmem:[%s5675_s9 + $0x58] sm:$0xff]  ;;  %v5038_v34 = vld [vmem:[%s5675_s9 + $0x50] sm:$0xff]  ;;  %v5043_v41 = vld [vmem:[%s5675_s9 + $0x68] sm:$0xff] }
  0x6b   : > { %4500 = vpow2.f32 %v1181_v18  ;;  %v1170_v37 = vsub.f32 0.0, %v5035_v33  ;;  %v1191_v39 = vmul.f32 1.442695, %v1167_v32  ;;  %v1169_v40 = vsub.f32 0.0, %v5038_v34  ;;  %v5046_v43 = vld [vmem:[%s5675_s9 + $0x60] sm:$0xff]  ;;  %v5051_v49 = vld [vmem:[%s5675_s9 + $0x78] sm:$0xff] }
  0x6c   : > { %4502 = vpow2.f32 %v1177_v19  ;;  %v1193_v36 = vmul.f32 1.442695, %v1168_v30  ;;  %v1172_v46 = vsub.f32 0.0, %v5043_v41  ;;  %v1171_v48 = vsub.f32 0.0, %v5046_v43  ;;  %v5054_v51 = vld [vmem:[%s5675_s9 + $0x70] sm:$0xff] }
  0x6d   : > { %4504 = vpow2.f32 %v1185_v23  ;;  %v1197_v45 = vmul.f32 1.442695, %v1170_v37  ;;  %v1195_v47 = vmul.f32 1.442695, %v1169_v40  ;;  %v1174_v54 = vsub.f32 0.0, %v5051_v49 }
  0x6e   : > { %4506 = vpow2.f32 %v1183_v25  ;;  %v1201_v53 = vmul.f32 1.442695, %v1172_v46  ;;  %v1199_v55 = vmul.f32 1.442695, %v1171_v48  ;;  %v1173_v56 = vsub.f32 0.0, %v5054_v51 }
  0x6f   : > { %4508 = vpow2.f32 %v1189_v29  ;;  %v1205_v59 = vmul.f32 1.442695, %v1174_v54 }
  0x70   : > { %4510 = vpow2.f32 %v1187_v31  ;;  %v1203_v60 = vmul.f32 1.442695, %v1173_v56 }
  0x71   : > { %4512 = vpow2.f32 %v1193_v36 }
  0x72   : > { %4514 = vpow2.f32 %v1191_v39 }
  0x73   : > { %v4497_v35 = vpop.eup %4496  ;;  %4516 = vpow2.f32 %v1197_v45 }
  0x74   : > { %v4499_v38 = vpop.eup %4498  ;;  %1220 = vperm.xlu1 %4495, %v4497_v35   ;;  %4518 = vpow2.f32 %v1195_v47 }
  0x75   : > { %v4501_v42 = vpop.eup %4500  ;;  %1210 = vperm.xlu0 %4494, %v4499_v38   ;;  %4520 = vpow2.f32 %v1201_v53 }
  0x76   : > { %v4503_v44 = vpop.eup %4502  ;;  %4522 = vpow2.f32 %v1199_v55 }
  0x77   : > { %v4505_v50 = vpop.eup %4504  ;;  %4524 = vpow2.f32 %v1205_v59 }
  0x78   : > { %1225 = vperm.xlu1 %4495, %v4501_v42   ;;  %v4507_v52 = vpop.eup %4506  ;;  %4526 = vpow2.f32 %v1203_v60 }
  0x79   : > { %1215 = vperm.xlu0 %4494, %v4503_v44   ;;  %v4509_v57 = vpop.eup %4508 }
  0x7a   : > { %v4511_v58 = vpop.eup %4510 }
  0x7b   : > { %v4513_v61 = vpop.eup %4512 }
  0x7c   : > { %1235 = vperm.xlu1 %4495, %v4505_v50   ;;  %v4515_v62 = vpop.eup %4514 }
  0x7d   : > { %1230 = vperm.xlu0 %4494, %v4507_v52   ;;  %v4517_v63 = vpop.eup %4516 }
  0x7e   : > { %v4519_v0 = vpop.eup %4518 }
  0x7f   : > { %v4521_v1 = vpop.eup %4520 }
  0x80   : > { %1245 = vperm.xlu1 %4495, %v4509_v57   ;;  %v4523_v2 = vpop.eup %4522 }
  0x81   : > { %1240 = vperm.xlu0 %4494, %v4511_v58   ;;  %v4525_v3 = vpop.eup %4524 }
  0x82   : > { %v4527_v6 = vpop.eup %4526 }
  0x84   : > { %1255 = vperm.xlu1 %4495, %v4513_v61  }
  0x85   : > { %1250 = vperm.xlu0 %4494, %v4515_v62  }
  0x88   : > { %1265 = vperm.xlu1 %4495, %v4517_v63  }
  0x89   : > { %1260 = vperm.xlu0 %4494, %v4519_v0  }
  0x8c   : > { %1275 = vperm.xlu1 %4495, %v4521_v1  }
  0x8d   : > { %1270 = vperm.xlu0 %4494, %v4523_v2  }
  0x90   : > { %1285 = vperm.xlu1 %4495, %v4525_v3   ;;  %s4449_s22 = spop %4448 }
  0x91   : > { %1280 = vperm.xlu0 %4494, %v4527_v6   ;;  %v5058_v7 = vstv %s4449_s22  ;;  %s5676_s22 = sld [smem:[#allocation44_spill]] }
  0x92   : > { %4528 = vrcp.f32 %v5058_v7  ;;  %vm1030_vm0 = vcmp.lt.f32.partialorder %v5006_v10, %v5058_v7  ;;  %vm1029_vm1 = vcmp.lt.f32.partialorder %v4998_v5, %v5058_v7  ;;  %vm1032_vm2 = vcmp.lt.f32.partialorder %v5003_v9, %v5058_v7 }
  0x93   : > { %vm1031_vm3 = vcmp.lt.f32.partialorder %v4995_v4, %v5058_v7  ;;  %vm1034_vm4 = vcmp.lt.f32.partialorder %v5009_v11, %v5058_v7  ;;  %vm1033_vm5 = vcmp.lt.f32.partialorder %v5014_v14, %v5058_v7  ;;  %vm1036_vm6 = vcmp.lt.f32.partialorder %v5019_v21, %v5058_v7 }
  0x94   : > { %vm1035_vm7 = vcmp.lt.f32.partialorder %v5022_v22, %v5058_v7  ;;  %vm1038_vm8 = vcmp.lt.f32.partialorder %v5027_v27, %v5058_v7  ;;  %vm1037_vm9 = vcmp.lt.f32.partialorder %v5030_v28, %v5058_v7  ;;  %vm1040_vm10 = vcmp.lt.f32.partialorder %v5035_v33, %v5058_v7 }
  0x95   : > { %vm1039_vm11 = vcmp.lt.f32.partialorder %v5038_v34, %v5058_v7  ;;  %vm1042_vm12 = vcmp.lt.f32.partialorder %v5043_v41, %v5058_v7  ;;  %vm1041_vm13 = vcmp.lt.f32.partialorder %v5046_v43, %v5058_v7  ;;  %vm1044_vm14 = vcmp.lt.f32.partialorder %v5051_v49, %v5058_v7 }
  0x96   : > { %vm1043_vm15 = vcmp.lt.f32.partialorder %v5054_v51, %v5058_v7 }
  0x9c   : > { %v5061_v8 = vpop.eup %4528 }
  0x9d   : > { %v950_v12 = vmul.f32 %v5061_v8, %v5006_v10  ;;  %v949_v13 = vmul.f32 %v5061_v8, %v4998_v5  ;;  %v952_v15 = vmul.f32 %v5061_v8, %v5003_v9  ;;  %v951_v16 = vmul.f32 %v5061_v8, %v4995_v4 }
  0x9e   : > { %v954_v17 = vmul.f32 %v5061_v8, %v5009_v11  ;;  %v953_v18 = vmul.f32 %v5061_v8, %v5014_v14  ;;  %v5077_v19 = vmul.f32 %v5061_v8, %v5019_v21  ;;  %v5081_v20 = vmul.f32 %v5061_v8, %v5022_v22 }
  0x9f   : > { %v966_v23 = vmul.f32 %v950_v12, %v950_v12  ;;  %v965_v24 = vmul.f32 %v949_v13, %v949_v13  ;;  %v968_v25 = vmul.f32 %v952_v15, %v952_v15  ;;  %v967_v26 = vmul.f32 %v951_v16, %v951_v16 }
  0xa0   : > { %v970_v29 = vmul.f32 %v954_v17, %v954_v17  ;;  %v969_v30 = vmul.f32 %v953_v18, %v953_v18  ;;  %v972_v31 = vmul.f32 %v5077_v19, %v5077_v19  ;;  %v971_v32 = vmul.f32 %v5081_v20, %v5081_v20 }
  0xa1   : > { %v982_v35 = vmul.f32 %v966_v23, %v950_v12  ;;  %v981_v36 = vmul.f32 %v965_v24, %v949_v13  ;;  %v984_v37 = vmul.f32 %v968_v25, %v952_v15  ;;  %v983_v38 = vmul.f32 %v967_v26, %v951_v16 }
  0xa2   : > { %v986_v39 = vmul.f32 %v970_v29, %v954_v17  ;;  %v985_v40 = vmul.f32 %v969_v30, %v953_v18  ;;  %v988_v45 = vmul.f32 %v972_v31, %v5077_v19  ;;  %v5089_v46 = vmul.f32 %v971_v32, %v5081_v20 }
  0xa3   : > { %v998_v42 = vmul.f32 %v982_v35, %v950_v12  ;;  %v997_v44 = vmul.f32 %v981_v36, %v949_v13  ;;  %v1110_v47 = vmul.f32 10.0, %v982_v35  ;;  %v1109_v48 = vmul.f32 10.0, %v981_v36 }
  0xa4   : > { %v1000_v50 = vmul.f32 %v984_v37, %v952_v15  ;;  %v999_v52 = vmul.f32 %v983_v38, %v951_v16  ;;  %v1112_v55 = vmul.f32 10.0, %v984_v37  ;;  %v1111_v56 = vmul.f32 10.0, %v983_v38 }
  0xa5   : > { %v1014_v53 = vmul.f32 %v998_v42, %v950_v12  ;;  %v1013_v54 = vmul.f32 %v997_v44, %v949_v13  ;;  %v1078_v57 = vmul.f32 15.0, %v998_v42  ;;  %v1077_v58 = vmul.f32 15.0, %v997_v44 }
  0xa6   : > { %v1016_v59 = vmul.f32 %v1000_v50, %v952_v15  ;;  %v1015_v60 = vmul.f32 %v999_v52, %v951_v16  ;;  %v1080_v63 = vmul.f32 15.0, %v1000_v50  ;;  %v1002_v0 = vmul.f32 %v986_v39, %v954_v17 }
  0xa7   : > { %v1046_v61 = vmul.f32 6.0, %v1014_v53  ;;  %v1045_v62 = vmul.f32 6.0, %v1013_v54  ;;  %v1079_v3 = vmul.f32 15.0, %v999_v52  ;;  %v1001_v6 = vmul.f32 %v985_v40, %v953_v18 }
  0xa8   : > { %v1048_v1 = vmul.f32 6.0, %v1016_v59  ;;  %v1047_v2 = vmul.f32 6.0, %v1015_v60  ;;  %v1018_v23 = vmul.f32 %v1002_v0, %v954_v17  ;;  %v1114_v24 = vmul.f32 10.0, %v986_v39 }
  0xa9   : > { %v1062_v12 = vsub.f32 1.0, %v1046_v61  ;;  %v1061_v13 = vsub.f32 1.0, %v1045_v62  ;;  %v1017_v25 = vmul.f32 %v1001_v6, %v953_v18  ;;  %v1113_v26 = vmul.f32 10.0, %v985_v40 }
  0xaa   : > { %v1064_v15 = vsub.f32 1.0, %v1048_v1  ;;  %v1063_v16 = vsub.f32 1.0, %v1047_v2  ;;  %v1050_v31 = vmul.f32 6.0, %v1018_v23  ;;  %v1004_v32 = vmul.f32 %v988_v45, %v5077_v19 }
  0xab   : > { %v1094_v29 = vadd.f32 %v1078_v57, %v1062_v12  ;;  %v1093_v30 = vadd.f32 %v1077_v58, %v1061_v13  ;;  %v1082_v37 = vmul.f32 15.0, %v1002_v0  ;;  %v1049_v38 = vmul.f32 6.0, %v1017_v25 }
  0xac   : > { %v1096_v35 = vadd.f32 %v1080_v63, %v1064_v15  ;;  %v1095_v36 = vadd.f32 %v1079_v3, %v1063_v16  ;;  %v1066_v17 = vsub.f32 1.0, %v1050_v31  ;;  %v1020_v18 = vmul.f32 %v1004_v32, %v5077_v19 }
  0xad   : > { %v1126_v42 = vsub.f32 %v1094_v29, %v1110_v47  ;;  %v1125_v44 = vsub.f32 %v1093_v30, %v1109_v48  ;;  %v1065_v50 = vsub.f32 1.0, %v1049_v38  ;;  %v1081_v52 = vmul.f32 15.0, %v1001_v6 }
  0xae   : > { %v1128_v39 = vsub.f32 %v1096_v35, %v1112_v55  ;;  %v1127_v40 = vsub.f32 %v1095_v36, %v1111_v56  ;;  %v1098_v47 = vadd.f32 %v1082_v37, %v1066_v17  ;;  %v1052_v48 = vmul.f32 6.0, %v1020_v18 }
  0xaf   : > { %v1142_v53 = vsel %vm1030_vm0, %v1126_v42, 0.0  ;;  %v1141_v54 = vsel %vm1029_vm1, %v1125_v44, 0.0  ;;  %v1097_v19 = vadd.f32 %v1081_v52, %v1065_v50  ;;  %v1084_v55 = vmul.f32 15.0, %v1004_v32 }
  0xb0   : > { %1387 = vperm.xlu1 %4495, %v1142_v53   ;;  %1382 = vperm.xlu0 %4494, %v1141_v54   ;;  %v1116_v56 = vmul.f32 10.0, %v988_v45  ;;  %v1003_v57 = vmul.f32 %v5089_v46, %v5081_v20  ;;  %v1144_v10 = vsel %vm1032_vm2, %v1128_v39, 0.0  ;;  %v1130_v58 = vsub.f32 %v1098_v47, %v1114_v24 }
  0xb1   : > { %v1068_v5 = vsub.f32 1.0, %v1052_v48  ;;  %v958_v59 = vmul.f32 %v5061_v8, %v5027_v27  ;;  %v1143_v60 = vsel %vm1031_vm3, %v1127_v40, 0.0  ;;  %v1129_v61 = vsub.f32 %v1097_v19, %v1113_v26 }
  0xb2   : > { %v1019_v62 = vmul.f32 %v1003_v57, %v5081_v20  ;;  %v957_v45 = vmul.f32 %v5061_v8, %v5030_v28  ;;  %v1115_v9 = vmul.f32 10.0, %v5089_v46  ;;  %v960_v1 = vmul.f32 %v5061_v8, %v5035_v33 }
  0xb3   : > { %v1100_v63 = vadd.f32 %v1084_v55, %v1068_v5  ;;  %v974_v0 = vmul.f32 %v958_v59, %v958_v59  ;;  %v1083_v2 = vmul.f32 15.0, %v1003_v57  ;;  %v959_v20 = vmul.f32 %v5061_v8, %v5038_v34 }
  0xb4   : > { %1397 = vperm.xlu1 %4495, %v1144_v10   ;;  %1392 = vperm.xlu0 %4494, %v1143_v60   ;;  %v1051_v4 = vmul.f32 6.0, %v1019_v62  ;;  %v973_v3 = vmul.f32 %v957_v45, %v957_v45  ;;  %v1146_v6 = vsel %vm1034_vm4, %v1130_v58, 0.0  ;;  %v976_v23 = vmul.f32 %v960_v1, %v960_v1 }
  0xb5   : > { %v1132_v12 = vsub.f32 %v1100_v63, %v1116_v56  ;;  %v990_v13 = vmul.f32 %v974_v0, %v958_v59  ;;  %v1145_v46 = vsel %vm1033_vm5, %v1129_v61, 0.0  ;;  %v975_v16 = vmul.f32 %v959_v20, %v959_v20 }
  0xb6   : > { %v1067_v24 = vsub.f32 1.0, %v1051_v4  ;;  %v989_v15 = vmul.f32 %v973_v3, %v957_v45  ;;  %v992_v26 = vmul.f32 %v976_v23, %v960_v1  ;;  %v962_v29 = vmul.f32 %v5061_v8, %v5043_v41 }
  0xb7   : > { %v1006_v25 = vmul.f32 %v990_v13, %v958_v59  ;;  %v961_v30 = vmul.f32 %v5061_v8, %v5046_v43  ;;  %v1148_v11 = vsel %vm1036_vm6, %v1132_v12, 0.0  ;;  %v991_v32 = vmul.f32 %v975_v16, %v959_v20 }
  0xb8   : > { %1407 = vperm.xlu1 %4495, %v1146_v6   ;;  %1402 = vperm.xlu0 %4494, %v1145_v46   ;;  %v1099_v31 = vadd.f32 %v1083_v2, %v1067_v24  ;;  %v1005_v14 = vmul.f32 %v989_v15, %v957_v45  ;;  %v1118_v36 = vmul.f32 10.0, %v990_v13  ;;  %v1117_v37 = vmul.f32 10.0, %v989_v15 }
  0xb9   : > { %v1022_v35 = vmul.f32 %v1006_v25, %v958_v59  ;;  %v1008_v38 = vmul.f32 %v992_v26, %v960_v1  ;;  %v1086_v44 = vmul.f32 15.0, %v1006_v25  ;;  %v1007_v18 = vmul.f32 %v991_v32, %v959_v20 }
  0xba   : > { %v1131_v42 = vsub.f32 %v1099_v31, %v1115_v9  ;;  %v1021_v17 = vmul.f32 %v1005_v14, %v957_v45  ;;  %v1085_v40 = vmul.f32 15.0, %v1005_v14  ;;  %v1120_v52 = vmul.f32 10.0, %v992_v26 }
  0xbb   : > { %v1054_v39 = vmul.f32 6.0, %v1022_v35  ;;  %v1024_v50 = vmul.f32 %v1008_v38, %v960_v1  ;;  %v1088_v54 = vmul.f32 15.0, %v1008_v38  ;;  %v1023_v47 = vmul.f32 %v1007_v18, %v959_v20 }
  0xbc   : > { %1417 = vperm.xlu1 %4495, %v1148_v11   ;;  %v1147_v21 = vsel %vm1035_vm7, %v1131_v42, 0.0  ;;  %v1053_v53 = vmul.f32 6.0, %v1021_v17  ;;  %v978_v55 = vmul.f32 %v962_v29, %v962_v29  ;;  %v977_v56 = vmul.f32 %v961_v30, %v961_v30 }
  0xbd   : > { %1412 = vperm.xlu0 %4494, %v1147_v21   ;;  %v1070_v48 = vsub.f32 1.0, %v1054_v39  ;;  %v1056_v19 = vmul.f32 6.0, %v1024_v50  ;;  %v1055_v10 = vmul.f32 6.0, %v1023_v47  ;;  %v964_v58 = vmul.f32 %v5061_v8, %v5051_v49 }
  0xbe   : > { %v1069_v57 = vsub.f32 1.0, %v1053_v53  ;;  %v963_v5 = vmul.f32 %v5061_v8, %v5054_v51  ;;  %v994_v22 = vmul.f32 %v978_v55, %v962_v29  ;;  %v993_v61 = vmul.f32 %v977_v56, %v961_v30 }
  0xbf   : > { %v1102_v59 = vadd.f32 %v1086_v44, %v1070_v48  ;;  %v1072_v60 = vsub.f32 1.0, %v1056_v19  ;;  %v1071_v45 = vsub.f32 1.0, %v1055_v10  ;;  %v1087_v63 = vmul.f32 15.0, %v1007_v18 }
  0xc0   : > { %v1101_v62 = vadd.f32 %v1085_v40, %v1069_v57  ;;  %v980_v9 = vmul.f32 %v964_v58, %v964_v58  ;;  %v1010_v4 = vmul.f32 %v994_v22, %v962_v29  ;;  %v979_v2 = vmul.f32 %v963_v5, %v963_v5 }
  0xc1   : > { %v1134_v0 = vsub.f32 %v1102_v59, %v1118_v36  ;;  %v1104_v1 = vadd.f32 %v1088_v54, %v1072_v60  ;;  %v1103_v20 = vadd.f32 %v1087_v63, %v1071_v45  ;;  %v1119_v6 = vmul.f32 10.0, %v991_v32  ;;  %v1157_v45 = vld [vmem:[%s5676_s22] sm:$0x1] }
  0xc2   : > { %v1133_v3 = vsub.f32 %v1101_v62, %v1117_v37  ;;  %v1009_v12 = vmul.f32 %v993_v61, %v961_v30  ;;  %v1026_v23 = vmul.f32 %v1010_v4, %v962_v29  ;;  %v996_v25 = vmul.f32 %v980_v9, %v964_v58  ;;  %v5174_v63 = vld [vmem:[%s5677_s25] ss:$0 sm:$0xff] }
  0xc3   : > { %v1150_v8 = vsel %vm1038_vm8, %v1134_v0, 0.0  ;;  %v1136_v13 = vsub.f32 %v1104_v1, %v1120_v52  ;;  %v1135_v24 = vsub.f32 %v1103_v20, %v1119_v6  ;;  %v995_v26 = vmul.f32 %v979_v2, %v963_v5 }
  0xc4   : > { %1427 = vperm.xlu1 %4495, %v1150_v8   ;;  %v1149_v46 = vsel %vm1037_vm9, %v1133_v3, 0.0  ;;  %v1025_v15 = vmul.f32 %v1009_v12, %v961_v30  ;;  %v1058_v16 = vmul.f32 6.0, %v1026_v23  ;;  %v1090_v27 = vmul.f32 15.0, %v1010_v4 }
  0xc5   : > { %1422 = vperm.xlu0 %4494, %v1149_v46   ;;  %v1152_v31 = vsel %vm1040_vm10, %v1136_v13, 0.0  ;;  %v1012_v14 = vmul.f32 %v996_v25, %v964_v58  ;;  %v1011_v29 = vmul.f32 %v995_v26, %v963_v5  ;;  %v1151_v32 = vsel %vm1039_vm11, %v1135_v24, 0.0 }
  0xc6   : > { %v1057_v11 = vmul.f32 6.0, %v1025_v15  ;;  %v1074_v28 = vsub.f32 1.0, %v1058_v16  ;;  %v1089_v30 = vmul.f32 15.0, %v1009_v12  ;;  %v1122_v37 = vmul.f32 10.0, %v994_v22 }
  0xc7   : > { %v1028_v38 = vmul.f32 %v1012_v14, %v964_v58  ;;  %v1027_v42 = vmul.f32 %v1011_v29, %v963_v5  ;;  %v1121_v33 = vmul.f32 10.0, %v993_v61  ;;  %v1092_v40 = vmul.f32 15.0, %v1012_v14 }
  0xc8   : > { %1437 = vperm.xlu1 %4495, %v1152_v31   ;;  %v1073_v35 = vsub.f32 1.0, %v1057_v11  ;;  %v1106_v36 = vadd.f32 %v1090_v27, %v1074_v28  ;;  %v1091_v53 = vmul.f32 15.0, %v1011_v29  ;;  %v1124_v48 = vmul.f32 10.0, %v996_v25 }
  0xc9   : > { %1432 = vperm.xlu0 %4494, %v1151_v32   ;;  %v1060_v18 = vmul.f32 6.0, %v1028_v38  ;;  %v1059_v34 = vmul.f32 6.0, %v1027_v42  ;;  %v1123_v55 = vmul.f32 10.0, %v995_v26  ;;  %v1327_v60 = vlaneseq }
  0xca   : > { %v1105_v44 = vadd.f32 %v1089_v30, %v1073_v35  ;;  %v1138_v17 = vsub.f32 %v1106_v36, %v1122_v37  ;;  %v1158_v0 = vsub.f32 0.0, %v1157_v45  ;;  %vm1476_vm0 = vcmask 523264  }
  0xcb   : > { %v1076_v52 = vsub.f32 1.0, %v1060_v18  ;;  %v1075_v21 = vsub.f32 1.0, %v1059_v34  ;;  %v1328_v62 = vshrl.u32 %v1327_v60, 7 }
  0xcc   : > { %v1137_v39 = vsub.f32 %v1105_v44, %v1121_v33  ;;  %v1154_v50 = vsel %vm1042_vm12, %v1138_v17, 0.0 }
  0xcd   : > { %1447 = vperm.xlu1 %4495, %v1154_v50   ;;  %v1108_v47 = vadd.f32 %v1092_v40, %v1076_v52  ;;  %v1107_v19 = vadd.f32 %v1091_v53, %v1075_v21  ;;  %v1329_v1 = vsub.s32 0, %v1328_v62 }
  0xce   : > { %v1153_v54 = vsel %vm1041_vm13, %v1137_v39, 0.0 }
  0xcf   : > { %1442 = vperm.xlu0 %4494, %v1153_v54   ;;  %v1140_v56 = vsub.f32 %v1108_v47, %v1124_v48  ;;  %v1139_v57 = vsub.f32 %v1107_v19, %v1123_v55  ;;  %v5178_v4 = vrot.slane %v1158_v0, %v1329_v1 }
  0xd1   : > { %v1156_v41 = vsel %vm1044_vm14, %v1140_v56, 0.0  ;;  %v1155_v43 = vsel %vm1043_vm15, %v1139_v57, 0.0 }
  0xd2   : > { %1457 = vperm.xlu1 %4495, %v1156_v41  }
  0xd3   : > { %1452 = vperm.xlu0 %4494, %v1155_v43  }
  0xf3   : > { %v1221_v10 = vpop.permute.xlu1 %1220 }
  0xf4   : > { %v1211_v58 = vpop.permute.xlu0 %1210  ;;  %v1296_v2 = vsub.f32 %v1221_v10, %v5174_v63 }
  0xf5   : > { %v1294_v51 = vsub.f32 %v1211_v58, %v5174_v63 }
  0xf6   : > { %v1312_v13 = vmul.f32 %v1296_v2, %v1296_v2 }
  0xf7   : > { %v1226_v5 = vpop.permute.xlu1 %1225  ;;  %v1310_v3 = vmul.f32 %v1294_v51, %v1294_v51 }
  0xf8   : > { %v1216_v59 = vpop.permute.xlu0 %1215  ;;  %v1297_v20 = vsub.f32 %v1226_v5, %v5174_v63  ;;  %v1334_v27 = vmul.f32 %v5178_v4, %v1312_v13 }
  0xf9   : > { %v1295_v7 = vsub.f32 %v1216_v59, %v5174_v63  ;;  %v1332_v23 = vmul.f32 %v5178_v4, %v1310_v3 }
  0xfa   : > { %v1313_v24 = vmul.f32 %v1297_v20, %v1297_v20  ;;  %v1352_v30 = vmul.f32 1.442695, %v1334_v27 }
  0xfb   : > { %v1236_v22 = vpop.permute.xlu1 %1235  ;;  %v1311_v6 = vmul.f32 %v1295_v7, %v1295_v7  ;;  %v1348_v11 = vmul.f32 1.442695, %v1332_v23 }
  0xfc   : > { %v1231_v61 = vpop.permute.xlu0 %1230  ;;  %v1299_v46 = vsub.f32 %v1236_v22, %v5174_v63  ;;  %v1335_v28 = vmul.f32 %v5178_v4, %v1313_v24 }
  0xfd   : > { %v1333_v15 = vmul.f32 %v5178_v4, %v1311_v6  ;;  %v1298_v16 = vsub.f32 %v1231_v61, %v5174_v63  ;;  %4530 = vpow2.f32 %v1348_v11 }
  0xfe   : > { %v1315_v31 = vmul.f32 %v1299_v46, %v1299_v46  ;;  %v1354_v37 = vmul.f32 1.442695, %v1335_v28 }
  0xff   : > { %v1246_v9 = vpop.permute.xlu1 %1245  ;;  %v1350_v14 = vmul.f32 1.442695, %v1333_v15  ;;  %v1314_v29 = vmul.f32 %v1298_v16, %v1298_v16 }
 0x100   : > { %v1241_v49 = vpop.permute.xlu0 %1240  ;;  %v1301_v32 = vsub.f32 %v1246_v9, %v5174_v63  ;;  %v1337_v36 = vmul.f32 %v5178_v4, %v1315_v31 }
 0x101   : > { %v1300_v35 = vsub.f32 %v1241_v49, %v5174_v63  ;;  %4532 = vpow2.f32 %v1350_v14  ;;  %v1336_v38 = vmul.f32 %v5178_v4, %v1314_v29 }
 0x102   : > { %v1317_v42 = vmul.f32 %v1301_v32, %v1301_v32  ;;  %4534 = vpow2.f32 %v1352_v30  ;;  %v1358_v18 = vmul.f32 1.442695, %v1337_v36 }
 0x103   : > { %v1256_v12 = vpop.permute.xlu1 %1255  ;;  %v1316_v17 = vmul.f32 %v1300_v35, %v1300_v35  ;;  %4536 = vpow2.f32 %v1354_v37  ;;  %v1356_v34 = vmul.f32 1.442695, %v1336_v38 }
 0x104   : > { %v1251_v8 = vpop.permute.xlu0 %1250  ;;  %v1339_v39 = vmul.f32 %v5178_v4, %v1317_v42  ;;  %v1303_v40 = vsub.f32 %v1256_v12, %v5174_v63  ;;  %4538 = vpow2.f32 %v1358_v18 }
 0x105   : > { %v1338_v50 = vmul.f32 %v5178_v4, %v1316_v17  ;;  %v1302_v52 = vsub.f32 %v1251_v8, %v5174_v63  ;;  %4540 = vpow2.f32 %v1356_v34 }
 0x106   : > { %v1362_v54 = vmul.f32 1.442695, %v1339_v39  ;;  %v1319_v47 = vmul.f32 %v1303_v40, %v1303_v40 }
 0x107   : > { %v1266_v25 = vpop.permute.xlu1 %1265  ;;  %v4531_v19 = vpop.eup %4530  ;;  %v1360_v55 = vmul.f32 1.442695, %v1338_v50  ;;  %v1318_v56 = vmul.f32 %v1302_v52, %v1302_v52 }
 0x108   : > { %v1261_v26 = vpop.permute.xlu0 %1260  ;;  %v1305_v48 = vsub.f32 %v1266_v25, %v5174_v63  ;;  %4542 = vpow2.f32 %v1362_v54  ;;  %v1341_v59 = vmul.f32 %v5178_v4, %v1319_v47 }
 0x109   : > { %v1304_v57 = vsub.f32 %v1261_v26, %v5174_v63  ;;  %4544 = vpow2.f32 %v1360_v55  ;;  %v1340_v61 = vmul.f32 %v5178_v4, %v1318_v56 }
 0x10a   : > { %v1321_v60 = vmul.f32 %v1305_v48, %v1305_v48  ;;  %v1366_v2 = vmul.f32 1.442695, %v1341_v59 }
 0x10b   : > { %v1276_v44 = vpop.permute.xlu1 %1275  ;;  %v4533_v41 = vpop.eup %4532  ;;  %v1320_v62 = vmul.f32 %v1304_v57, %v1304_v57  ;;  %v1364_v6 = vmul.f32 1.442695, %v1340_v61 }
 0x10c   : > { %v1271_v33 = vpop.permute.xlu0 %1270  ;;  %v4535_v22 = vpop.eup %4534  ;;  %v1307_v9 = vsub.f32 %v1276_v44, %v5174_v63  ;;  %v1343_v3 = vmul.f32 %v5178_v4, %v1321_v60  ;;  %4546 = vpow2.f32 %v1366_v2 }
 0x10d   : > { %v4537_v45 = vpop.eup %4536  ;;  %v1306_v1 = vsub.f32 %v1271_v33, %v5174_v63  ;;  %v1342_v12 = vmul.f32 %v5178_v4, %v1320_v62  ;;  %4548 = vpow2.f32 %v1364_v6 }
 0x10e   : > { %v4539_v20 = vpop.eup %4538  ;;  %v1323_v13 = vmul.f32 %v1307_v9, %v1307_v9  ;;  %v1370_v26 = vmul.f32 1.442695, %v1343_v3 }
 0x10f   : > { %v1286_v21 = vpop.permute.xlu1 %1285  ;;  %v4541_v8 = vpop.eup %4540  ;;  %v1322_v24 = vmul.f32 %v1306_v1, %v1306_v1  ;;  %v1368_v11 = vmul.f32 1.442695, %v1342_v12 }
 0x110   : > { %v1281_v53 = vpop.permute.xlu0 %1280  ;;  %v1309_v15 = vsub.f32 %v1286_v21, %v5174_v63  ;;  %v1345_v28 = vmul.f32 %v5178_v4, %v1323_v13  ;;  %4550 = vpow2.f32 %v1370_v26 }
 0x111   : > { %v1308_v27 = vsub.f32 %v1281_v53, %v5174_v63  ;;  %v1344_v32 = vmul.f32 %v5178_v4, %v1322_v24  ;;  %4552 = vpow2.f32 %v1368_v11 }
 0x112   : > { %v4543_v31 = vpop.eup %4542  ;;  %v1325_v35 = vmul.f32 %v1309_v15, %v1309_v15  ;;  %v1374_v63 = vmul.f32 1.442695, %v1345_v28 }
 0x113   : > { %v4545_v29 = vpop.eup %4544  ;;  %v1324_v37 = vmul.f32 %v1308_v27, %v1308_v27  ;;  %v1372_v42 = vmul.f32 1.442695, %v1344_v32 }
 0x114   : > { %v1347_v44 = vmul.f32 %v5178_v4, %v1325_v35  ;;  %4554 = vpow2.f32 %v1374_v63 }
 0x115   : > { %v1346_v33 = vmul.f32 %v5178_v4, %v1324_v37  ;;  %4556 = vpow2.f32 %v1372_v42 }
 0x116   : > { %v4547_v17 = vpop.eup %4546  ;;  %v1378_v39 = vmul.f32 1.442695, %v1347_v44 }
 0x117   : > { %v4549_v34 = vpop.eup %4548  ;;  %v1376_v52 = vmul.f32 1.442695, %v1346_v33 }
 0x118   : > { %4558 = vpow2.f32 %v1378_v39 }
 0x119   : > { %4560 = vpow2.f32 %v1376_v52 }
 0x11a   : > { %v4551_v53 = vpop.eup %4550 }
 0x11b   : > { %v4553_v47 = vpop.eup %4552 }
 0x11e   : > { %v4555_v55 = vpop.eup %4554 }
 0x11f   : > { %v4557_v57 = vpop.eup %4556 }
 0x12f   : > { %v1388_v43 = vpop.permute.xlu1 %1387  ;;  %v1383_v10 = vpop.permute.xlu0 %1382 }
 0x130   : > { %v1461_v58 = vmul.f32 %v4533_v41, %v1388_v43  ;;  %v1460_v5 = vmul.f32 %v4531_v19, %v1383_v10 }
 0x132   : > { %1478 = vst.msk [vmem:[#allocation3 + $0x8] sm:$0xff] %vm1476_vm0, %v1461_v58  ;;  %1477 = vst.msk [vmem:[#allocation3] sm:$0xff] %vm1476_vm0, %v1460_v5  ;;  %v4559_v58 = vpop.eup %4558 }
 0x133   : > { %v1398_v49 = vpop.permute.xlu1 %1397  ;;  %v1393_v0 = vpop.permute.xlu0 %1392 }
 0x134   : > { %v1463_v51 = vmul.f32 %v4537_v45, %v1398_v49  ;;  %v1462_v7 = vmul.f32 %v4535_v22, %v1393_v0  ;;  %v4561_v5 = vpop.eup %4560 }
 0x136   : > { %1480 = vst.msk [vmem:[#allocation3 + $0x18] sm:$0xff] %vm1476_vm0, %v1463_v51  ;;  %1479 = vst.msk [vmem:[#allocation3 + $0x10] sm:$0xff] %vm1476_vm0, %v1462_v7 }
 0x137   : > { %v1408_v23 = vpop.permute.xlu1 %1407  ;;  %v1403_v46 = vpop.permute.xlu0 %1402 }
 0x138   : > { %v1465_v16 = vmul.f32 %v4539_v20, %v1408_v23  ;;  %v1464_v25 = vmul.f32 %v4541_v8, %v1403_v46 }
 0x13a   : > { %1482 = vst.msk [vmem:[#allocation3 + $0x28] sm:$0xff] %vm1476_vm0, %v1465_v16  ;;  %1481 = vst.msk [vmem:[#allocation3 + $0x20] sm:$0xff] %vm1476_vm0, %v1464_v25 }
 0x13b   : > { %v1418_v14 = vpop.permute.xlu1 %1417 }
 0x13c   : > { %v1467_v30 = vmul.f32 %v4543_v31, %v1418_v14  ;;  %v1413_v36 = vpop.permute.xlu0 %1412 }
 0x13d   : > { %v1466_v38 = vmul.f32 %v4545_v29, %v1413_v36 }
 0x13e   : > { %1484 = vst.msk [vmem:[#allocation3 + $0x38] sm:$0xff] %vm1476_vm0, %v1467_v30 }
 0x13f   : > { %1483 = vst.msk [vmem:[#allocation3 + $0x30] sm:$0xff] %vm1476_vm0, %v1466_v38 }
 0x143   : > { %v1428_v18 = vpop.permute.xlu1 %1427 }
 0x144   : > { %v1469_v40 = vmul.f32 %v4547_v17, %v1428_v18  ;;  %v1423_v50 = vpop.permute.xlu0 %1422 }
 0x145   : > { %v1468_v21 = vmul.f32 %v4549_v34, %v1423_v50 }
 0x146   : > { %1486 = vst.msk [vmem:[#allocation3 + $0x48] sm:$0xff] %vm1476_vm0, %v1469_v40 }
 0x147   : > { %1485 = vst.msk [vmem:[#allocation3 + $0x40] sm:$0xff] %vm1476_vm0, %v1468_v21  ;;  %v1438_v54 = vpop.permute.xlu1 %1437 }
 0x148   : > { %v1471_v48 = vmul.f32 %v4551_v53, %v1438_v54  ;;  %v1433_v4 = vpop.permute.xlu0 %1432 }
 0x149   : > { %v1470_v19 = vmul.f32 %v4553_v47, %v1433_v4 }
 0x14a   : > { %1488 = vst.msk [vmem:[#allocation3 + $0x58] sm:$0xff] %vm1476_vm0, %v1471_v48 }
 0x14b   : > { %1487 = vst.msk [vmem:[#allocation3 + $0x50] sm:$0xff] %vm1476_vm0, %v1470_v19 }
 0x14c   : > { %v1448_v56 = vpop.permute.xlu1 %1447 }
 0x14d   : > { %v1473_v41 = vmul.f32 %v4555_v55, %v1448_v56 }
 0x14e   : > { %v1443_v43 = vpop.permute.xlu0 %1442 }
 0x14f   : > { %v1472_v10 = vmul.f32 %v4557_v57, %v1443_v43  ;;  %1490 = vst.msk [vmem:[#allocation3 + $0x68] sm:$0xff] %vm1476_vm0, %v1473_v41 }
 0x151   : > { %1489 = vst.msk [vmem:[#allocation3 + $0x60] sm:$0xff] %vm1476_vm0, %v1472_v10  ;;  %v1458_v59 = vpop.permute.xlu1 %1457 }
 0x152   : > { %v1453_v60 = vpop.permute.xlu0 %1452  ;;  %v1475_v22 = vmul.f32 %v4559_v58, %v1458_v59 }
 0x153   : > { %v1474_v61 = vmul.f32 %v4561_v5, %v1453_v60 }
 0x154   : > { %1492 = vst.msk [vmem:[#allocation3 + $0x78] sm:$0xff] %vm1476_vm0, %v1475_v22 }
 0x155   : > { %1491 = vst.msk [vmem:[#allocation3 + $0x70] sm:$0xff] %vm1476_vm0, %v1474_v61 }
 0x156 PF: > { %v4564_v62 = vld [vmem:[%s4957_s16 + $0x4] ss:$8 sps:$4 sm:$0xff]   ;;  %v4566_v45 = vld [vmem:[%s4957_s16] ss:$8 sps:$4 sm:$0xff]   ;;  %v4778_v9 = vmov 0   ;;  %s5678_s25 = sld [smem:[#allocation41_spill]] }
 0x157   : > { %1668 = vmatprep.mubr.bf16.mxu0 %v4778_v9  ;;  %4563 = vset.pattern.permute.xlu1 %v4778_v9  ;;  %v4567_v49 = vld [vmem:[%s4957_s16 + $0x14] ss:$8 sps:$4 sm:$0xff]   ;;  %v4569_v0 = vld [vmem:[%s4957_s16 + $0x10] ss:$8 sps:$4 sm:$0xff]   ;;  %v4570_v1 = vld [vmem:[%s4957_s16 + $0x24] ss:$8 sps:$4 sm:$0xff]  }
 0x158   : > { %1636 = vmatprep.subr.bf16.mxu0 %v4564_v62  ;;  %4562 = vset.pattern.permute.xlu0 %v4778_v9  ;;  %v4572_v51 = vld [vmem:[%s4957_s16 + $0x20] ss:$8 sps:$4 sm:$0xff]   ;;  %v4573_v7 = vld [vmem:[%s4957_s16 + $0x34] ss:$8 sps:$4 sm:$0xff]   ;;  %v4575_v2 = vld [vmem:[%s4957_s16 + $0x30] ss:$8 sps:$4 sm:$0xff]  }
 0x159   : > { %1637 = vmatpush1.bf16.msra.mxu0 %v4566_v45  ;;  %v5234_v3 = vld [vmem:[#allocation2] sm:$0xff]  ;;  %v5236_v20 = vld [vmem:[#allocation2 + $0x8] sm:$0xff]  ;;  %v4579_v27 = vld [vmem:[%s4957_s16 + $0x54] ss:$8 sps:$4 sm:$0xff]   ;;  %vm1937_vm5 = vcmask 523264   ;;  %vm2059_vm6 = vcmask 130048  }
 0x15a   : > { %1638 = vmatprep.subr.bf16.mxu0 %v4567_v49  ;;  %v1497_v6 = vand.u32 2147483647, %v5234_v3  ;;  %v4576_v13 = vld [vmem:[%s4957_s16 + $0x44] ss:$8 sps:$4 sm:$0xff]   ;;  %v1498_v23 = vand.u32 2147483647, %v5236_v20 }
 0x15b   : > { %v4578_v25 = vld [vmem:[%s4957_s16 + $0x40] ss:$8 sps:$4 sm:$0xff]   ;;  %v4581_v14 = vld [vmem:[%s4957_s16 + $0x50] ss:$8 sps:$4 sm:$0xff]   ;;  %v4582_v29 = vld [vmem:[%s4957_s16 + $0x64] ss:$8 sps:$4 sm:$0xff]  }
 0x15c   : > { %v1754_v12 = vld [vmem:[%s5678_s25 + $0x10] sm:$0xff]  ;;  %v1752_v8 = vld [vmem:[%s5678_s25] sm:$0xff]  ;;  %v1499_v46 = vsub.f32 0.0, %v1497_v6  ;;  %v1755_v24 = vld [vmem:[%s5678_s25 + $0x18] sm:$0xff]  ;;  %v1500_v15 = vsub.f32 0.0, %v1498_v23  ;;  %v1495_v52 = vmax.f32 %v5234_v3, 0.0 }
 0x15d   : > { %1639 = vmatpush1.bf16.msra.mxu0 %v4569_v0  ;;  %1778 = vperm.xlu1 %4563, %v1754_v12   ;;  %v1753_v16 = vld [vmem:[%s5678_s25 + $0x8] sm:$0xff]  ;;  %v1756_v28 = vld [vmem:[%s5678_s25 + $0x20] sm:$0xff]  ;;  %v1759_v32 = vld [vmem:[%s5678_s25 + $0x38] sm:$0xff]  ;;  %v1496_v53 = vmax.f32 %v5236_v20, 0.0  ;;  %v4779_v12 = vmov 0.0  }
 0x15e   : > { %1640 = vmatprep.subr.bf16.mxu0 %v4570_v1  ;;  %1772 = vperm.xlu0 %4562, %v1752_v8   ;;  %v1501_v26 = vmul.f32 1.442695, %v1499_v46  ;;  %v1503_v11 = vmul.f32 1.442695, %v1500_v15  ;;  %v1757_v31 = vld [vmem:[%s5678_s25 + $0x28] sm:$0xff]  ;;  %v1758_v35 = vld [vmem:[%s5678_s25 + $0x30] sm:$0xff] }
 0x15f   : > { %v4584_v30 = vld [vmem:[%s4957_s16 + $0x60] ss:$8 sps:$4 sm:$0xff]   ;;  %v4585_v36 = vld [vmem:[%s4957_s16 + $0x74] ss:$8 sps:$4 sm:$0xff]   ;;  %v4587_v63 = vld [vmem:[%s4957_s16 + $0x70] ss:$8 sps:$4 sm:$0xff]  }
 0x160   : > { %4632 = vpow2.f32 %v1501_v26  ;;  %v1761_v37 = vld [vmem:[%s5678_s25 + $0x48] sm:$0xff]  ;;  %v1760_v38 = vld [vmem:[%s5678_s25 + $0x40] sm:$0xff]  ;;  %v1763_v44 = vld [vmem:[%s5678_s25 + $0x58] sm:$0xff] }
 0x161   : > { %1641 = vmatpush1.bf16.msra.mxu0 %v4572_v51  ;;  %1781 = vperm.xlu1 %4563, %v1755_v24   ;;  %4634 = vpow2.f32 %v1503_v11  ;;  %v1762_v21 = vld [vmem:[%s5678_s25 + $0x50] sm:$0xff]  ;;  %v1765_v48 = vld [vmem:[%s5678_s25 + $0x68] sm:$0xff]  ;;  %v1764_v19 = vld [vmem:[%s5678_s25 + $0x60] sm:$0xff] }
 0x162   : > { %1642 = vmatprep.subr.bf16.mxu0 %v4573_v7  ;;  %1775 = vperm.xlu0 %4562, %v1753_v16   ;;  %v1767_v56 = vld [vmem:[%s5678_s25 + $0x78] sm:$0xff]  ;;  %v1766_v57 = vld [vmem:[%s5678_s25 + $0x70] sm:$0xff]  ;;  %v4588_v0 = vld [vmem:[%s4954_s15] sm:$0xff]   ;;  %v1546_v7 = vlaneseq }
 0x163   : > { %4226 = vmatprep.subr.bf16.mxu1 %v4588_v0  ;;  %v4589_v1 = vld [vmem:[%s4954_s15 + $0x8] sm:$0xff]   ;;  %v4591_v6 = vld [vmem:[%s4954_s15 + $0x18] sm:$0xff]   ;;  %v1889_v23 = vld [vmem:[#allocation3] sm:$0xff] }
 0x164   : > { %4227 = vmatpush3.bf16.msra.mxu1 %v4588_v0  ;;  %v5281_v3 = vand.u32 127, %v1546_v7  ;;  %v1890_v46 = vld [vmem:[#allocation3 + $0x8] sm:$0xff]  ;;  %v1891_v15 = vld [vmem:[#allocation3 + $0x10] sm:$0xff]  ;;  %v1892_v16 = vld [vmem:[#allocation3 + $0x18] sm:$0xff] }
 0x165   : > { %1643 = vmatpush1.bf16.msra.mxu0 %v4575_v2  ;;  %1787 = vperm.xlu1 %4563, %v1757_v31   ;;  %v4590_v2 = vld [vmem:[%s4954_s15 + $0x10] sm:$0xff]   ;;  %v1906_v11 = vpack.c.bf16 %v1892_v16, %v1891_v15  ;;  %s5683_s15 = sld [smem:[#allocation42_spill]] }
 0x166   : > { %1644 = vmatprep.subr.bf16.mxu0 %v4576_v13  ;;  %1784 = vperm.xlu0 %4562, %v1756_v28   ;;  %v1893_v26 = vld [vmem:[#allocation3 + $0x20] sm:$0xff]  ;;  %v1895_v28 = vld [vmem:[#allocation3 + $0x30] sm:$0xff] }
 0x167   : > { %4228 = vmatprep.subr.bf16.mxu1 %v4589_v1 }
 0x168   : > { %4229 = vmatpush3.bf16.msra.mxu1 %v4589_v1 }
 0x169   : > { %1645 = vmatpush1.bf16.msra.mxu0 %v4578_v25  ;;  %1793 = vperm.xlu1 %4563, %v1759_v32   ;;  %v1905_v25 = vpack.c.bf16 %v1890_v46, %v1889_v23  ;;  %v1897_v32 = vld [vmem:[#allocation3 + $0x40] sm:$0xff] }
 0x16a   : > { %1646 = vmatprep.subr.bf16.mxu0 %v4579_v27  ;;  %1790 = vperm.xlu0 %4562, %v1758_v35   ;;  %v4633_v42 = vpop.eup %4632  ;;  %v1894_v27 = vld [vmem:[#allocation3 + $0x28] sm:$0xff] }
 0x16b   : > { %v4635_v33 = vpop.eup %4634  ;;  %v1505_v17 = vadd.f32 1.0, %v4633_v42  ;;  %v1508_v18 = vmul.f32 -0.5, %v4633_v42  ;;  %v1511_v34 = vand.u32 2147483647, %v4633_v42  ;;  %4230 = vmatprep.subr.bf16.mxu1 %v4590_v2  ;;  %4234 = vmatprep.mubr.msk.bf16.mxu1 %vm1937_vm5, %v1905_v25  ;;  %v1907_v31 = vpack.c.bf16 %v1894_v27, %v1893_v26  ;;  %v1898_v35 = vld [vmem:[#allocation3 + $0x48] sm:$0xff] }
 0x16c   : > { %v1514_v39 = vadd.f32 1.0, %v4635_v33  ;;  %v1517_v40 = vmul.f32 -0.5, %v4635_v33  ;;  %v1520_v50 = vand.u32 2147483647, %v4635_v33  ;;  %4231 = vmatpush3.bf16.msra.mxu1 %v4590_v2 }
 0x16d   : > { %1647 = vmatpush1.bf16.msra.mxu0 %v4581_v14  ;;  %1799 = vperm.xlu1 %4563, %v1761_v37   ;;  %4636 = vlog2.f32 %v1505_v17  ;;  %v1509_v54 = vadd.f32 1.0, %v1508_v18  ;;  %vm5263_vm1 = vcmp.lt.f32.partialorder %v1511_v34, 0.0004427343  ;;  %v1896_v14 = vld [vmem:[#allocation3 + $0x38] sm:$0xff]  ;;  %v5298_v34 = vshrl.u32 %v1546_v7, 7 }
 0x16e   : > { %1648 = vmatprep.subr.bf16.mxu0 %v4582_v29  ;;  %1796 = vperm.xlu0 %4562, %v1760_v38   ;;  %4638 = vlog2.f32 %v1514_v39  ;;  %v1518_v47 = vadd.f32 1.0, %v1517_v40  ;;  %vm5268_vm2 = vcmp.lt.f32.partialorder %v1520_v50, 0.0004427343  ;;  %v1908_v29 = vpack.c.bf16 %v1896_v14, %v1895_v28  ;;  %v1900_v37 = vld [vmem:[#allocation3 + $0x58] sm:$0xff]  ;;  %v5302_v40 = vld [vmem:[%s4962_s23] sm:$0x3] }
 0x16f   : > { %v1510_v41 = vmul.f32 %v4633_v42, %v1509_v54  ;;  %4232 = vmatprep.subr.bf16.mxu1 %v4591_v6  ;;  %v1902_v42 = vld [vmem:[#allocation3 + $0x68] sm:$0xff]  ;;  %v1904_v17 = vld [vmem:[#allocation3 + $0x78] sm:$0xff]  ;;  %v1552_v39 = vsub.s32 1, %v5298_v34 }
 0x170   : > { %v1519_v10 = vmul.f32 %v4635_v33, %v1518_v47  ;;  %4233 = vmatpush3.bf16.msra.mxu1 %v4591_v6  ;;  %v1903_v33 = vld [vmem:[#allocation3 + $0x70] sm:$0xff] }
 0x171   : > { %1649 = vmatpush1.bf16.msra.mxu0 %v4584_v30  ;;  %1805 = vperm.xlu1 %4563, %v1763_v44   ;;  %v1909_v30 = vpack.c.bf16 %v1898_v35, %v1897_v32  ;;  %v1912_v18 = vpack.c.bf16 %v1904_v17, %v1903_v33  ;;  %v1553_v50 = vrot.slane %v5302_v40, %v1552_v39 }
 0x172   : > { %1650 = vmatprep.subr.bf16.mxu0 %v4585_v36  ;;  %1802 = vperm.xlu0 %4562, %v1762_v21   ;;  %v1899_v36 = vld [vmem:[#allocation3 + $0x50] sm:$0xff] }
 0x173   : > { %4268 = vmatprep.subr.bf16.mxu1 %v4779_v12  ;;  %4235 = vmatmul.mubr.msk.bf16.vlgmr.msra.gmra.mrb[0].mxu1 %vm1937_vm5, %v1906_v11  ;;  %v1910_v38 = vpack.c.bf16 %v1900_v37, %v1899_v36 }
 0x174   : > { %4238 = vmatprep.mubr.msk.bf16.mxu1 %vm1937_vm5, %v1907_v31 }
 0x175   : > { %1651 = vmatpush1.bf16.msra.mxu0 %v4587_v63  ;;  %1811 = vperm.xlu1 %4563, %v1765_v48   ;;  %v1901_v63 = vld [vmem:[#allocation3 + $0x60] sm:$0xff] }
 0x176   : > { %1808 = vperm.xlu0 %4562, %v1764_v19   ;;  %v1911_v44 = vpack.c.bf16 %v1902_v42, %v1901_v63 }
 0x177   : > { %v4637_v43 = vpop.eup %4636 }
 0x178   : > { %v4639_v58 = vpop.eup %4638  ;;  %v1507_v5 = vmul.f32 0.6931472, %v4637_v43 }
 0x179   : > { %1817 = vperm.xlu1 %4563, %v1767_v56   ;;  %v1516_v59 = vmul.f32 0.6931472, %v4639_v58 }
 0x17a   : > { %1814 = vperm.xlu0 %4562, %v1766_v57   ;;  %v1513_v60 = vsel %vm5263_vm1, %v1510_v41, %v1507_v5 }
 0x17b   : > { %v1522_v22 = vsel %vm5268_vm2, %v1519_v10, %v1516_v59  ;;  %v1523_v61 = vadd.f32 %v1513_v60, %v1495_v52  ;;  %4239 = vmatmul.mubr.msk.bf16.gmra.mrb[4].mxu1 %vm1937_vm5, %v1908_v29 }
 0x17c   : > { %v1524_v62 = vadd.f32 %v1522_v22, %v1496_v53  ;;  %4242 = vmatprep.mubr.msk.bf16.mxu1 %vm1937_vm5, %v1909_v30 }
 0x17d   : > { %v3986_v45 = vadd.f32 -0.6931472, %v1523_v61 }
 0x17e   : > { %v3987_v9 = vadd.f32 -0.6931472, %v1524_v62 }
 0x180   : > { %v1543_v49 = vpack.c.bf16 %v3987_v9, %v3986_v45 }
 0x182   : > { %1669 = vmatmul.mubr.bf16.vlgmr.msra.gmra.mrb[0].mxu0 %v1543_v49 }
 0x183   : > { %4243 = vmatmul.mubr.msk.bf16.gmra.mrb[8].mxu1 %vm1937_vm5, %v1910_v38 }
 0x184   : > { %4246 = vmatprep.mubr.msk.bf16.mxu1 %vm1937_vm5, %v1911_v44 }
 0x18b   : > { %4247 = vmatmul.mubr.msk.bf16.gmra.mrb[12].mxu1 %vm1937_vm5, %v1912_v18 }
 0x1dc   : > { %v1779_v10 = vpop.permute.xlu1 %1778 }
 0x1dd   : > { %v1773_v51 = vpop.permute.xlu0 %1772  ;;  %vm1821_vm9 = vcmp.eq.s32.totalorder %v5281_v3, %v1779_v10 }
 0x1de   : > { %vm1819_vm3 = vcmp.eq.s32.totalorder %v5281_v3, %v1773_v51  ;;  %v4010_v28 = vsel %vm1821_vm9, 1.0, %v4779_v12 }
 0x1df   : > { %v4008_v8 = vsel %vm1819_vm3, 1.0, %v4779_v12 }
 0x1e0   : > { %v1782_v22 = vpop.permute.xlu1 %1781 }
 0x1e1   : > { %v1776_v20 = vpop.permute.xlu0 %1775  ;;  %vm1822_vm10 = vcmp.eq.s32.totalorder %v5281_v3, %v1782_v22 }
 0x1e2   : > { %vm1820_vm4 = vcmp.eq.s32.totalorder %v5281_v3, %v1776_v20  ;;  %v4011_v14 = vsel %vm1822_vm10, 1.0, %v4779_v12 }
 0x1e3   : > { %v4009_v13 = vsel %vm1820_vm4, 1.0, %v4779_v12  ;;  %v1868_v36 = vpack.c.bf16 %v4011_v14, %v4010_v28 }
 0x1e4   : > { %v1867_v24 = vpack.c.bf16 %v4009_v13, %v4008_v8  ;;  %v1788_v49 = vpop.permute.xlu1 %1787 }
 0x1e5   : > { %v1785_v0 = vpop.permute.xlu0 %1784  ;;  %vm1824_vm11 = vcmp.eq.s32.totalorder %v5281_v3, %v1788_v49 }
 0x1e6   : > { %4252 = vmatprep.mubr.msk.bf16.mxu0 %vm2059_vm6, %v1867_v24  ;;  %vm1823_vm12 = vcmp.eq.s32.totalorder %v5281_v3, %v1785_v0  ;;  %v4013_v35 = vsel %vm1824_vm11, 1.0, %v4779_v12 }
 0x1e7   : > { %v4012_v30 = vsel %vm1823_vm12, 1.0, %v4779_v12 }
 0x1e8   : > { %v1794_v16 = vpop.permute.xlu1 %1793  ;;  %v1869_v37 = vpack.c.bf16 %v4013_v35, %v4012_v30 }
 0x1e9   : > { %v1791_v25 = vpop.permute.xlu0 %1790  ;;  %vm1826_vm13 = vcmp.eq.s32.totalorder %v5281_v3, %v1794_v16 }
 0x1ea   : > { %vm1825_vm14 = vcmp.eq.s32.totalorder %v5281_v3, %v1791_v25  ;;  %v4015_v42 = vsel %vm1826_vm13, 1.0, %v4779_v12 }
 0x1eb   : > { %v4014_v44 = vsel %vm1825_vm14, 1.0, %v4779_v12 }
 0x1ec   : > { %v1800_v29 = vpop.permute.xlu1 %1799  ;;  %v1870_v18 = vpack.c.bf16 %v4015_v42, %v4014_v44 }
 0x1ed   : > { %v1797_v32 = vpop.permute.xlu0 %1796  ;;  %vm1828_vm15 = vcmp.eq.s32.totalorder %v5281_v3, %v1800_v29 }
 0x1ee   : > { %vm1827_vm0 = vcmp.eq.s32.totalorder %v5281_v3, %v1797_v32  ;;  %v4017_v33 = vsel %vm1828_vm15, 1.0, %v4779_v12 }
 0x1ef   : > { %v4016_v17 = vsel %vm1827_vm0, 1.0, %v4779_v12 }
 0x1f0   : > { %v1806_v38 = vpop.permute.xlu1 %1805  ;;  %v1871_v39 = vpack.c.bf16 %v4017_v33, %v4016_v17 }
 0x1f1   : > { %v1803_v63 = vpop.permute.xlu0 %1802  ;;  %vm1830_vm1 = vcmp.eq.s32.totalorder %v5281_v3, %v1806_v38 }
 0x1f2   : > { %vm1829_vm2 = vcmp.eq.s32.totalorder %v5281_v3, %v1803_v63 }
 0x255   : > { %v5305_v52 = vpop.f32.mrb[0].mxu0 }
 0x256   : > { %v1672_v21 = vpop.f32.mrb[1].mxu0 }
 0x257   : > { %v1673_v53 = vadd.f32 %v1672_v21, %v1553_v50  ;;  %v5307_v54 = vpop.f32.mrb[2].mxu0  ;;  %v1809_v21 = vpop.permute.xlu0 %1808 }
 0x258   : > { %v1676_v47 = vpop.f32.mrb[3].mxu0  ;;  %vm1831_vm4 = vcmp.eq.s32.totalorder %v5281_v3, %v1809_v21 }
 0x259   : > { %v1684_v48 = vand.u32 2147483647, %v1673_v53  ;;  %v1677_v4 = vadd.f32 %v1676_v47, %v1553_v50  ;;  %v1680_v6 = vmax.f32 %v1673_v53, 0.0  ;;  %v1812_v50 = vpop.permute.xlu1 %1811  ;;  %v4019_v53 = vsel %vm1830_vm1, 1.0, %v4779_v12 }
 0x25a   : > { %vm1832_vm3 = vcmp.eq.s32.totalorder %v5281_v3, %v1812_v50  ;;  %v4018_v47 = vsel %vm1829_vm2, 1.0, %v4779_v12 }
 0x25b   : > { %v1688_v19 = vsub.f32 0.0, %v1684_v48  ;;  %v1686_v55 = vand.u32 2147483647, %v1677_v4  ;;  %v1682_v24 = vmax.f32 %v1677_v4, 0.0  ;;  %v4021_v48 = vsel %vm1832_vm3, 1.0, %v4779_v12 }
 0x25c   : > { %v4020_v4 = vsel %vm1831_vm4, 1.0, %v4779_v12 }
 0x25d   : > { %v1693_v56 = vmul.f32 1.442695, %v1688_v19  ;;  %v1690_v57 = vsub.f32 0.0, %v1686_v55  ;;  %v1818_v19 = vpop.permute.xlu1 %1817  ;;  %v1815_v55 = vpop.permute.xlu0 %1814 }
 0x25e   : > { %vm1834_vm5 = vcmp.eq.s32.totalorder %v5281_v3, %v1818_v19 }
 0x25f   : > { %4640 = vpow2.f32 %v1693_v56  ;;  %v1697_v41 = vmul.f32 1.442695, %v1690_v57  ;;  %v1872_v56 = vpack.c.bf16 %v4019_v53, %v4018_v47  ;;  %v1873_v57 = vpack.c.bf16 %v4021_v48, %v4020_v4 }
 0x261   : > { %4642 = vpow2.f32 %v1697_v41  ;;  %v4023_v41 = vsel %vm1834_vm5, 1.0, %v4779_v12 }
 0x269   : > { %v4641_v43 = vpop.eup %4640 }
 0x26a   : > { %v1708_v58 = vadd.f32 1.0, %v4641_v43  ;;  %v1711_v60 = vmul.f32 -0.5, %v4641_v43  ;;  %v1714_v45 = vand.u32 2147483647, %v4641_v43 }
 0x26b   : > { %v4643_v5 = vpop.eup %4642 }
 0x26c   : > { %4644 = vlog2.f32 %v1708_v58  ;;  %v1726_v59 = vadd.f32 1.0, %v4643_v5  ;;  %v1729_v61 = vmul.f32 -0.5, %v4643_v5  ;;  %v1712_v62 = vadd.f32 1.0, %v1711_v60  ;;  %v4236_v58 = vpop.f32.mrb[0].mxu1 }
 0x26d   : > { %v1732_v51 = vand.u32 2147483647, %v4643_v5  ;;  %vm1715_vm7 = vcmp.lt.f32.partialorder %v1714_v45, 0.0004427343 }
 0x26e   : > { %4646 = vlog2.f32 %v1726_v59  ;;  %v1730_v9 = vadd.f32 1.0, %v1729_v61  ;;  %v1713_v2 = vmul.f32 %v4641_v43, %v1712_v62 }
 0x26f   : > { %vm1733_vm8 = vcmp.lt.f32.partialorder %v1732_v51, 0.0004427343 }
 0x270   : > { %v1731_v23 = vmul.f32 %v4643_v5, %v1730_v9  ;;  %v1996_v5 = vpop.f32.mrb[1].mxu1 }
 0x271   : > { %v4237_v59 = vpop.f32.mrb[2].mxu1 }
 0x272   : > { %v1999_v60 = vpop.f32.mrb[3].mxu1 }
 0x273   : > { %v4240_v22 = vpop.f32.mrb[4].mxu1 }
 0x274   : > { %v2012_v61 = vpop.f32.mrb[5].mxu1 }
 0x275   : > { %v4241_v62 = vpop.f32.mrb[6].mxu1 }
 0x276   : > { %v4645_v1 = vpop.eup %4644  ;;  %v2015_v45 = vpop.f32.mrb[7].mxu1 }
 0x277   : > { %v1710_v7 = vmul.f32 0.6931472, %v4645_v1 }
 0x278   : > { %v4647_v20 = vpop.eup %4646 }
 0x279   : > { %v1716_v8 = vsel %vm1715_vm7, %v1713_v2, %v1710_v7  ;;  %v1728_v13 = vmul.f32 0.6931472, %v4647_v20  ;;  %vm1833_vm7 = vcmp.eq.s32.totalorder %v5281_v3, %v1815_v55  ;;  %v4244_v3 = vpop.f32.mrb[8].mxu1 }
 0x27a   : > { %v1736_v46 = vadd.f32 %v1716_v8, %v1680_v6  ;;  %v4022_v43 = vsel %vm1833_vm7, 1.0, %v4779_v12  ;;  %v2028_v9 = vpop.f32.mrb[9].mxu1 }
 0x27b   : > { %v1734_v15 = vsel %vm1733_vm8, %v1731_v23, %v1728_v13  ;;  %v1874_v10 = vpack.c.bf16 %v4023_v41, %v4022_v43  ;;  %v4245_v49 = vpop.f32.mrb[10].mxu1  ;;  %vm4780_vm8 = vmmov 0   ;;  %v4024_v43 = vld [vmem:[%s5683_s15] ss:$0 sm:$0xff] }
 0x27c   : > { %v1738_v26 = vadd.f32 %v1734_v15, %v1682_v24  ;;  %v4005_v27 = vadd.f32 -0.6931472, %v1736_v46  ;;  %v2031_v0 = vpop.f32.mrb[11].mxu1  ;;  %4284 = vmatprep.mubr.msk.bf16.mxu1 %vm4780_vm8, %v4779_v12 }
 0x27d   : > { %v4248_v1 = vpop.f32.mrb[12].mxu1 }
 0x27e   : > { %v4007_v11 = vadd.f32 -0.6931472, %v1738_v26  ;;  %v2044_v51 = vpop.f32.mrb[13].mxu1 }
 0x27f   : > { %v4249_v7 = vpop.f32.mrb[14].mxu1 }
 0x280   : > { %v1743_v31 = vpack.c.bf16 %v4007_v11, %v4005_v27  ;;  %v2047_v2 = vpop.f32.mrb[15].mxu1 }
 0x282   : > { %4250 = vmatprep.subr.bf16.mxu0 %v1743_v31 }
 0x283   : > { %4251 = vmatpush3.bf16.msra.mxu0 %v1743_v31 }
 0x284   : > { %4288 = vmatprep.subr.bf16.mxu0 %v4779_v12 }
 0x286   : > { %4253 = vmatmul.mubr.msk.bf16.vlgmr.msra.gmra.mrb[4].mxu0 %vm2059_vm6, %v1868_v36 }
 0x287   : > { %4256 = vmatprep.mubr.msk.bf16.mxu0 %vm2059_vm6, %v1869_v37 }
 0x28e   : > { %4257 = vmatmul.mubr.msk.bf16.gmra.mrb[8].mxu0 %vm2059_vm6, %v1870_v18 }
 0x28f   : > { %4260 = vmatprep.mubr.msk.bf16.mxu0 %vm2059_vm6, %v1871_v39 }
 0x296   : > { %4261 = vmatmul.mubr.msk.bf16.gmra.mrb[12].mxu0 %vm2059_vm6, %v1872_v56 }
 0x297   : > { %4264 = vmatprep.mubr.msk.bf16.mxu0 %vm2059_vm6, %v1873_v57  ;;  %v1877_v57 = vadd.s32 8, %v5298_v34 }
 0x299   : > { %vm1883_vm9 = vcmp.eq.s32.totalorder %v1877_v57, %v4024_v43 }
 0x29e   : > { %4265 = vmatmul.mubr.msk.bf16.gmra.mrb[16].mxu0 %vm2059_vm6, %v1874_v10  ;;  %vm1882_vm6 = vcmp.eq.s32.totalorder %v5298_v34, %v4024_v43  ;;  %v4781_v10 = vmov 1.0|1.0  }
 0x29f   : > { %4304 = vmatprep.mubr.msk.bf16.mxu0 %vm4780_vm8, %v4779_v12  ;;  %vm4047_vm10 = vmpackc.low %vm1883_vm9, %vm1882_vm6 }
 0x359   : > { %v4254_v20 = vpop.f32.mrb[4].mxu0 }
 0x35a   : > { %v2183_v6 = vmul.f32 %v4254_v20, %v4236_v58  ;;  %v2118_v8 = vpop.f32.mrb[5].mxu0  ;;  %v4592_v58 = vld [vmem:[%s4965_s27] sm:$0xff]  }
 0x35b   : > { %v2181_v13 = vmul.f32 %v2118_v8, %v1996_v5  ;;  %v4255_v23 = vpop.f32.mrb[6].mxu0  ;;  %4289 = vmatpush3.bf16.msra.mxu0 %v4592_v58  ;;  %v4593_v5 = vld [vmem:[%s4965_s27 + $0x8] sm:$0xff]  }
 0x35c   : > { %v2184_v46 = vmul.f32 %v4255_v23, %v4237_v59  ;;  %v2121_v24 = vpop.f32.mrb[7].mxu0  ;;  %4290 = vmatprep.subr.bf16.mxu0 %v4779_v12  ;;  %v4594_v59 = vld [vmem:[%s4965_s27 + $0x10] sm:$0xff]  }
 0x35d   : > { %v2182_v15 = vmul.f32 %v2121_v24, %v1999_v60  ;;  %v4595_v60 = vld [vmem:[%s4965_s27 + $0x18] sm:$0xff]  }
 0x35e   : > { %v2198_v16 = vpack.c.bf16 %v2184_v46, %v2183_v6 }
 0x35f   : > { %v2197_v25 = vpack.c.bf16 %v2182_v15, %v2181_v13  ;;  %4291 = vmatpush3.bf16.msra.mxu0 %v4593_v5 }
 0x360   : > { %4292 = vmatprep.subr.bf16.mxu0 %v4779_v12 }
 0x361   : > { %v4258_v26 = vpop.f32.mrb[8].mxu0  ;;  %4269 = vmatpush3.bf16.msra.mxu1 %v2197_v25 }
 0x362   : > { %v2187_v27 = vmul.f32 %v4258_v26, %v4240_v22  ;;  %v2134_v11 = vpop.f32.mrb[9].mxu0  ;;  %4270 = vmatprep.subr.bf16.mxu1 %v4779_v12  ;;  %v4596_v22 = vld [vmem:[%s4965_s27 + $0x20] sm:$0xff]  }
 0x363   : > { %v2185_v31 = vmul.f32 %v2134_v11, %v2012_v61  ;;  %v4259_v28 = vpop.f32.mrb[10].mxu0  ;;  %4293 = vmatpush3.bf16.msra.mxu0 %v4594_v59  ;;  %v4597_v61 = vld [vmem:[%s4965_s27 + $0x28] sm:$0xff]  }
 0x364   : > { %v2188_v14 = vmul.f32 %v4259_v28, %v4241_v62  ;;  %v2137_v29 = vpop.f32.mrb[11].mxu0  ;;  %4294 = vmatprep.subr.bf16.mxu0 %v4779_v12  ;;  %v4598_v62 = vld [vmem:[%s4965_s27 + $0x30] sm:$0xff]  }
 0x365   : > { %v2186_v32 = vmul.f32 %v2137_v29, %v2015_v45  ;;  %4271 = vmatpush3.bf16.msra.mxu1 %v2198_v16  ;;  %v4599_v45 = vld [vmem:[%s4965_s27 + $0x38] sm:$0xff]  }
 0x366   : > { %v2200_v35 = vpack.c.bf16 %v2188_v14, %v2187_v27  ;;  %4272 = vmatprep.subr.bf16.mxu1 %v4779_v12 }
 0x367   : > { %v2199_v30 = vpack.c.bf16 %v2186_v32, %v2185_v31  ;;  %4295 = vmatpush3.bf16.msra.mxu0 %v4595_v60 }
 0x368   : > { %4296 = vmatprep.subr.bf16.mxu0 %v4779_v12 }
 0x369   : > { %v4262_v36 = vpop.f32.mrb[12].mxu0  ;;  %4273 = vmatpush3.bf16.msra.mxu1 %v2199_v30 }
 0x36a   : > { %v2191_v37 = vmul.f32 %v4262_v36, %v4244_v3  ;;  %v2150_v38 = vpop.f32.mrb[13].mxu0  ;;  %4274 = vmatprep.subr.bf16.mxu1 %v4779_v12  ;;  %v1548_v3 = vsub.s32 0, %v5298_v34 }
 0x36b   : > { %v2189_v63 = vmul.f32 %v2150_v38, %v2028_v9  ;;  %v4263_v42 = vpop.f32.mrb[14].mxu0  ;;  %4297 = vmatpush3.bf16.msra.mxu0 %v4596_v22 }
 0x36c   : > { %v2192_v44 = vmul.f32 %v4263_v42, %v4245_v49  ;;  %v2153_v33 = vpop.f32.mrb[15].mxu0  ;;  %4298 = vmatprep.subr.bf16.mxu0 %v4779_v12  ;;  %v1549_v9 = vrot.slane %v5302_v40, %v1548_v3 }
 0x36d   : > { %v2190_v17 = vmul.f32 %v2153_v33, %v2031_v0  ;;  %4275 = vmatpush3.bf16.msra.mxu1 %v2200_v35 }
 0x36e   : > { %v2202_v18 = vpack.c.bf16 %v2192_v44, %v2191_v37  ;;  %4276 = vmatprep.subr.bf16.mxu1 %v4779_v12  ;;  %v1671_v49 = vadd.f32 %v5305_v52, %v1549_v9  ;;  %v1675_v0 = vadd.f32 %v5307_v54, %v1549_v9 }
 0x36f   : > { %v2201_v39 = vpack.c.bf16 %v2190_v17, %v2189_v63  ;;  %4299 = vmatpush3.bf16.msra.mxu0 %v4597_v61 }
 0x370   : > { %4300 = vmatprep.subr.bf16.mxu0 %v4779_v12  ;;  %v1679_v14 = vmax.f32 %v1671_v49, 0.0  ;;  %v1681_v32 = vmax.f32 %v1675_v0, 0.0 }
 0x371   : > { %v4266_v50 = vpop.f32.mrb[16].mxu0  ;;  %4277 = vmatpush3.bf16.msra.mxu1 %v2201_v39 }
 0x372   : > { %v2195_v21 = vmul.f32 %v4266_v50, %v4248_v1  ;;  %v2166_v53 = vpop.f32.mrb[17].mxu0  ;;  %4278 = vmatprep.subr.bf16.mxu1 %v4779_v12  ;;  %v1683_v1 = vand.u32 2147483647, %v1671_v49 }
 0x373   : > { %v2193_v47 = vmul.f32 %v2166_v53, %v2044_v51  ;;  %v4267_v48 = vpop.f32.mrb[18].mxu0  ;;  %4301 = vmatpush3.bf16.msra.mxu0 %v4598_v62  ;;  %v1685_v51 = vand.u32 2147483647, %v1675_v0 }
 0x374   : > { %v2196_v4 = vmul.f32 %v4267_v48, %v4249_v7  ;;  %v2169_v19 = vpop.f32.mrb[19].mxu0  ;;  %4302 = vmatprep.subr.bf16.mxu0 %v4779_v12  ;;  %v1687_v7 = vsub.f32 0.0, %v1683_v1 }
 0x375   : > { %v2194_v55 = vmul.f32 %v2169_v19, %v2047_v2  ;;  %4279 = vmatpush3.bf16.msra.mxu1 %v2202_v18  ;;  %v1689_v2 = vsub.f32 0.0, %v1685_v51 }
 0x376   : > { %v2204_v56 = vpack.c.bf16 %v2196_v4, %v2195_v21  ;;  %4280 = vmatprep.subr.bf16.mxu1 %v4779_v12  ;;  %v1691_v20 = vmul.f32 1.442695, %v1687_v7 }
 0x377   : > { %v2203_v41 = vpack.c.bf16 %v2194_v55, %v2193_v47  ;;  %4303 = vmatpush3.bf16.msra.mxu0 %v4599_v45  ;;  %v1695_v6 = vmul.f32 1.442695, %v1689_v2 }
 0x378   : > { %4328 = vmatprep.subr.bf16.mxu0 %v4779_v12  ;;  %4648 = vpow2.f32 %v1691_v20  ;;  %v4600_v20 = vld [vmem:[%s4970_s1] sm:$0xff]  }
 0x379   : > { %4281 = vmatpush3.bf16.msra.mxu1 %v2203_v41  ;;  %4650 = vpow2.f32 %v1695_v6  ;;  %v4601_v6 = vld [vmem:[%s4970_s1 + $0x8] sm:$0xff]  }
 0x37a   : > { %4282 = vmatprep.subr.bf16.mxu1 %v4779_v12 }
 0x37d   : > { %4283 = vmatpush3.bf16.msra.mxu1 %v2204_v56 }
 0x37e   : > { %4308 = vmatprep.subr.bf16.mxu1 %v4779_v12 }
 0x380   : > { %4285 = vmatmul.mubr.msk.bf16.vlgmr.msra.gmra.mrb[16].mxu1 %vm4047_vm10, %v4781_v10 }
 0x381   : > { %4324 = vmatprep.mubr.msk.bf16.mxu1 %vm4780_vm8, %v4779_v12  ;;  %4309 = vmatpush3.bf16.msra.mxu1 %v4600_v20 }
 0x382   : > { %v4649_v8 = vpop.eup %4648  ;;  %4310 = vmatprep.subr.bf16.mxu1 %v4779_v12 }
 0x383   : > { %v4651_v13 = vpop.eup %4650  ;;  %v1699_v23 = vadd.f32 1.0, %v4649_v8  ;;  %v1702_v34 = vmul.f32 -0.5, %v4649_v8  ;;  %v1705_v54 = vand.u32 2147483647, %v4649_v8 }
 0x384   : > { %v1717_v46 = vadd.f32 1.0, %v4651_v13  ;;  %v1720_v40 = vmul.f32 -0.5, %v4651_v13  ;;  %v1723_v26 = vand.u32 2147483647, %v4651_v13 }
 0x385   : > { %4652 = vlog2.f32 %v1699_v23  ;;  %v1703_v52 = vadd.f32 1.0, %v1702_v34  ;;  %vm1706_vm11 = vcmp.lt.f32.partialorder %v1705_v54, 0.0004427343  ;;  %4311 = vmatpush3.bf16.msra.mxu1 %v4601_v6  ;;  %v4604_v23 = vld [vmem:[%s4970_s1 + $0x20] sm:$0xff]   ;;  %v4606_v34 = vld [vmem:[%s4970_s1 + $0x30] sm:$0xff]  }
 0x386   : > { %4654 = vlog2.f32 %v1717_v46  ;;  %v1721_v25 = vadd.f32 1.0, %v1720_v40  ;;  %vm1724_vm12 = vcmp.lt.f32.partialorder %v1723_v26, 0.0004427343  ;;  %4312 = vmatprep.subr.bf16.mxu1 %v4779_v12  ;;  %v4605_v46 = vld [vmem:[%s4970_s1 + $0x28] sm:$0xff]   ;;  %v4607_v40 = vld [vmem:[%s4970_s1 + $0x38] sm:$0xff]  }
 0x387   : > { %v1704_v27 = vmul.f32 %v4649_v8, %v1703_v52  ;;  %v4602_v8 = vld [vmem:[%s4970_s1 + $0x10] sm:$0xff]  }
 0x388   : > { %v1722_v28 = vmul.f32 %v4651_v13, %v1721_v25  ;;  %v4603_v13 = vld [vmem:[%s4970_s1 + $0x18] sm:$0xff]  }
 0x389   : > { %4313 = vmatpush3.bf16.msra.mxu1 %v4602_v8 }
 0x38a   : > { %4314 = vmatprep.subr.bf16.mxu1 %v4779_v12 }
 0x38d   : > { %4315 = vmatpush3.bf16.msra.mxu1 %v4603_v13 }
 0x38e   : > { %4316 = vmatprep.subr.bf16.mxu1 %v4779_v12 }
 0x38f   : > { %v4653_v24 = vpop.eup %4652 }
 0x390   : > { %v4655_v15 = vpop.eup %4654  ;;  %v1701_v16 = vmul.f32 0.6931472, %v4653_v24  ;;  %v4051_v24 = vld [vmem:[%s841_s28] ss:$0 sm:$0xff] }
 0x391   : > { %v1719_v11 = vmul.f32 0.6931472, %v4655_v15  ;;  %4317 = vmatpush3.bf16.msra.mxu1 %v4604_v23 }
 0x392   : > { %v1707_v31 = vsel %vm1706_vm11, %v1704_v27, %v1701_v16  ;;  %4318 = vmatprep.subr.bf16.mxu1 %v4779_v12 }
 0x393   : > { %v1725_v29 = vsel %vm1724_vm12, %v1722_v28, %v1719_v11  ;;  %v1735_v35 = vadd.f32 %v1707_v31, %v1679_v14 }
 0x394   : > { %v1737_v30 = vadd.f32 %v1725_v29, %v1681_v32 }
 0x395   : > { %v4004_v36 = vadd.f32 -0.6931472, %v1735_v35  ;;  %4319 = vmatpush3.bf16.msra.mxu1 %v4605_v46 }
 0x396   : > { %v4006_v42 = vadd.f32 -0.6931472, %v1737_v30  ;;  %4320 = vmatprep.subr.bf16.mxu1 %v4779_v12 }
 0x399   : > { %4321 = vmatpush3.bf16.msra.mxu1 %v4606_v34 }
 0x39a   : > { %4322 = vmatprep.subr.bf16.mxu1 %v4779_v12 }
 0x39d   : > { %4323 = vmatpush3.bf16.msra.mxu1 %v4607_v40 }
 0x39e   : > { %4348 = vmatprep.subr.bf16.mxu1 %v4779_v12 }
 0x453   : > { %v2239_v37 = vpop.f32.mrb[16].mxu1 }
 0x454   : > { %v5382_v38 = vadd.f32 %v4004_v36, %v2239_v37  ;;  %v4286_v63 = vpop.f32.mrb[17].mxu1 }
 0x455   : > { %v2242_v44 = vpop.f32.mrb[18].mxu1 }
 0x456   : > { %v2250_v33 = vand.u32 2147483647, %v5382_v38  ;;  %v5385_v17 = vadd.f32 %v4006_v42, %v2242_v44  ;;  %v4287_v18 = vpop.f32.mrb[19].mxu1  ;;  %v2248_v61 = vmax.f32 %v5382_v38, 0.0 }
 0x458   : > { %v2252_v39 = vsub.f32 0.0, %v2250_v33  ;;  %v2251_v50 = vand.u32 2147483647, %v5385_v17  ;;  %v2249_v49 = vmax.f32 %v5385_v17, 0.0 }
 0x45a   : > { %v2254_v21 = vmul.f32 1.442695, %v2252_v39  ;;  %v2253_v53 = vsub.f32 0.0, %v2251_v50 }
 0x45c   : > { %4656 = vpow2.f32 %v2254_v21  ;;  %v2256_v47 = vmul.f32 1.442695, %v2253_v53 }
 0x45e   : > { %4658 = vpow2.f32 %v2256_v47 }
 0x466   : > { %v4657_v48 = vpop.eup %4656 }
 0x467   : > { %v2258_v4 = vadd.f32 1.0, %v4657_v48  ;;  %v2261_v56 = vmul.f32 -0.5, %v4657_v48  ;;  %v2264_v43 = vand.u32 2147483647, %v4657_v48 }
 0x468   : > { %v4659_v19 = vpop.eup %4658 }
 0x469   : > { %4660 = vlog2.f32 %v2258_v4  ;;  %v2267_v55 = vadd.f32 1.0, %v4659_v19  ;;  %v2270_v57 = vmul.f32 -0.5, %v4659_v19  ;;  %v2262_v41 = vadd.f32 1.0, %v2261_v56 }
 0x46a   : > { %v2273_v5 = vand.u32 2147483647, %v4659_v19  ;;  %vm2265_vm13 = vcmp.lt.f32.partialorder %v2264_v43, 0.0004427343 }
 0x46b   : > { %4662 = vlog2.f32 %v2267_v55  ;;  %v2271_v10 = vadd.f32 1.0, %v2270_v57  ;;  %v2263_v60 = vmul.f32 %v4657_v48, %v2262_v41 }
 0x46c   : > { %vm2274_vm14 = vcmp.lt.f32.partialorder %v2273_v5, 0.0004427343  ;;  %v4608_v5 = vld [vmem:[%s4975_s17] sm:$0xff]  }
 0x46d   : > { %v2272_v3 = vmul.f32 %v4659_v19, %v2271_v10 }
 0x473   : > { %v4661_v58 = vpop.eup %4660 }
 0x474   : > { %v2260_v59 = vmul.f32 0.6931472, %v4661_v58 }
 0x475   : > { %v4663_v22 = vpop.eup %4662 }
 0x476   : > { %v2266_v62 = vsel %vm2265_vm13, %v2263_v60, %v2260_v59  ;;  %v2269_v45 = vmul.f32 0.6931472, %v4663_v22  ;;  %v4609_v59 = vld [vmem:[%s4975_s17 + $0x8] sm:$0xff]   ;;  %v4610_v60 = vld [vmem:[%s4975_s17 + $0x10] sm:$0xff]   ;;  %v4611_v22 = vld [vmem:[%s4975_s17 + $0x18] sm:$0xff]  }
 0x477   : > { %v2276_v9 = vadd.f32 %v2266_v62, %v2248_v61  ;;  %v4612_v61 = vld [vmem:[%s4975_s17 + $0x20] sm:$0xff]   ;;  %v4613_v62 = vld [vmem:[%s4975_s17 + $0x28] sm:$0xff]  }
 0x478   : > { %v2275_v0 = vsel %vm2274_vm14, %v2272_v3, %v2269_v45  ;;  %v4614_v45 = vld [vmem:[%s4975_s17 + $0x30] sm:$0xff]   ;;  %v4615_v3 = vld [vmem:[%s4975_s17 + $0x38] sm:$0xff]   ;;  %s5684_s17 = scalar_lea.vmem %s4860_s12, %s4949_s0 }
 0x479   : > { %v2277_v1 = vadd.f32 %v2275_v0, %v2249_v49  ;;  %v4049_v51 = vadd.f32 -0.6931472, %v2276_v9  ;;  %v4062_v9 = vld [vmem:[%s849_s4] ss:$0 sm:$0xff] }
 0x47b   : > { %v4050_v7 = vadd.f32 -0.6931472, %v2277_v1 }
 0x47d   : > { %v2296_v2 = vpack.c.bf16 %v4050_v7, %v4049_v51 }
 0x47f   : > { %4305 = vmatmul.mubr.bf16.vlgmr.msra.gmra.mrb[20].mxu0 %v2296_v2 }
 0x480   : > { %4344 = vmatprep.mubr.msk.bf16.mxu0 %vm4780_vm8, %v4779_v12  ;;  %4329 = vmatpush3.bf16.msra.mxu0 %v4608_v5  ;;  %v4697_v5 = vld [vmem:[#allocation2 + $0x8] sm:$0xff] }
 0x481   : > { %4330 = vmatprep.subr.bf16.mxu0 %v4779_v12 }
 0x484   : > { %4331 = vmatpush3.bf16.msra.mxu0 %v4609_v59 }
 0x485   : > { %4332 = vmatprep.subr.bf16.mxu0 %v4779_v12 }
 0x488   : > { %4333 = vmatpush3.bf16.msra.mxu0 %v4610_v60 }
 0x489   : > { %4334 = vmatprep.subr.bf16.mxu0 %v4779_v12 }
 0x48c   : > { %4335 = vmatpush3.bf16.msra.mxu0 %v4611_v22 }
 0x48d   : > { %4336 = vmatprep.subr.bf16.mxu0 %v4779_v12 }
 0x490   : > { %4337 = vmatpush3.bf16.msra.mxu0 %v4612_v61 }
 0x491   : > { %4338 = vmatprep.subr.bf16.mxu0 %v4779_v12 }
 0x494   : > { %4339 = vmatpush3.bf16.msra.mxu0 %v4613_v62 }
 0x495   : > { %4340 = vmatprep.subr.bf16.mxu0 %v4779_v12 }
 0x498   : > { %4341 = vmatpush3.bf16.msra.mxu0 %v4614_v45 }
 0x499   : > { %4342 = vmatprep.subr.bf16.mxu0 %v4779_v12 }
 0x49c   : > { %4343 = vmatpush3.bf16.msra.mxu0 %v4615_v3 }
 0x49d   : > { %4368 = vmatprep.subr.bf16.mxu0 %v4779_v12 }
 0x552   : > { %v2386_v52 = vpop.f32.mrb[20].mxu0 }
 0x553   : > { %v2387_v15 = vadd.f32 %v4051_v24, %v2386_v52  ;;  %v4306_v54 = vpop.f32.mrb[21].mxu0 }
 0x554   : > { %v2389_v16 = vpop.f32.mrb[22].mxu0 }
 0x555   : > { %v2395_v25 = vand.u32 2147483647, %v2387_v15  ;;  %v2390_v26 = vadd.f32 %v4051_v24, %v2389_v16  ;;  %v4307_v27 = vpop.f32.mrb[23].mxu0  ;;  %v2393_v47 = vmax.f32 %v2387_v15, 0.0 }
 0x557   : > { %v2397_v11 = vsub.f32 0.0, %v2395_v25  ;;  %v2396_v31 = vand.u32 2147483647, %v2390_v26  ;;  %v2394_v56 = vmax.f32 %v2390_v26, 0.0 }
 0x559   : > { %v2399_v28 = vmul.f32 1.442695, %v2397_v11  ;;  %v2398_v14 = vsub.f32 0.0, %v2396_v31 }
 0x55b   : > { %4664 = vpow2.f32 %v2399_v28  ;;  %v2401_v29 = vmul.f32 1.442695, %v2398_v14 }
 0x55d   : > { %4666 = vpow2.f32 %v2401_v29 }
 0x565   : > { %v4665_v32 = vpop.eup %4664 }
 0x566   : > { %v2403_v35 = vadd.f32 1.0, %v4665_v32  ;;  %v2406_v37 = vmul.f32 -0.5, %v4665_v32  ;;  %v2409_v44 = vand.u32 2147483647, %v4665_v32 }
 0x567   : > { %v4667_v30 = vpop.eup %4666 }
 0x568   : > { %4668 = vlog2.f32 %v2403_v35  ;;  %v2412_v36 = vadd.f32 1.0, %v4667_v30  ;;  %v2415_v63 = vmul.f32 -0.5, %v4667_v30  ;;  %v2407_v42 = vadd.f32 1.0, %v2406_v37 }
 0x569   : > { %v2418_v39 = vand.u32 2147483647, %v4667_v30  ;;  %vm2410_vm15 = vcmp.lt.f32.partialorder %v2409_v44, 0.0004427343 }
 0x56a   : > { %4670 = vlog2.f32 %v2412_v36  ;;  %v2416_v33 = vadd.f32 1.0, %v2415_v63  ;;  %v2408_v21 = vmul.f32 %v4665_v32, %v2407_v42 }
 0x56b   : > { %vm2419_vm0 = vcmp.lt.f32.partialorder %v2418_v39, 0.0004427343  ;;  %v4616_v39 = vld [vmem:[%s4982_s21] sm:$0xff]  }
 0x56c   : > { %v2417_v19 = vmul.f32 %v4667_v30, %v2416_v33 }
 0x572   : > { %v4669_v18 = vpop.eup %4668 }
 0x573   : > { %v2405_v50 = vmul.f32 0.6931472, %v4669_v18 }
 0x574   : > { %v4671_v53 = vpop.eup %4670 }
 0x575   : > { %v2411_v48 = vsel %vm2410_vm15, %v2408_v21, %v2405_v50  ;;  %v2414_v4 = vmul.f32 0.6931472, %v4671_v53  ;;  %v4617_v50 = vld [vmem:[%s4982_s21 + $0x8] sm:$0xff]   ;;  %v4618_v21 = vld [vmem:[%s4982_s21 + $0x10] sm:$0xff]   ;;  %v4619_v53 = vld [vmem:[%s4982_s21 + $0x18] sm:$0xff]  }
 0x576   : > { %v2421_v55 = vadd.f32 %v2411_v48, %v2393_v47  ;;  %v4620_v47 = vld [vmem:[%s4982_s21 + $0x20] sm:$0xff]   ;;  %v4621_v48 = vld [vmem:[%s4982_s21 + $0x28] sm:$0xff]  }
 0x577   : > { %v2420_v57 = vsel %vm2419_vm0, %v2417_v19, %v2414_v4  ;;  %v4622_v4 = vld [vmem:[%s4982_s21 + $0x30] sm:$0xff]   ;;  %v4623_v19 = vld [vmem:[%s4982_s21 + $0x38] sm:$0xff]  }
 0x578   : > { %v2422_v41 = vadd.f32 %v2420_v57, %v2394_v56  ;;  %v4060_v43 = vadd.f32 -0.6931472, %v2421_v55  ;;  %v4082_v55 = vld [vmem:[%s860_s5] ss:$0 sm:$0xff]  ;;  %s5685_s5 = scalar_lea.vmem %s4885_s13, %s4949_s0 }
 0x579   : > { %v4073_v56 = vld [vmem:[%s5684_s17] ss:$0 sm:$0xff]  ;;  %v2693_v59 = vmul.f32 %v4697_v5, %v4082_v55 }
 0x57a   : > { %v4061_v10 = vadd.f32 -0.6931472, %v2422_v41  ;;  %v4696_v57 = vld [vmem:[#allocation2] sm:$0xff] }
 0x57b   : > { %v2692_v41 = vmul.f32 %v4696_v57, %v4082_v55 }
 0x57c   : > { %v2441_v58 = vpack.c.bf16 %v4061_v10, %v4060_v43 }
 0x57e   : > { %4325 = vmatmul.mubr.bf16.vlgmr.msra.gmra.mrb[20].mxu1 %v2441_v58 }
 0x57f   : > { %4364 = vmatprep.mubr.msk.bf16.mxu1 %vm4780_vm8, %v4779_v12  ;;  %4349 = vmatpush3.bf16.msra.mxu1 %v4616_v39 }
 0x580   : > { %4350 = vmatprep.subr.bf16.mxu1 %v4779_v12 }
 0x583   : > { %4351 = vmatpush3.bf16.msra.mxu1 %v4617_v50 }
 0x584   : > { %4352 = vmatprep.subr.bf16.mxu1 %v4779_v12 }
 0x587   : > { %4353 = vmatpush3.bf16.msra.mxu1 %v4618_v21 }
 0x588   : > { %4354 = vmatprep.subr.bf16.mxu1 %v4779_v12 }
 0x58b   : > { %4355 = vmatpush3.bf16.msra.mxu1 %v4619_v53 }
 0x58c   : > { %4356 = vmatprep.subr.bf16.mxu1 %v4779_v12 }
 0x58f   : > { %4357 = vmatpush3.bf16.msra.mxu1 %v4620_v47 }
 0x590   : > { %4358 = vmatprep.subr.bf16.mxu1 %v4779_v12 }
 0x593   : > { %4359 = vmatpush3.bf16.msra.mxu1 %v4621_v48 }
 0x594   : > { %4360 = vmatprep.subr.bf16.mxu1 %v4779_v12 }
 0x597   : > { %4361 = vmatpush3.bf16.msra.mxu1 %v4622_v4 }
 0x598   : > { %4362 = vmatprep.subr.bf16.mxu1 %v4779_v12 }
 0x59b   : > { %4363 = vmatpush3.bf16.msra.mxu1 %v4623_v19 }
 0x651   : > { %v2531_v49 = vpop.f32.mrb[20].mxu1 }
 0x652   : > { %v2532_v0 = vadd.f32 %v4062_v9, %v2531_v49  ;;  %v4326_v1 = vpop.f32.mrb[21].mxu1 }
 0x653   : > { %v2534_v51 = vpop.f32.mrb[22].mxu1 }
 0x654   : > { %v2538_v7 = vadd.f32 %v2532_v0, %v5382_v38  ;;  %v2535_v2 = vadd.f32 %v4062_v9, %v2534_v51  ;;  %v4327_v20 = vpop.f32.mrb[23].mxu1 }
 0x656   : > { %v2542_v6 = vand.u32 2147483647, %v2538_v7  ;;  %v2539_v8 = vadd.f32 %v2535_v2, %v5385_v17  ;;  %v2540_v29 = vmax.f32 %v2538_v7, 0.0 }
 0x658   : > { %v2544_v13 = vsub.f32 0.0, %v2542_v6  ;;  %v2543_v23 = vand.u32 2147483647, %v2539_v8  ;;  %v2541_v37 = vmax.f32 %v2539_v8, 0.0 }
 0x65a   : > { %v2546_v46 = vmul.f32 1.442695, %v2544_v13  ;;  %v2545_v34 = vsub.f32 0.0, %v2543_v23 }
 0x65c   : > { %4672 = vpow2.f32 %v2546_v46  ;;  %v2548_v40 = vmul.f32 1.442695, %v2545_v34 }
 0x65e   : > { %4674 = vpow2.f32 %v2548_v40 }
 0x666   : > { %v4673_v24 = vpop.eup %4672 }
 0x667   : > { %v2550_v52 = vadd.f32 1.0, %v4673_v24  ;;  %v2553_v16 = vmul.f32 -0.5, %v4673_v24  ;;  %v2556_v26 = vand.u32 2147483647, %v4673_v24 }
 0x668   : > { %v4675_v15 = vpop.eup %4674 }
 0x669   : > { %4676 = vlog2.f32 %v2550_v52  ;;  %v2559_v54 = vadd.f32 1.0, %v4675_v15  ;;  %v2562_v38 = vmul.f32 -0.5, %v4675_v15  ;;  %v2554_v25 = vadd.f32 1.0, %v2553_v16 }
 0x66a   : > { %v2565_v17 = vand.u32 2147483647, %v4675_v15  ;;  %vm2557_vm1 = vcmp.lt.f32.partialorder %v2556_v26, 0.0004427343 }
 0x66b   : > { %4678 = vlog2.f32 %v2559_v54  ;;  %v2563_v27 = vadd.f32 1.0, %v2562_v38  ;;  %v2555_v28 = vmul.f32 %v4673_v24, %v2554_v25 }
 0x66c   : > { %vm2566_vm2 = vcmp.lt.f32.partialorder %v2565_v17, 0.0004427343 }
 0x66d   : > { %v2564_v30 = vmul.f32 %v4675_v15, %v2563_v27 }
 0x673   : > { %v4677_v11 = vpop.eup %4676 }
 0x674   : > { %v2552_v31 = vmul.f32 0.6931472, %v4677_v11 }
 0x675   : > { %v4679_v14 = vpop.eup %4678 }
 0x676   : > { %v2558_v32 = vsel %vm2557_vm1, %v2555_v28, %v2552_v31  ;;  %v2561_v35 = vmul.f32 0.6931472, %v4679_v14 }
 0x677   : > { %v2568_v36 = vadd.f32 %v2558_v32, %v2540_v29  ;;  %v4624_v32 = vld [vmem:[%s4987_s29] sm:$0xff]  }
 0x678   : > { %v2567_v63 = vsel %vm2566_vm2, %v2564_v30, %v2561_v35  ;;  %v4625_v35 = vld [vmem:[%s4987_s29 + $0x8] sm:$0xff]   ;;  %v4626_v30 = vld [vmem:[%s4987_s29 + $0x10] sm:$0xff]  }
 0x679   : > { %v2569_v42 = vadd.f32 %v2567_v63, %v2541_v37  ;;  %v4071_v44 = vadd.f32 -0.6931472, %v2568_v36  ;;  %v4627_v36 = vld [vmem:[%s4987_s29 + $0x18] sm:$0xff]   ;;  %v4628_v37 = vld [vmem:[%s4987_s29 + $0x20] sm:$0xff]   ;;  %v4629_v63 = vld [vmem:[%s4987_s29 + $0x28] sm:$0xff]  }
 0x67b   : > { %v4072_v33 = vadd.f32 -0.6931472, %v2569_v42  ;;  %v4630_v42 = vld [vmem:[%s4987_s29 + $0x30] sm:$0xff]  }
 0x67d   : > { %v2588_v18 = vpack.c.bf16 %v4072_v33, %v4071_v44  ;;  %v4631_v44 = vld [vmem:[%s4987_s29 + $0x38] sm:$0xff]   ;;  %v4085_v33 = vld [vmem:[%s868_s10] ss:$0 sm:$0xff] }
 0x67f   : > { %4345 = vmatmul.mubr.bf16.vlgmr.msra.gmra.mrb[24].mxu0 %v2588_v18 }
 0x680   : > { %4384 = vmatprep.mubr.msk.bf16.mxu0 %vm4780_vm8, %v4779_v12  ;;  %4369 = vmatpush3.bf16.msra.mxu0 %v4624_v32 }
 0x681   : > { %4370 = vmatprep.subr.bf16.mxu0 %v4779_v12 }
 0x684   : > { %4371 = vmatpush3.bf16.msra.mxu0 %v4625_v35 }
 0x685   : > { %4372 = vmatprep.subr.bf16.mxu0 %v4779_v12 }
 0x688   : > { %4373 = vmatpush3.bf16.msra.mxu0 %v4626_v30 }
 0x689   : > { %4374 = vmatprep.subr.bf16.mxu0 %v4779_v12 }
 0x68c   : > { %4375 = vmatpush3.bf16.msra.mxu0 %v4627_v36 }
 0x68d   : > { %4376 = vmatprep.subr.bf16.mxu0 %v4779_v12 }
 0x690   : > { %4377 = vmatpush3.bf16.msra.mxu0 %v4628_v37 }
 0x691   : > { %4378 = vmatprep.subr.bf16.mxu0 %v4779_v12 }
 0x694   : > { %4379 = vmatpush3.bf16.msra.mxu0 %v4629_v63 }
 0x695   : > { %4380 = vmatprep.subr.bf16.mxu0 %v4779_v12 }
 0x698   : > { %4381 = vmatpush3.bf16.msra.mxu0 %v4630_v42 }
 0x699   : > { %4382 = vmatprep.subr.bf16.mxu0 %v4779_v12 }
 0x69c   : > { %4383 = vmatpush3.bf16.msra.mxu0 %v4631_v44 }
 0x752   : > { %v2678_v43 = vpop.f32.mrb[24].mxu0 }
 0x753   : > { %v2679_v10 = vadd.f32 %v4073_v56, %v2678_v43  ;;  %v4346_v58 = vpop.f32.mrb[25].mxu0 }
 0x754   : > { %v2681_v60 = vpop.f32.mrb[26].mxu0 }
 0x755   : > { %v5457_v22 = vadd.f32 %v2692_v41, %v2679_v10  ;;  %v2682_v61 = vadd.f32 %v4073_v56, %v2681_v60  ;;  %v4347_v62 = vpop.f32.mrb[27].mxu0 }
 0x757   : > { %v2698_v45 = vand.u32 2147483647, %v5457_v22  ;;  %v5460_v3 = vadd.f32 %v2693_v59, %v2682_v61  ;;  %v2696_v16 = vmax.f32 %v5457_v22, 0.0 }
 0x759   : > { %v2700_v9 = vsub.f32 0.0, %v2698_v45  ;;  %v2699_v49 = vand.u32 2147483647, %v5460_v3  ;;  %v2697_v11 = vmax.f32 %v5460_v3, 0.0 }
 0x75b   : > { %v2702_v0 = vmul.f32 1.442695, %v2700_v9  ;;  %v2701_v1 = vsub.f32 0.0, %v2699_v49 }
 0x75d   : > { %4680 = vpow2.f32 %v2702_v0  ;;  %v2704_v51 = vmul.f32 1.442695, %v2701_v1 }
 0x75f   : > { %4682 = vpow2.f32 %v2704_v51 }
 0x767   : > { %v4681_v7 = vpop.eup %4680 }
 0x768   : > { %v2706_v2 = vadd.f32 1.0, %v4681_v7  ;;  %v2709_v8 = vmul.f32 -0.5, %v4681_v7  ;;  %v2712_v46 = vand.u32 2147483647, %v4681_v7 }
 0x769   : > { %v4683_v20 = vpop.eup %4682 }
 0x76a   : > { %4684 = vlog2.f32 %v2706_v2  ;;  %v2715_v6 = vadd.f32 1.0, %v4683_v20  ;;  %v2718_v13 = vmul.f32 -0.5, %v4683_v20  ;;  %v2710_v23 = vadd.f32 1.0, %v2709_v8 }
 0x76b   : > { %v2721_v24 = vand.u32 2147483647, %v4683_v20  ;;  %vm2713_vm3 = vcmp.lt.f32.partialorder %v2712_v46, 0.0004427343 }
 0x76c   : > { %4686 = vlog2.f32 %v2715_v6  ;;  %v2719_v34 = vadd.f32 1.0, %v2718_v13  ;;  %v2711_v15 = vmul.f32 %v4681_v7, %v2710_v23 }
 0x76d   : > { %vm2722_vm4 = vcmp.lt.f32.partialorder %v2721_v24, 0.0004427343 }
 0x76e   : > { %v2720_v26 = vmul.f32 %v4683_v20, %v2719_v34 }
 0x774   : > { %v4685_v40 = vpop.eup %4684 }
 0x775   : > { %v2708_v52 = vmul.f32 0.6931472, %v4685_v40  ;;  %v4096_v40 = vld [vmem:[%s5685_s5] ss:$0 sm:$0xff] }
 0x776   : > { %v4687_v54 = vpop.eup %4686 }
 0x777   : > { %v2714_v38 = vsel %vm2713_vm3, %v2711_v15, %v2708_v52  ;;  %v2717_v25 = vmul.f32 0.6931472, %v4687_v54 }
 0x778   : > { %v2724_v27 = vadd.f32 %v2714_v38, %v2696_v16 }
 0x779   : > { %v2723_v17 = vsel %vm2722_vm4, %v2720_v26, %v2717_v25 }
 0x77a   : > { %v2725_v31 = vadd.f32 %v2723_v17, %v2697_v11  ;;  %v4083_v28 = vadd.f32 -0.6931472, %v2724_v27 }
 0x77c   : > { %v4084_v14 = vadd.f32 -0.6931472, %v2725_v31 }
 0x77e   : > { %v2744_v29 = vpack.c.bf16 %v4084_v14, %v4083_v28 }
 0x780   : > { %4365 = vmatmul.mubr.bf16.vlgmr.msra.gmra.mrb[24].mxu1 %v2744_v29 }
 0x853   : > { %v2834_v18 = vpop.f32.mrb[24].mxu1 }
 0x854   : > { %v2835_v39 = vadd.f32 %v4085_v33, %v2834_v18  ;;  %v4366_v50 = vpop.f32.mrb[25].mxu1 }
 0x855   : > { %v2837_v21 = vpop.f32.mrb[26].mxu1 }
 0x856   : > { %v2843_v53 = vand.u32 2147483647, %v2835_v39  ;;  %v2838_v47 = vadd.f32 %v4085_v33, %v2837_v21  ;;  %v4367_v48 = vpop.f32.mrb[27].mxu1  ;;  %v2841_v1 = vmax.f32 %v2835_v39, 0.0 }
 0x858   : > { %v2845_v4 = vsub.f32 0.0, %v2843_v53  ;;  %v2844_v19 = vand.u32 2147483647, %v2838_v47  ;;  %v2842_v6 = vmax.f32 %v2838_v47, 0.0 }
 0x85a   : > { %v2847_v55 = vmul.f32 1.442695, %v2845_v4  ;;  %v2846_v56 = vsub.f32 0.0, %v2844_v19 }
 0x85c   : > { %4688 = vpow2.f32 %v2847_v55  ;;  %v2849_v57 = vmul.f32 1.442695, %v2846_v56 }
 0x85e   : > { %4690 = vpow2.f32 %v2849_v57 }
 0x866   : > { %v4689_v41 = vpop.eup %4688 }
 0x867   : > { %v2851_v12 = vadd.f32 1.0, %v4689_v41  ;;  %v2854_v58 = vmul.f32 -0.5, %v4689_v41  ;;  %v2857_v60 = vand.u32 2147483647, %v4689_v41 }
 0x868   : > { %v4691_v43 = vpop.eup %4690 }
 0x869   : > { %4692 = vlog2.f32 %v2851_v12  ;;  %v2860_v10 = vadd.f32 1.0, %v4691_v43  ;;  %v2863_v5 = vmul.f32 -0.5, %v4691_v43  ;;  %v2855_v59 = vadd.f32 1.0, %v2854_v58 }
 0x86a   : > { %v2866_v45 = vand.u32 2147483647, %v4691_v43  ;;  %vm2858_vm5 = vcmp.lt.f32.partialorder %v2857_v60, 0.0004427343 }
 0x86b   : > { %4694 = vlog2.f32 %v2860_v10  ;;  %v2864_v61 = vadd.f32 1.0, %v2863_v5  ;;  %v2856_v49 = vmul.f32 %v4689_v41, %v2855_v59 }
 0x86c   : > { %vm2867_vm7 = vcmp.lt.f32.partialorder %v2866_v45, 0.0004427343 }
 0x86d   : > { %v2865_v2 = vmul.f32 %v4691_v43, %v2864_v61 }
 0x873   : > { %v4693_v62 = vpop.eup %4692 }
 0x874   : > { %v2853_v9 = vmul.f32 0.6931472, %v4693_v62 }
 0x875   : > { %v4695_v0 = vpop.eup %4694 }
 0x876   : > { %v2859_v51 = vsel %vm2858_vm5, %v2856_v49, %v2853_v9  ;;  %v2862_v7 = vmul.f32 0.6931472, %v4695_v0 }
 0x877   : > { %v2869_v20 = vadd.f32 %v2859_v51, %v2841_v1 }
 0x878   : > { %v2868_v8 = vsel %vm2867_vm7, %v2865_v2, %v2862_v7 }
 0x879   : > { %v2870_v13 = vadd.f32 %v2868_v8, %v2842_v6  ;;  %v4094_v23 = vadd.f32 -0.6931472, %v2869_v20 }
 0x87b   : > { %v4095_v46 = vadd.f32 -0.6931472, %v2870_v13 }
 0x87d   : > { %v2889_v34 = vpack.c.bf16 %v4095_v46, %v4094_v23 }
 0x87f   : > { %4385 = vmatmul.mubr.bf16.vlgmr.msra.gmra.mrb[28].mxu0 %v2889_v34 }
 0x952   : > { %v2979_v24 = vpop.f32.mrb[28].mxu0 }
 0x953   : > { %v2980_v52 = vadd.f32 %v4096_v40, %v2979_v24  ;;  %v4386_v15 = vpop.f32.mrb[29].mxu0 }
 0x954   : > { %v2982_v54 = vpop.f32.mrb[30].mxu0 }
 0x955   : > { %v5487_v16 = vadd.f32 %v2980_v52, %v5457_v22  ;;  %v2983_v38 = vadd.f32 %v4096_v40, %v2982_v54  ;;  %v4387_v25 = vpop.f32.mrb[31].mxu0 }
 0x957   : > { %2988 = vst [vmem:[#allocation2] sm:$0xff] %v5487_v16  ;;  %v5491_v26 = vadd.f32 %v2983_v38, %v5460_v3 }
 0x959   : > { %2989 = vst [vmem:[#allocation2 + $0x8] sm:$0xff] %v5491_v26 }
 0x95a   : > { %p4105_p5 = scmp.ne.s32.totalorder %s4943_s7, 1 }
 0x95c   : > { %2993 = sbr.rel (%p4105_p5) target bundleno = 3265 (0xcc1), region = 144 }
 0x963   : > { %s5686_s21 = sld [smem:[#allocation47_spill]] }
 0x969   : > { %v5496_v22 = vld [vmem:[%s5686_s21] sm:$0xff]  ;;  %v5499_v27 = vld [vmem:[%s5686_s21 + $0x8] sm:$0xff]  ;;  %v5502_v11 = vld [vmem:[%s5686_s21 + $0x10] sm:$0xff] }
 0x96a   : > { %v5505_v3 = vld [vmem:[%s5686_s21 + $0x18] sm:$0xff]  ;;  %v5508_v17 = vld [vmem:[%s5686_s21 + $0x20] sm:$0xff]  ;;  %v5511_v31 = vld [vmem:[%s5686_s21 + $0x28] sm:$0xff] }
 0x96b   : > { %v5514_v28 = vld [vmem:[%s5686_s21 + $0x30] sm:$0xff]  ;;  %v5517_v14 = vld [vmem:[%s5686_s21 + $0x38] sm:$0xff] }
 0x96c   : > { %3049 = vsyncadd [#allocation15], 1024 }
 0x96d   : > { %4728 = dma.done.wait [#allocation15], 1024 }
 0x96e   : > { %4729 = vsyncadd [#allocation15], 4294966272 }
 0x96f   : > { %s5687_s29 = sld [smem:[#allocation48_spill]] }
 0x975   : > { %v3072_v29 = vld [vmem:[%s5687_s29] sm:$0x1] }
 0x976   : > { %3073 = vst [vmem:[#allocation8] sm:$0x1] %v3072_v29 }
 0x977   : > { %3098 = vsyncadd [#allocation17], 16 }
 0x978   : > { %4730 = dma.done.wait [#allocation17], 16 }
 0x979   : > { %4731 = vsyncadd [#allocation17], 4294967280 }
 0x97a   : > { %s5688_s4 = sld [smem:[#allocation49_spill]] }
 0x980   : > { %s5689_s7 = smov %s5688_s4  ;;  %v3135_v32 = vld [vmem:[%s5688_s4] sm:$0xff] }
 0x981   : > { %v3137_v35 = vld [vmem:[%s5689_s7 + $0x8] sm:$0xff]  ;;  %v5523_v30 = vld [vmem:[%s5689_s7 + $0x10] sm:$0xff]  ;;  %v5526_v36 = vld [vmem:[%s5689_s7 + $0x18] sm:$0xff] }
 0x982   : > { %v5529_v37 = vld [vmem:[%s5689_s7 + $0x20] sm:$0xff]  ;;  %v5532_v63 = vld [vmem:[%s5689_s7 + $0x28] sm:$0xff]  ;;  %v5535_v42 = vld [vmem:[%s5689_s7 + $0x30] sm:$0xff] }
 0x983   : > { %v5538_v44 = vld [vmem:[%s5689_s7 + $0x38] sm:$0xff] }
 0x984   : > { %3158 = vsyncadd [#allocation19], 1024 }
 0x985   : > { %4732 = dma.done.wait [#allocation19], 1024 }
 0x986   : > { %4733 = vsyncadd [#allocation19], 4294966272 }
 0x987   : > { %s5690_s0 = sld [smem:[#allocation50_spill]] }
 0x98d   : > { %v3181_v33 = vld [vmem:[%s5690_s0] sm:$0x1] }
 0x98e   : > { %3182 = vst [vmem:[#allocation10] sm:$0x1] %v3181_v33 }
 0x98f   : > { %3207 = vsyncadd [#allocation21], 16 }
 0x990   : > { %4734 = dma.done.wait [#allocation21], 16 }
 0x991   : > { %4735 = vsyncadd [#allocation21], 4294967280 }
 0x992   : > { %s5691_s16 = sld [smem:[#allocation51_spill]] }
 0x998   : > { %v5542_v18 = vld [vmem:[%s5691_s16] sm:$0xff]  ;;  %v5545_v39 = vld [vmem:[%s5691_s16 + $0x8] sm:$0xff]  ;;  %v5548_v50 = vld [vmem:[%s5691_s16 + $0x10] sm:$0xff] }
 0x999   : > { %v5551_v21 = vld [vmem:[%s5691_s16 + $0x18] sm:$0xff]  ;;  %v5554_v53 = vld [vmem:[%s5691_s16 + $0x20] sm:$0xff]  ;;  %v5557_v47 = vld [vmem:[%s5691_s16 + $0x28] sm:$0xff] }
 0x99a   : > { %v5560_v48 = vld [vmem:[%s5691_s16 + $0x30] sm:$0xff]  ;;  %v5563_v4 = vld [vmem:[%s5691_s16 + $0x38] sm:$0xff] }
 0x99b   : > { %3267 = vsyncadd [#allocation23], 1024 }
 0x99c   : > { %4736 = dma.done.wait [#allocation23], 1024 }
 0x99d   : > { %4737 = vsyncadd [#allocation23], 4294966272 }
 0x99e   : > { %s5692_s23 = sld [smem:[#allocation52_spill]] }
 0x9a4   : > { %v3289_v19 = vld [vmem:[%s5692_s23] sm:$0x1] }
 0x9a5   : > { %3290 = vst [vmem:[#allocation12] sm:$0x1] %v3289_v19 }
 0x9a6   : > { %3315 = vsyncadd [#allocation25], 16 }
 0x9a7   : > { %4738 = dma.done.wait [#allocation25], 16 }
 0x9a8   : > { %4739 = vsyncadd [#allocation25], 4294967280 }
 0x9a9   : > { %s5693_s27 = sld [smem:[#allocation53_spill]] }
 0x9af   : > { %v5567_v55 = vld [vmem:[%s5693_s27] sm:$0xff]  ;;  %v5570_v56 = vld [vmem:[%s5693_s27 + $0x8] sm:$0xff] }
 0x9b0   : > { %3362 = vsyncadd [#allocation27], 256 }
 0x9b1   : > { %4740 = dma.done.wait [#allocation27], 256 }
 0x9b2   : > { %4741 = vsyncadd [#allocation27], 4294967040 }
 0x9b3   : > { %s5694_s28 = sld [smem:[#allocation54_spill]] }
 0x9b9   : > { %v5573_v57 = vld [vmem:[%s5694_s28] sm:$0xff]  ;;  %v5576_v41 = vld [vmem:[%s5694_s28 + $0x8] sm:$0xff] }
 0x9ba   : > { %3409 = vsyncadd [#allocation29], 256 }
 0x9bb   : > { %4742 = dma.done.wait [#allocation29], 256 }
 0x9bc   : > { %4743 = vsyncadd [#allocation29], 4294967040  ;;  %v4782_v12 = vmov 0.0   ;;  %vm4783_vm8 = vmmov 0   ;;  %v3415_v43 = vand.u32 2147483647, %v5487_v16 }
 0x9bd   : > { %4388 = vmatprep.subr.bf16.mxu0 %v4782_v12  ;;  %4404 = vmatprep.mubr.msk.bf16.mxu0 %vm4783_vm8, %v4782_v12  ;;  %v3416_v10 = vand.u32 2147483647, %v5491_v26  ;;  %v3413_v8 = vmax.f32 %v5487_v16, 0.0  ;;  %v3414_v46 = vmax.f32 %v5491_v26, 0.0  ;;  %s5695_s1 = sld [smem:[#allocation55_spill]] }
 0x9be   : > { %4389 = vmatpush3.bf16.msra.mxu0 %v5496_v22  ;;  %4408 = vmatprep.subr.bf16.mxu1 %v4782_v12  ;;  %v3417_v58 = vsub.f32 0.0, %v3415_v43 }
 0x9bf   : > { %4390 = vmatprep.subr.bf16.mxu0 %v4782_v12  ;;  %v3418_v5 = vsub.f32 0.0, %v3416_v10  ;;  %4409 = vmatpush3.bf16.msra.mxu1 %v3135_v32 }
 0x9c0   : > { %4410 = vmatprep.subr.bf16.mxu1 %v4782_v12  ;;  %4424 = vmatprep.mubr.msk.bf16.mxu1 %vm4783_vm8, %v4782_v12  ;;  %v3419_v59 = vmul.f32 1.442695, %v3417_v58 }
 0x9c1   : > { %v3421_v60 = vmul.f32 1.442695, %v3418_v5 }
 0x9c2   : > { %4391 = vmatpush3.bf16.msra.mxu0 %v5499_v27  ;;  %4698 = vpow2.f32 %v3419_v59  ;;  %v4108_v27 = vld [vmem:[#allocation8] ss:$0 sm:$0xff] }
 0x9c3   : > { %4392 = vmatprep.subr.bf16.mxu0 %v4782_v12  ;;  %4411 = vmatpush3.bf16.msra.mxu1 %v3137_v35  ;;  %4700 = vpow2.f32 %v3421_v60 }
 0x9c4   : > { %4412 = vmatprep.subr.bf16.mxu1 %v4782_v12 }
 0x9c6   : > { %4393 = vmatpush3.bf16.msra.mxu0 %v5502_v11 }
 0x9c7   : > { %4394 = vmatprep.subr.bf16.mxu0 %v4782_v12  ;;  %4413 = vmatpush3.bf16.msra.mxu1 %v5523_v30 }
 0x9c8   : > { %4414 = vmatprep.subr.bf16.mxu1 %v4782_v12 }
 0x9ca   : > { %4395 = vmatpush3.bf16.msra.mxu0 %v5505_v3 }
 0x9cb   : > { %4396 = vmatprep.subr.bf16.mxu0 %v4782_v12  ;;  %4415 = vmatpush3.bf16.msra.mxu1 %v5526_v36 }
 0x9cc   : > { %4416 = vmatprep.subr.bf16.mxu1 %v4782_v12  ;;  %v4699_v61 = vpop.eup %4698 }
 0x9cd   : > { %v4701_v62 = vpop.eup %4700  ;;  %v3423_v45 = vadd.f32 1.0, %v4699_v61  ;;  %v3426_v49 = vmul.f32 -0.5, %v4699_v61  ;;  %v3429_v51 = vand.u32 2147483647, %v4699_v61 }
 0x9ce   : > { %4397 = vmatpush3.bf16.msra.mxu0 %v5508_v17  ;;  %v3432_v9 = vadd.f32 1.0, %v4701_v62  ;;  %v3435_v0 = vmul.f32 -0.5, %v4701_v62  ;;  %v3438_v2 = vand.u32 2147483647, %v4701_v62 }
 0x9cf   : > { %4398 = vmatprep.subr.bf16.mxu0 %v4782_v12  ;;  %4417 = vmatpush3.bf16.msra.mxu1 %v5529_v37  ;;  %4702 = vlog2.f32 %v3423_v45  ;;  %v3427_v1 = vadd.f32 1.0, %v3426_v49  ;;  %vm3430_vm6 = vcmp.lt.f32.partialorder %v3429_v51, 0.0004427343 }
 0x9d0   : > { %4418 = vmatprep.subr.bf16.mxu1 %v4782_v12  ;;  %4704 = vlog2.f32 %v3432_v9  ;;  %v3436_v7 = vadd.f32 1.0, %v3435_v0  ;;  %vm3439_vm9 = vcmp.lt.f32.partialorder %v3438_v2, 0.0004427343  ;;  %v4111_v0 = vld [vmem:[#allocation10] ss:$0 sm:$0xff] }
 0x9d1   : > { %v3428_v20 = vmul.f32 %v4699_v61, %v3427_v1 }
 0x9d2   : > { %4399 = vmatpush3.bf16.msra.mxu0 %v5511_v31  ;;  %v3437_v13 = vmul.f32 %v4701_v62, %v3436_v7 }
 0x9d3   : > { %4400 = vmatprep.subr.bf16.mxu0 %v4782_v12  ;;  %4419 = vmatpush3.bf16.msra.mxu1 %v5532_v63 }
 0x9d4   : > { %4420 = vmatprep.subr.bf16.mxu1 %v4782_v12 }
 0x9d6   : > { %4401 = vmatpush3.bf16.msra.mxu0 %v5514_v28 }
 0x9d7   : > { %4402 = vmatprep.subr.bf16.mxu0 %v4782_v12  ;;  %4421 = vmatpush3.bf16.msra.mxu1 %v5535_v42 }
 0x9d8   : > { %4422 = vmatprep.subr.bf16.mxu1 %v4782_v12 }
 0x9d9   : > { %v4703_v6 = vpop.eup %4702 }
 0x9da   : > { %4403 = vmatpush3.bf16.msra.mxu0 %v5517_v14  ;;  %v4705_v23 = vpop.eup %4704  ;;  %v3425_v34 = vmul.f32 0.6931472, %v4703_v6 }
 0x9db   : > { %4423 = vmatpush3.bf16.msra.mxu1 %v5538_v44  ;;  %4428 = vmatprep.subr.bf16.mxu0 %v4782_v12  ;;  %v3434_v40 = vmul.f32 0.6931472, %v4705_v23 }
 0x9dc   : > { %v3431_v24 = vsel %vm3430_vm6, %v3428_v20, %v3425_v34 }
 0x9dd   : > { %v3440_v52 = vsel %vm3439_vm9, %v3437_v13, %v3434_v40  ;;  %v3441_v15 = vadd.f32 %v3431_v24, %v3413_v8 }
 0x9de   : > { %v3442_v54 = vadd.f32 %v3440_v52, %v3414_v46 }
 0x9df   : > { %v4106_v38 = vadd.f32 -0.6931472, %v3441_v15 }
 0x9e0   : > { %v4107_v25 = vadd.f32 -0.6931472, %v3442_v54 }
 0x9e2   : > { %v3453_v22 = vpack.c.bf16 %v4107_v25, %v4106_v38 }
 0x9e4   : > { %4405 = vmatmul.mubr.bf16.vlgmr.msra.gmra.mrb[0].mxu0 %v3453_v22 }
 0x9e5   : > { %4429 = vmatpush3.bf16.msra.mxu0 %v5542_v18  ;;  %4444 = vmatprep.mubr.msk.bf16.mxu0 %vm4783_vm8, %v4782_v12 }
 0x9e6   : > { %4430 = vmatprep.subr.bf16.mxu0 %v4782_v12 }
 0x9e9   : > { %4431 = vmatpush3.bf16.msra.mxu0 %v5545_v39 }
 0x9ea   : > { %4432 = vmatprep.subr.bf16.mxu0 %v4782_v12 }
 0x9ed   : > { %4433 = vmatpush3.bf16.msra.mxu0 %v5548_v50 }
 0x9ee   : > { %4434 = vmatprep.subr.bf16.mxu0 %v4782_v12 }
 0x9f1   : > { %4435 = vmatpush3.bf16.msra.mxu0 %v5551_v21 }
 0x9f2   : > { %4436 = vmatprep.subr.bf16.mxu0 %v4782_v12 }
 0x9f5   : > { %4437 = vmatpush3.bf16.msra.mxu0 %v5554_v53 }
 0x9f6   : > { %4438 = vmatprep.subr.bf16.mxu0 %v4782_v12 }
 0x9f9   : > { %4439 = vmatpush3.bf16.msra.mxu0 %v5557_v47 }
 0x9fa   : > { %4440 = vmatprep.subr.bf16.mxu0 %v4782_v12 }
 0x9fd   : > { %4441 = vmatpush3.bf16.msra.mxu0 %v5560_v48 }
 0x9fe   : > { %4442 = vmatprep.subr.bf16.mxu0 %v4782_v12 }
 0xa01   : > { %4443 = vmatpush3.bf16.msra.mxu0 %v5563_v4 }
 0xab7   : > { %v3495_v11 = vpop.f32.mrb[0].mxu0 }
 0xab8   : > { %v3496_v3 = vadd.f32 %v4108_v27, %v3495_v11  ;;  %v4406_v17 = vpop.f32.mrb[1].mxu0 }
 0xab9   : > { %v3498_v31 = vpop.f32.mrb[2].mxu0 }
 0xaba   : > { %v3504_v28 = vand.u32 2147483647, %v3496_v3  ;;  %v3499_v14 = vadd.f32 %v4108_v27, %v3498_v31  ;;  %v4407_v29 = vpop.f32.mrb[3].mxu0  ;;  %v3502_v43 = vmax.f32 %v3496_v3, 0.0 }
 0xabc   : > { %v3506_v32 = vsub.f32 0.0, %v3504_v28  ;;  %v3505_v35 = vand.u32 2147483647, %v3499_v14  ;;  %v3503_v60 = vmax.f32 %v3499_v14, 0.0 }
 0xabe   : > { %v3508_v30 = vmul.f32 1.442695, %v3506_v32  ;;  %v3507_v36 = vsub.f32 0.0, %v3505_v35 }
 0xac0   : > { %4706 = vpow2.f32 %v3508_v30  ;;  %v3510_v37 = vmul.f32 1.442695, %v3507_v36 }
 0xac2   : > { %4708 = vpow2.f32 %v3510_v37 }
 0xaca   : > { %v4707_v63 = vpop.eup %4706 }
 0xacb   : > { %v3512_v42 = vadd.f32 1.0, %v4707_v63  ;;  %v3515_v18 = vmul.f32 -0.5, %v4707_v63  ;;  %v3518_v21 = vand.u32 2147483647, %v4707_v63 }
 0xacc   : > { %v4709_v44 = vpop.eup %4708 }
 0xacd   : > { %4710 = vlog2.f32 %v3512_v42  ;;  %v3521_v33 = vadd.f32 1.0, %v4709_v44  ;;  %v3524_v39 = vmul.f32 -0.5, %v4709_v44  ;;  %v3516_v50 = vadd.f32 1.0, %v3515_v18 }
 0xace   : > { %v3527_v48 = vand.u32 2147483647, %v4709_v44  ;;  %vm3519_vm10 = vcmp.lt.f32.partialorder %v3518_v21, 0.0004427343 }
 0xacf   : > { %4712 = vlog2.f32 %v3521_v33  ;;  %v3525_v53 = vadd.f32 1.0, %v3524_v39  ;;  %v3517_v19 = vmul.f32 %v4707_v63, %v3516_v50  ;;  %v4114_v39 = vld [vmem:[#allocation12] ss:$0 sm:$0xff] }
 0xad0   : > { %vm3528_vm11 = vcmp.lt.f32.partialorder %v3527_v48, 0.0004427343 }
 0xad1   : > { %v3526_v5 = vmul.f32 %v4709_v44, %v3525_v53 }
 0xad7   : > { %v4711_v47 = vpop.eup %4710 }
 0xad8   : > { %v3514_v4 = vmul.f32 0.6931472, %v4711_v47 }
 0xad9   : > { %v4713_v12 = vpop.eup %4712 }
 0xada   : > { %v3520_v10 = vsel %vm3519_vm10, %v3517_v19, %v3514_v4  ;;  %v3523_v58 = vmul.f32 0.6931472, %v4713_v12 }
 0xadb   : > { %v3530_v59 = vadd.f32 %v3520_v10, %v3502_v43 }
 0xadc   : > { %v3529_v61 = vsel %vm3528_vm11, %v3526_v5, %v3523_v58 }
 0xadd   : > { %v3531_v62 = vadd.f32 %v3529_v61, %v3503_v60  ;;  %v4109_v45 = vadd.f32 -0.6931472, %v3530_v59 }
 0xadf   : > { %v4110_v9 = vadd.f32 -0.6931472, %v3531_v62 }
 0xae1   : > { %v3542_v49 = vpack.c.bf16 %v4110_v9, %v4109_v45 }
 0xae3   : > { %4425 = vmatmul.mubr.bf16.vlgmr.msra.gmra.mrb[0].mxu1 %v3542_v49 }
 0xbb6   : > { %v3584_v1 = vpop.f32.mrb[0].mxu1 }
 0xbb7   : > { %v3585_v51 = vadd.f32 %v4111_v0, %v3584_v1  ;;  %v4426_v7 = vpop.f32.mrb[1].mxu1 }
 0xbb8   : > { %v3587_v2 = vpop.f32.mrb[2].mxu1 }
 0xbb9   : > { %v3591_v20 = vadd.f32 %v3585_v51, %v5487_v16  ;;  %v3588_v6 = vadd.f32 %v4111_v0, %v3587_v2  ;;  %v4427_v8 = vpop.f32.mrb[3].mxu1 }
 0xbbb   : > { %v3595_v13 = vand.u32 2147483647, %v3591_v20  ;;  %v3592_v23 = vadd.f32 %v3588_v6, %v5491_v26  ;;  %v3593_v29 = vmax.f32 %v3591_v20, 0.0 }
 0xbbd   : > { %v3597_v46 = vsub.f32 0.0, %v3595_v13  ;;  %v3596_v34 = vand.u32 2147483647, %v3592_v23  ;;  %v3594_v37 = vmax.f32 %v3592_v23, 0.0 }
 0xbbf   : > { %v3599_v40 = vmul.f32 1.442695, %v3597_v46  ;;  %v3598_v24 = vsub.f32 0.0, %v3596_v34 }
 0xbc1   : > { %4714 = vpow2.f32 %v3599_v40  ;;  %v3601_v52 = vmul.f32 1.442695, %v3598_v24 }
 0xbc3   : > { %4716 = vpow2.f32 %v3601_v52 }
 0xbcb   : > { %v4715_v15 = vpop.eup %4714 }
 0xbcc   : > { %v3603_v54 = vadd.f32 1.0, %v4715_v15  ;;  %v3606_v22 = vmul.f32 -0.5, %v4715_v15  ;;  %v3609_v11 = vand.u32 2147483647, %v4715_v15 }
 0xbcd   : > { %v4717_v38 = vpop.eup %4716 }
 0xbce   : > { %4718 = vlog2.f32 %v3603_v54  ;;  %v3612_v25 = vadd.f32 1.0, %v4717_v38  ;;  %v3615_v16 = vmul.f32 -0.5, %v4717_v38  ;;  %v3607_v27 = vadd.f32 1.0, %v3606_v22 }
 0xbcf   : > { %v3618_v26 = vand.u32 2147483647, %v4717_v38  ;;  %vm3610_vm12 = vcmp.lt.f32.partialorder %v3609_v11, 0.0004427343 }
 0xbd0   : > { %4720 = vlog2.f32 %v3612_v25  ;;  %v3616_v3 = vadd.f32 1.0, %v3615_v16  ;;  %v3608_v28 = vmul.f32 %v4715_v15, %v3607_v27 }
 0xbd1   : > { %vm3619_vm13 = vcmp.lt.f32.partialorder %v3618_v26, 0.0004427343 }
 0xbd2   : > { %v3617_v30 = vmul.f32 %v4717_v38, %v3616_v3 }
 0xbd8   : > { %v4719_v17 = vpop.eup %4718 }
 0xbd9   : > { %v3605_v31 = vmul.f32 0.6931472, %v4719_v17 }
 0xbda   : > { %v4721_v14 = vpop.eup %4720 }
 0xbdb   : > { %v3611_v32 = vsel %vm3610_vm12, %v3608_v28, %v3605_v31  ;;  %v3614_v35 = vmul.f32 0.6931472, %v4721_v14 }
 0xbdc   : > { %v3621_v36 = vadd.f32 %v3611_v32, %v3593_v29 }
 0xbdd   : > { %v3620_v63 = vsel %vm3619_vm13, %v3617_v30, %v3614_v35 }
 0xbde   : > { %v3622_v42 = vadd.f32 %v3620_v63, %v3594_v37  ;;  %v4112_v44 = vadd.f32 -0.6931472, %v3621_v36 }
 0xbe0   : > { %v4113_v33 = vadd.f32 -0.6931472, %v3622_v42 }
 0xbe2   : > { %v3633_v18 = vpack.c.bf16 %v4113_v33, %v4112_v44 }
 0xbe4   : > { %4445 = vmatmul.mubr.bf16.vlgmr.msra.gmra.mrb[4].mxu0 %v3633_v18 }
 0xcb7   : > { %v3675_v50 = vpop.f32.mrb[4].mxu0 }
 0xcb8   : > { %v3676_v21 = vadd.f32 %v4114_v39, %v3675_v50  ;;  %v4446_v53 = vpop.f32.mrb[5].mxu0 }
 0xcb9   : > { %v3678_v47 = vpop.f32.mrb[6].mxu0 }
 0xcba   : > { %v3684_v48 = vmul.f32 %v3676_v21, %v5567_v55  ;;  %v3679_v4 = vadd.f32 %v4114_v39, %v3678_v47  ;;  %v4447_v19 = vpop.f32.mrb[7].mxu0 }
 0xcbc   : > { %v3688_v12 = vadd.f32 %v3684_v48, %v5573_v57  ;;  %v3685_v43 = vmul.f32 %v3679_v4, %v5570_v56 }
 0xcbe   : > { %3690 = vst [vmem:[%s5695_s1] sm:$0xff] %v3688_v12  ;;  %v3689_v10 = vadd.f32 %v3685_v43, %v5576_v41 }
 0xcc0   : > { %3691 = vst [vmem:[%s5695_s1 + $0x8] sm:$0xff] %v3689_v10 }
 0xcc1 PF: > { %s5696_s10 = sld [smem:[#allocation56_spill]] }
 0xcc7   : > { %s71_s4 = sadd.s32 1, %s5696_s10  }
 0xcc8   : > { %p68_p6 = scmp.ge.s32.totalorder %s71_s4, 4  }
 0xcca   :  { %70 = sbr.rel (!%p68_p6) target bundleno = 55 (0x37), region = 584 }

</bundles_post_ra>
